<compile_context>
chip_gen: v5e
topology: v5e:2x2
jax: 0.10.0
libtpu: 0.0.40
codegen_flags: <defaults>
</compile_context>

<pallas_src>
import functools

import jax
import jax.numpy as jnp
from jax.experimental import pallas as pl
from jax.experimental.pallas import tpu as pltpu


# ----------------------------------------------------------------------------
# Token path (transformer stand-in on the cls token + 3-layer output MLP).
# Left to XLA: a couple of (B, C) GEMMs with B ~= 2 is pure dispatch overhead
# as a Pallas kernel (perf-review item).
# ----------------------------------------------------------------------------
def token_hyper(cls_tok, p):
    h = cls_tok @ p["t_wt"] + p["t_bt"]
    h = jax.nn.relu(h @ p["mlp_w0"] + p["mlp_b0"])
    h = jax.nn.relu(h @ p["mlp_w1"] + p["mlp_b1"])
    return h @ p["mlp_w2"] + p["mlp_b2"]          # (B, C//8) f32


# ----------------------------------------------------------------------------
# Fused image-path kernel:
#   (src + pos) -> [linear stand-in folded into] ConvT(2,2) -> LayerNorm2d
#   -> GELU -> ConvT(2,2) (block-diag, all 4 groups at once) -> GELU
#   -> hyper reduction (VPU mul + lane reduce) -> lane-dense (16, tm) store.
# ----------------------------------------------------------------------------
def _fused_image_kernel(src_ref, pos_ref, w1_ref, b1_ref, lg_ref, lb_ref,
                        w2_ref, b2_ref, hyp_ref, out_ref, *, c4, c8, eps):
    tm = src_ref.shape[1]

    # (src + pos) rows for this (row-tile, batch) grid cell; bf16 in, f32 add.
    x = src_ref[0].astype(jnp.float32) + pos_ref[0].astype(jnp.float32)

    # transformer stand-in (linear) folded into ConvT1 -> one MXU matmul.
    # columns ordered (di1, dj1, c4).
    y1 = jnp.dot(x.astype(jnp.bfloat16), w1_ref[...],
                 preferred_element_type=jnp.float32) + b1_ref[...]      # (tm, 4*c4)

    # LayerNorm2d + GELU per (di1, dj1) group; gamma/beta broadcasts hoisted
    # out of the static unrolled loop (JAX does not CSE broadcast_in_dim).
    lg = jnp.broadcast_to(lg_ref[...], (tm, c4))
    lb = jnp.broadcast_to(lb_ref[...], (tm, c4))
    parts = []
    for g in range(4):                                                  # static unroll
        yg = y1[:, g * c4:(g + 1) * c4]
        mu = jnp.mean(yg, axis=-1, keepdims=True)
        yc = yg - mu
        var = jnp.mean(yc * yc, axis=-1, keepdims=True)
        yg = yc * jax.lax.rsqrt(var + eps) * lg + lb
        parts.append(jax.nn.gelu(yg, approximate=True))                 # tanh GELU (EUP)
    y1n = jnp.concatenate(parts, axis=-1).astype(jnp.bfloat16)          # (tm, 4*c4)

    # ConvT2 for all 4 groups as ONE block-diagonal matmul (N = 16*c8).
    # output columns ordered (di1, dj1, di2, dj2, c8).
    y2 = jnp.dot(y1n, w2_ref[...], preferred_element_type=jnp.float32) + b2_ref[...]
    y2 = jax.nn.gelu(y2, approximate=True)                              # (tm, 16*c8)

    # hyper reduction on the VPU/XLU (no N=4 MXU GEMV): one mask value per
    # (di1, dj1, di2, dj2) sub-pixel of every input pixel.
    hyp = jnp.broadcast_to(hyp_ref[0], (tm, c8))                        # hoisted
    cols = [jnp.sum(y2[:, k * c8:(k + 1) * c8] * hyp, axis=-1, keepdims=True)
            for k in range(16)]
    m = jnp.concatenate(cols, axis=-1)                                  # (tm, 16) f32

    # lane-dense store: tm (multiple of 128 / full HW) becomes the lane dim.
    out_ref[0] = jnp.transpose(m).astype(out_ref.dtype)                 # (16, tm)


def _pick_row_tile(hw, target=512):
    """Largest divisor of hw that is <= target and a multiple of 128 (lane-dense
    output blocks); fall back to the whole spatial extent."""
    if hw <= target:
        return hw
    for t in range(min(target, hw), 0, -1):
        if hw % t == 0 and t % 128 == 0:
            return t
    return hw


def fused_image_path(src3, pos3, hyp, w1f, b1f, lng, lnb, w2bd, b2bd,
                     *, c4, c8, eps=1e-6, row_tile=512):
    """Returns the grouped mask (B, 16, HW) f32; column k = (di1,dj1,di2,dj2)."""
    B, HW, C = src3.shape
    tm = _pick_row_tile(HW, row_tile)
    # batch innermost -> pos3 block index is constant across the inner loop
    # and is DMA'd once per row tile instead of once per (tile, batch).
    grid = (HW // tm, B)

    flops = 2 * B * HW * (C * 4 * c4 + 4 * c4 * 16 * c8 + 16 * c8)
    transcendentals = B * HW * (4 * c4 + 16 * c8)
    bytes_accessed = (src3.size * 2 + pos3.size * 2           # bf16 inputs (pos once)
                      + (w1f.size + w2bd.size) * 2            # bf16 weights
                      + (b1f.size + b2bd.size + lng.size + lnb.size + hyp.size) * 4
                      + B * 16 * HW * 4)                      # f32 output

    kernel = functools.partial(_fused_image_kernel, c4=c4, c8=c8, eps=eps)
    return pl.pallas_call(
        kernel,
        out_shape=jax.ShapeDtypeStruct((B, 16, HW), jnp.float32),
        grid=grid,
        in_specs=[
            pl.BlockSpec((1, tm, C), lambda i, b: (b, i, 0)),          # src rows (bf16)
            pl.BlockSpec((1, tm, C), lambda i, b: (0, i, 0)),          # pos rows (bf16)
            pl.BlockSpec((C, 4 * c4), lambda i, b: (0, 0)),            # folded ConvT1 w
            pl.BlockSpec((1, 4 * c4), lambda i, b: (0, 0)),            # folded ConvT1 b
            pl.BlockSpec((1, c4), lambda i, b: (0, 0)),                # LN gamma
            pl.BlockSpec((1, c4), lambda i, b: (0, 0)),                # LN beta
            pl.BlockSpec((4 * c4, 16 * c8), lambda i, b: (0, 0)),      # block-diag ConvT2 w
            pl.BlockSpec((1, 16 * c8), lambda i, b: (0, 0)),           # ConvT2 bias (x16)
            pl.BlockSpec((1, 1, c8), lambda i, b: (b, 0, 0)),          # hyper vector
        ],
        out_specs=pl.BlockSpec((1, 16, tm), lambda i, b: (b, 0, i)),
        compiler_params=pltpu.CompilerParams(
            dimension_semantics=("parallel", "parallel")),
        cost_estimate=pl.CostEstimate(
            flops=flops, transcendentals=transcendentals,
            bytes_accessed=bytes_accessed),
    )(src3, pos3, w1f, b1f, lng, lnb, w2bd, b2bd, hyp)


# ----------------------------------------------------------------------------
# MaskDecoder forward (single-class path)
# ----------------------------------------------------------------------------
def mask_decoder_forward(params, image_embeddings, image_pe,
                         sparse_prompt_embeddings, dense_prompt_embeddings):
    b1 = image_embeddings.shape[0]
    b2 = sparse_prompt_embeddings.shape[0]
    C = params["output_tokens"].shape[1]
    assert image_pe.shape[0] == 1, "image_pe must be [1, C, h, w]"

    # tokens = cat(output_tokens, sparse_prompt_embeddings)
    out_tok = jnp.broadcast_to(
        params["output_tokens"][None],
        (b2, params["output_tokens"].shape[0], C))
    tokens = jnp.concatenate([out_tok, sparse_prompt_embeddings], axis=1)

    if b1 > 1 and b2 == 1:
        tokens = jnp.repeat(tokens, b1, axis=0)
    elif b2 > 1 and b1 == 1:
        image_embeddings = jnp.repeat(image_embeddings, b2, axis=0)
    elif b1 != b2:
        raise ValueError(
            "The input embeddings pairs cannot be automatically generated!")

    src = image_embeddings + dense_prompt_embeddings          # (b, C, h, w) NCHW
    b, c, h, w = src.shape
    c4, c8 = c // 4, c // 8

    # channels-last, spatially-flattened bf16 views (halves input HBM traffic).
    src3 = jnp.transpose(src, (0, 2, 3, 1)).reshape(b, h * w, c).astype(jnp.bfloat16)
    pos3 = jnp.transpose(image_pe, (0, 2, 3, 1)).reshape(1, h * w, c).astype(jnp.bfloat16)

    # ---- token path (plain XLA): only hs[:, 0, :] feeds the mask head ----
    cls_tok = tokens[:, 0, :]                                  # (b, C)
    hyper = token_hyper(cls_tok, params)                       # (b, c8) f32
    hyp = hyper.reshape(b, 1, c8)

    # ---- weight prep (f32 fold, bf16 cast for the MXU) ----
    # ConvT weights (Cin, Cout, kh, kw) -> (Cin, kh, kw, Cout) -> (Cin, 4*Cout)
    w1g = jnp.transpose(params["ct1_w"], (0, 2, 3, 1)).reshape(c, 4 * c4)
    # TODO(synk): folding the linear transformer stand-in into ConvT1 is only
    # valid while the external transformer is replaced by a linear mixer.
    w1f = params["t_ws"] @ w1g                                 # (C, 4*c4)
    b1f = params["t_bs"] @ w1g + jnp.tile(params["ct1_b"], 4)  # (4*c4,)
    w2g = jnp.transpose(params["ct2_w"], (0, 2, 3, 1)).reshape(c4, 4 * c8)
    # block-diagonal (4*c4, 16*c8): block (g, k) = eye[g, k] * w2g
    w2bd = jnp.einsum("gk,cd->gckd", jnp.eye(4, dtype=w2g.dtype),
                      w2g).reshape(4 * c4, 16 * c8)
    b2bd = jnp.tile(params["ct2_b"], 16)                       # (16*c8,)

    mask_t = fused_image_path(
        src3, pos3, hyp,
        w1f.astype(jnp.bfloat16), b1f.reshape(1, 4 * c4),
        params["ln_g"].reshape(1, c4), params["ln_b"].reshape(1, c4),
        w2bd.astype(jnp.bfloat16), b2bd.reshape(1, 16 * c8),
        c4=c4, c8=c8)                                          # (b, 16, h*w)

    # tiny spatial re-interleave of the grouped mask (XLA, 16*HW values/batch):
    # (b, di1, dj1, di2, dj2, i0, j0) -> pixel (4*i0+2*di1+di2, 4*j0+2*dj1+dj2)
    m = mask_t.reshape(b, 2, 2, 2, 2, h, w)
    m = jnp.transpose(m, (0, 5, 1, 3, 6, 2, 4))
    return m.reshape(b, 1, 4 * h, 4 * w)


# ----------------------------------------------------------------------------
# Matched-precision pure-JAX reference (layout-independent; validates the
# grouped-deconv / block-diag / hyper column ordering and the final interleave)
# ----------------------------------------------------------------------------
def reference_forward(params, image_embeddings, image_pe,
                      sparse_prompt_embeddings, dense_prompt_embeddings,
                      eps=1e-6):
    b2 = sparse_prompt_embeddings.shape[0]
    C = params["output_tokens"].shape[1]
    assert image_embeddings.shape[0] == b2, "reference expects matched batches"

    out_tok = jnp.broadcast_to(
        params["output_tokens"][None],
        (b2, params["output_tokens"].shape[0], C))
    tokens = jnp.concatenate([out_tok, sparse_prompt_embeddings], axis=1)

    src = image_embeddings + dense_prompt_embeddings
    b, c, h, w = src.shape
    c4, c8 = c // 4, c // 8

    hyper = token_hyper(tokens[:, 0, :], params)               # (b, c8)

    x = (jnp.transpose(src, (0, 2, 3, 1)).astype(jnp.bfloat16).astype(jnp.float32)
         + jnp.transpose(image_pe, (0, 2, 3, 1)).astype(jnp.bfloat16).astype(jnp.float32))
    x = x.reshape(b, h * w, c)

    w1g = jnp.transpose(params["ct1_w"], (0, 2, 3, 1)).reshape(c, 4 * c4)
    w1f = params["t_ws"] @ w1g
    b1f = params["t_bs"] @ w1g + jnp.tile(params["ct1_b"], 4)
    w2g = jnp.transpose(params["ct2_w"], (0, 2, 3, 1)).reshape(c4, 4 * c8)

    # ConvT1 + explicit spatial placement
    y1 = jnp.einsum("bpc,cd->bpd", x.astype(jnp.bfloat16), w1f.astype(jnp.bfloat16),
                    preferred_element_type=jnp.float32) + b1f
    y1 = y1.reshape(b, h, w, 2, 2, c4)
    up1 = jnp.transpose(y1, (0, 1, 3, 2, 4, 5)).reshape(b, 2 * h, 2 * w, c4)
    mu = up1.mean(-1, keepdims=True)
    var = ((up1 - mu) ** 2).mean(-1, keepdims=True)
    up1 = (up1 - mu) * jax.lax.rsqrt(var + eps) * params["ln_g"] + params["ln_b"]
    up1 = jax.nn.gelu(up1, approximate=True)

    # ConvT2 + explicit spatial placement
    y2 = jnp.einsum("bpc,cd->bpd",
                    up1.reshape(b, 4 * h * w, c4).astype(jnp.bfloat16),
                    w2g.astype(jnp.bfloat16),
                    preferred_element_type=jnp.float32) + jnp.tile(params["ct2_b"], 4)
    y2 = y2.reshape(b, 2 * h, 2 * w, 2, 2, c8)
    up2 = jnp.transpose(y2, (0, 1, 3, 2, 4, 5)).reshape(b, 4 * h, 4 * w, c8)
    up2 = jax.nn.gelu(up2, approximate=True)

    mask = jnp.einsum("bxyc,bc->bxy", up2, hyper)
    return mask[:, None]


# ----------------------------------------------------------------------------
# Deterministic parameter construction
# ----------------------------------------------------------------------------
def init_params(key, transformer_dim):
    C = transformer_dim
    c4, c8 = C // 4, C // 8
    ks = jax.random.split(key, 16)
    n = lambda k, shape, s=0.02: (s * jax.random.normal(k, shape)).astype(jnp.float32)
    params = {
        # output token embedding (output_nums = 1)
        "output_tokens": n(ks[0], (1, C)),
        # transformer stand-in (external dependency, see TODO at top)
        "t_wt": n(ks[1], (C, C)), "t_bt": jnp.zeros((C,), jnp.float32),
        "t_ws": n(ks[2], (C, C)), "t_bs": jnp.zeros((C,), jnp.float32),
        # output_upscaling: ConvTranspose2d(C, C//4, 2, 2)
        "ct1_w": n(ks[3], (C, c4, 2, 2)), "ct1_b": n(ks[4], (c4,)),
        # LayerNorm2d(C//4)
        "ln_g": jnp.ones((c4,), jnp.float32), "ln_b": jnp.zeros((c4,), jnp.float32),
        # ConvTranspose2d(C//4, C//8, 2, 2)
        "ct2_w": n(ks[5], (c4, c8, 2, 2)), "ct2_b": n(ks[6], (c8,)),
        # output_mlps[0]: MLP(C, C, C//8, 3)
        "mlp_w0": n(ks[7], (C, C)),  "mlp_b0": n(ks[8], (C,)),
        "mlp_w1": n(ks[9], (C, C)),  "mlp_b1": n(ks[10], (C,)),
        "mlp_w2": n(ks[11], (C, c8)), "mlp_b2": n(ks[12], (c8,)),
    }
    return params


# ----------------------------------------------------------------------------
if __name__ == "__main__":
    key = jax.random.PRNGKey(0)
    k_param, k_img, k_pe, k_sparse, k_dense = jax.random.split(key, 5)

    B = 2                 # batch (b1 == b2)
    C = 32                # transformer_dim
    H = W = 8             # embedding spatial size
    N = 4                 # sparse prompt token count

    params = init_params(k_param, C)

    image_embeddings = jax.random.normal(k_img, (B, C, H, W), jnp.float32)
    image_pe = jax.random.normal(k_pe, (1, C, H, W), jnp.float32)
    sparse_prompt_embeddings = jax.random.normal(k_sparse, (B, N, C), jnp.float32)
    dense_prompt_embeddings = jax.random.normal(k_dense, (B, C, H, W), jnp.float32)

    fwd = jax.jit(mask_decoder_forward)
    cls_mask = fwd(params, image_embeddings, image_pe,
                   sparse_prompt_embeddings, dense_prompt_embeddings)
    jax.block_until_ready(cls_mask)
    assert cls_mask.shape == (B, 1, 4 * H, 4 * W), cls_mask.shape
    assert bool(jnp.all(jnp.isfinite(cls_mask)))

    ref_mask = reference_forward(params, image_embeddings, image_pe,
                                 sparse_prompt_embeddings, dense_prompt_embeddings)
    err = float(jnp.max(jnp.abs(cls_mask - ref_mask)))
    assert err < 5e-4, f"kernel/reference mismatch: max abs err = {err}"
    print("KERNEL_OK")
</pallas_src>

<mosaic_0001>
module attributes {stable_mosaic.version = 11 : i64} {
  func.func @_fused_image_kernel(%arg0: i32, %arg1: i32, %arg2: memref<1x64x32xbf16, #tpu.memory_space<vmem>>, %arg3: memref<1x64x32xbf16, #tpu.memory_space<vmem>>, %arg4: memref<32x32xbf16, #tpu.memory_space<vmem>>, %arg5: memref<1x32xf32, #tpu.memory_space<vmem>>, %arg6: memref<1x8xf32, #tpu.memory_space<vmem>>, %arg7: memref<1x8xf32, #tpu.memory_space<vmem>>, %arg8: memref<32x64xbf16, #tpu.memory_space<vmem>>, %arg9: memref<1x64xf32, #tpu.memory_space<vmem>>, %arg10: memref<1x1x4xf32, #tpu.memory_space<vmem>>, %arg11: memref<1x16x64xf32, #tpu.memory_space<vmem>>) attributes {dimension_semantics = [#tpu.dimension_semantics<parallel>, #tpu.dimension_semantics<parallel>], iteration_bounds = array<i64: 1, 2>, scalar_prefetch = 0 : i64, scratch_operands = 0 : i64, tpu.core_type = #tpu.core_type<tc>, window_params = [{transform_indices = @transform_0, window_bounds = array<i64: 1, 64, 32>}, {transform_indices = @transform_1, window_bounds = array<i64: 1, 64, 32>}, {pipeline_mode = #tpu.pipeline_mode<synchronous>, transform_indices = @transform_2, window_bounds = array<i64: 32, 32>}, {pipeline_mode = #tpu.pipeline_mode<synchronous>, transform_indices = @transform_3, window_bounds = array<i64: 1, 32>}, {pipeline_mode = #tpu.pipeline_mode<synchronous>, transform_indices = @transform_4, window_bounds = array<i64: 1, 8>}, {pipeline_mode = #tpu.pipeline_mode<synchronous>, transform_indices = @transform_5, window_bounds = array<i64: 1, 8>}, {pipeline_mode = #tpu.pipeline_mode<synchronous>, transform_indices = @transform_6, window_bounds = array<i64: 32, 64>}, {pipeline_mode = #tpu.pipeline_mode<synchronous>, transform_indices = @transform_7, window_bounds = array<i64: 1, 64>}, {transform_indices = @transform_8, window_bounds = array<i64: 1, 1, 4>}, {transform_indices = @transform_9, window_bounds = array<i64: 1, 16, 64>}]} {
    %c0 = arith.constant 0 : index
    %c0_0 = arith.constant 0 : index
    %c0_1 = arith.constant 0 : index
    %0 = vector.load %arg2[%c0, %c0_0, %c0_1] : memref<1x64x32xbf16, #tpu.memory_space<vmem>>, vector<1x64x32xbf16>
    %1 = vector.shape_cast %0 : vector<1x64x32xbf16> to vector<64x32xbf16>
    %2 = arith.extf %1 : vector<64x32xbf16> to vector<64x32xf32>
    %c0_2 = arith.constant 0 : index
    %c0_3 = arith.constant 0 : index
    %c0_4 = arith.constant 0 : index
    %3 = vector.load %arg3[%c0_2, %c0_3, %c0_4] : memref<1x64x32xbf16, #tpu.memory_space<vmem>>, vector<1x64x32xbf16>
    %4 = vector.shape_cast %3 : vector<1x64x32xbf16> to vector<64x32xbf16>
    %5 = arith.extf %4 : vector<64x32xbf16> to vector<64x32xf32>
    %6 = arith.addf %2, %5 : vector<64x32xf32>
    %7 = arith.truncf %6 : vector<64x32xf32> to vector<64x32xbf16>
    %c0_5 = arith.constant 0 : index
    %c0_6 = arith.constant 0 : index
    %8 = vector.load %arg4[%c0_5, %c0_6] : memref<32x32xbf16, #tpu.memory_space<vmem>>, vector<32x32xbf16>
    %cst = arith.constant dense<0.000000e+00> : vector<64x32xf32>
    %9 = tpu.matmul %7, %8, %cst {dimension_numbers = #tpu.dot_dimension_numbers<[1], [0], [0], [1], [0, 0, 1, 1], [], []>} : vector<64x32xbf16>, vector<32x32xbf16>, vector<64x32xf32> -> vector<64x32xf32>
    %c0_7 = arith.constant 0 : index
    %c0_8 = arith.constant 0 : index
    %10 = vector.load %arg5[%c0_7, %c0_8] : memref<1x32xf32, #tpu.memory_space<vmem>>, vector<1x32xf32>
    %11 = vector.broadcast %10 : vector<1x32xf32> to vector<64x32xf32>
    %12 = arith.addf %9, %11 : vector<64x32xf32>
    %c0_9 = arith.constant 0 : index
    %c0_10 = arith.constant 0 : index
    %13 = vector.load %arg6[%c0_9, %c0_10] : memref<1x8xf32, #tpu.memory_space<vmem>>, vector<1x8xf32>
    %14 = vector.shape_cast %13 : vector<1x8xf32> to vector<1x8xf32>
    %15 = vector.broadcast %14 : vector<1x8xf32> to vector<64x8xf32>
    %c0_11 = arith.constant 0 : index
    %c0_12 = arith.constant 0 : index
    %16 = vector.load %arg7[%c0_11, %c0_12] : memref<1x8xf32, #tpu.memory_space<vmem>>, vector<1x8xf32>
    %17 = vector.shape_cast %16 : vector<1x8xf32> to vector<1x8xf32>
    %18 = vector.broadcast %17 : vector<1x8xf32> to vector<64x8xf32>
    %19 = vector.extract_strided_slice %12 {offsets = [0, 0], sizes = [64, 8], strides = [1, 1]} : vector<64x32xf32> to vector<64x8xf32>
    %cst_13 = arith.constant dense<0.000000e+00> : vector<64xf32>
    %20 = vector.multi_reduction <add>, %19, %cst_13 [1] : vector<64x8xf32> to vector<64xf32>
    %21 = vector.shape_cast %20 : vector<64xf32> to vector<64x1xf32>
    %cst_14 = arith.constant 8.000000e+00 : f32
    %22 = vector.broadcast %cst_14 : f32 to vector<64x1xf32>
    %23 = arith.divf %21, %22 : vector<64x1xf32>
    %24 = vector.broadcast %23 : vector<64x1xf32> to vector<64x8xf32>
    %25 = arith.subf %19, %24 : vector<64x8xf32>
    %26 = arith.mulf %25, %25 : vector<64x8xf32>
    %cst_15 = arith.constant dense<0.000000e+00> : vector<64xf32>
    %27 = vector.multi_reduction <add>, %26, %cst_15 [1] : vector<64x8xf32> to vector<64xf32>
    %28 = vector.shape_cast %27 : vector<64xf32> to vector<64x1xf32>
    %cst_16 = arith.constant 8.000000e+00 : f32
    %29 = vector.broadcast %cst_16 : f32 to vector<64x1xf32>
    %30 = arith.divf %28, %29 : vector<64x1xf32>
    %cst_17 = arith.constant 9.99999997E-7 : f32
    %31 = vector.broadcast %cst_17 : f32 to vector<64x1xf32>
    %32 = arith.addf %30, %31 : vector<64x1xf32>
    %33 = math.rsqrt %32 : vector<64x1xf32>
    %34 = vector.broadcast %33 : vector<64x1xf32> to vector<64x8xf32>
    %35 = arith.mulf %25, %34 : vector<64x8xf32>
    %36 = arith.mulf %35, %15 : vector<64x8xf32>
    %37 = arith.addf %36, %18 : vector<64x8xf32>
    %38 = arith.mulf %37, %37 : vector<64x8xf32>
    %39 = arith.mulf %37, %38 : vector<64x8xf32>
    %cst_18 = arith.constant 4.471500e-02 : f32
    %40 = vector.broadcast %cst_18 : f32 to vector<64x8xf32>
    %41 = arith.mulf %40, %39 : vector<64x8xf32>
    %42 = arith.addf %37, %41 : vector<64x8xf32>
    %cst_19 = arith.constant 0.797884583 : f32
    %43 = vector.broadcast %cst_19 : f32 to vector<64x8xf32>
    %44 = arith.mulf %43, %42 : vector<64x8xf32>
    %45 = math.tanh %44 : vector<64x8xf32>
    %cst_20 = arith.constant 1.000000e+00 : f32
    %46 = vector.broadcast %cst_20 : f32 to vector<64x8xf32>
    %47 = arith.addf %46, %45 : vector<64x8xf32>
    %cst_21 = arith.constant 5.000000e-01 : f32
    %48 = vector.broadcast %cst_21 : f32 to vector<64x8xf32>
    %49 = arith.mulf %48, %47 : vector<64x8xf32>
    %50 = arith.mulf %37, %49 : vector<64x8xf32>
    %51 = vector.extract_strided_slice %12 {offsets = [0, 8], sizes = [64, 8], strides = [1, 1]} : vector<64x32xf32> to vector<64x8xf32>
    %cst_22 = arith.constant dense<0.000000e+00> : vector<64xf32>
    %52 = vector.multi_reduction <add>, %51, %cst_22 [1] : vector<64x8xf32> to vector<64xf32>
    %53 = vector.shape_cast %52 : vector<64xf32> to vector<64x1xf32>
    %cst_23 = arith.constant 8.000000e+00 : f32
    %54 = vector.broadcast %cst_23 : f32 to vector<64x1xf32>
    %55 = arith.divf %53, %54 : vector<64x1xf32>
    %56 = vector.broadcast %55 : vector<64x1xf32> to vector<64x8xf32>
    %57 = arith.subf %51, %56 : vector<64x8xf32>
    %58 = arith.mulf %57, %57 : vector<64x8xf32>
    %cst_24 = arith.constant dense<0.000000e+00> : vector<64xf32>
    %59 = vector.multi_reduction <add>, %58, %cst_24 [1] : vector<64x8xf32> to vector<64xf32>
    %60 = vector.shape_cast %59 : vector<64xf32> to vector<64x1xf32>
    %cst_25 = arith.constant 8.000000e+00 : f32
    %61 = vector.broadcast %cst_25 : f32 to vector<64x1xf32>
    %62 = arith.divf %60, %61 : vector<64x1xf32>
    %cst_26 = arith.constant 9.99999997E-7 : f32
    %63 = vector.broadcast %cst_26 : f32 to vector<64x1xf32>
    %64 = arith.addf %62, %63 : vector<64x1xf32>
    %65 = math.rsqrt %64 : vector<64x1xf32>
    %66 = vector.broadcast %65 : vector<64x1xf32> to vector<64x8xf32>
    %67 = arith.mulf %57, %66 : vector<64x8xf32>
    %68 = arith.mulf %67, %15 : vector<64x8xf32>
    %69 = arith.addf %68, %18 : vector<64x8xf32>
    %70 = arith.mulf %69, %69 : vector<64x8xf32>
    %71 = arith.mulf %69, %70 : vector<64x8xf32>
    %cst_27 = arith.constant 4.471500e-02 : f32
    %72 = vector.broadcast %cst_27 : f32 to vector<64x8xf32>
    %73 = arith.mulf %72, %71 : vector<64x8xf32>
    %74 = arith.addf %69, %73 : vector<64x8xf32>
    %cst_28 = arith.constant 0.797884583 : f32
    %75 = vector.broadcast %cst_28 : f32 to vector<64x8xf32>
    %76 = arith.mulf %75, %74 : vector<64x8xf32>
    %77 = math.tanh %76 : vector<64x8xf32>
    %cst_29 = arith.constant 1.000000e+00 : f32
    %78 = vector.broadcast %cst_29 : f32 to vector<64x8xf32>
    %79 = arith.addf %78, %77 : vector<64x8xf32>
    %cst_30 = arith.constant 5.000000e-01 : f32
    %80 = vector.broadcast %cst_30 : f32 to vector<64x8xf32>
    %81 = arith.mulf %80, %79 : vector<64x8xf32>
    %82 = arith.mulf %69, %81 : vector<64x8xf32>
    %83 = vector.extract_strided_slice %12 {offsets = [0, 16], sizes = [64, 8], strides = [1, 1]} : vector<64x32xf32> to vector<64x8xf32>
    %cst_31 = arith.constant dense<0.000000e+00> : vector<64xf32>
    %84 = vector.multi_reduction <add>, %83, %cst_31 [1] : vector<64x8xf32> to vector<64xf32>
    %85 = vector.shape_cast %84 : vector<64xf32> to vector<64x1xf32>
    %cst_32 = arith.constant 8.000000e+00 : f32
    %86 = vector.broadcast %cst_32 : f32 to vector<64x1xf32>
    %87 = arith.divf %85, %86 : vector<64x1xf32>
    %88 = vector.broadcast %87 : vector<64x1xf32> to vector<64x8xf32>
    %89 = arith.subf %83, %88 : vector<64x8xf32>
    %90 = arith.mulf %89, %89 : vector<64x8xf32>
    %cst_33 = arith.constant dense<0.000000e+00> : vector<64xf32>
    %91 = vector.multi_reduction <add>, %90, %cst_33 [1] : vector<64x8xf32> to vector<64xf32>
    %92 = vector.shape_cast %91 : vector<64xf32> to vector<64x1xf32>
    %cst_34 = arith.constant 8.000000e+00 : f32
    %93 = vector.broadcast %cst_34 : f32 to vector<64x1xf32>
    %94 = arith.divf %92, %93 : vector<64x1xf32>
    %cst_35 = arith.constant 9.99999997E-7 : f32
    %95 = vector.broadcast %cst_35 : f32 to vector<64x1xf32>
    %96 = arith.addf %94, %95 : vector<64x1xf32>
    %97 = math.rsqrt %96 : vector<64x1xf32>
    %98 = vector.broadcast %97 : vector<64x1xf32> to vector<64x8xf32>
    %99 = arith.mulf %89, %98 : vector<64x8xf32>
    %100 = arith.mulf %99, %15 : vector<64x8xf32>
    %101 = arith.addf %100, %18 : vector<64x8xf32>
    %102 = arith.mulf %101, %101 : vector<64x8xf32>
    %103 = arith.mulf %101, %102 : vector<64x8xf32>
    %cst_36 = arith.constant 4.471500e-02 : f32
    %104 = vector.broadcast %cst_36 : f32 to vector<64x8xf32>
    %105 = arith.mulf %104, %103 : vector<64x8xf32>
    %106 = arith.addf %101, %105 : vector<64x8xf32>
    %cst_37 = arith.constant 0.797884583 : f32
    %107 = vector.broadcast %cst_37 : f32 to vector<64x8xf32>
    %108 = arith.mulf %107, %106 : vector<64x8xf32>
    %109 = math.tanh %108 : vector<64x8xf32>
    %cst_38 = arith.constant 1.000000e+00 : f32
    %110 = vector.broadcast %cst_38 : f32 to vector<64x8xf32>
    %111 = arith.addf %110, %109 : vector<64x8xf32>
    %cst_39 = arith.constant 5.000000e-01 : f32
    %112 = vector.broadcast %cst_39 : f32 to vector<64x8xf32>
    %113 = arith.mulf %112, %111 : vector<64x8xf32>
    %114 = arith.mulf %101, %113 : vector<64x8xf32>
    %115 = vector.extract_strided_slice %12 {offsets = [0, 24], sizes = [64, 8], strides = [1, 1]} : vector<64x32xf32> to vector<64x8xf32>
    %cst_40 = arith.constant dense<0.000000e+00> : vector<64xf32>
    %116 = vector.multi_reduction <add>, %115, %cst_40 [1] : vector<64x8xf32> to vector<64xf32>
    %117 = vector.shape_cast %116 : vector<64xf32> to vector<64x1xf32>
    %cst_41 = arith.constant 8.000000e+00 : f32
    %118 = vector.broadcast %cst_41 : f32 to vector<64x1xf32>
    %119 = arith.divf %117, %118 : vector<64x1xf32>
    %120 = vector.broadcast %119 : vector<64x1xf32> to vector<64x8xf32>
    %121 = arith.subf %115, %120 : vector<64x8xf32>
    %122 = arith.mulf %121, %121 : vector<64x8xf32>
    %cst_42 = arith.constant dense<0.000000e+00> : vector<64xf32>
    %123 = vector.multi_reduction <add>, %122, %cst_42 [1] : vector<64x8xf32> to vector<64xf32>
    %124 = vector.shape_cast %123 : vector<64xf32> to vector<64x1xf32>
    %cst_43 = arith.constant 8.000000e+00 : f32
    %125 = vector.broadcast %cst_43 : f32 to vector<64x1xf32>
    %126 = arith.divf %124, %125 : vector<64x1xf32>
    %cst_44 = arith.constant 9.99999997E-7 : f32
    %127 = vector.broadcast %cst_44 : f32 to vector<64x1xf32>
    %128 = arith.addf %126, %127 : vector<64x1xf32>
    %129 = math.rsqrt %128 : vector<64x1xf32>
    %130 = vector.broadcast %129 : vector<64x1xf32> to vector<64x8xf32>
    %131 = arith.mulf %121, %130 : vector<64x8xf32>
    %132 = arith.mulf %131, %15 : vector<64x8xf32>
    %133 = arith.addf %132, %18 : vector<64x8xf32>
    %134 = arith.mulf %133, %133 : vector<64x8xf32>
    %135 = arith.mulf %133, %134 : vector<64x8xf32>
    %cst_45 = arith.constant 4.471500e-02 : f32
    %136 = vector.broadcast %cst_45 : f32 to vector<64x8xf32>
    %137 = arith.mulf %136, %135 : vector<64x8xf32>
    %138 = arith.addf %133, %137 : vector<64x8xf32>
    %cst_46 = arith.constant 0.797884583 : f32
    %139 = vector.broadcast %cst_46 : f32 to vector<64x8xf32>
    %140 = arith.mulf %139, %138 : vector<64x8xf32>
    %141 = math.tanh %140 : vector<64x8xf32>
    %cst_47 = arith.constant 1.000000e+00 : f32
    %142 = vector.broadcast %cst_47 : f32 to vector<64x8xf32>
    %143 = arith.addf %142, %141 : vector<64x8xf32>
    %cst_48 = arith.constant 5.000000e-01 : f32
    %144 = vector.broadcast %cst_48 : f32 to vector<64x8xf32>
    %145 = arith.mulf %144, %143 : vector<64x8xf32>
    %146 = arith.mulf %133, %145 : vector<64x8xf32>
    %147 = tpu.concatenate %50, %82, %114, %146 in 1 : vector<64x8xf32>, vector<64x8xf32>, vector<64x8xf32>, vector<64x8xf32> -> vector<64x32xf32>
    %148 = arith.truncf %147 : vector<64x32xf32> to vector<64x32xbf16>
    %c0_49 = arith.constant 0 : index
    %c0_50 = arith.constant 0 : index
    %149 = vector.load %arg8[%c0_49, %c0_50] : memref<32x64xbf16, #tpu.memory_space<vmem>>, vector<32x64xbf16>
    %cst_51 = arith.constant dense<0.000000e+00> : vector<64x64xf32>
    %150 = tpu.matmul %148, %149, %cst_51 {dimension_numbers = #tpu.dot_dimension_numbers<[1], [0], [0], [1], [0, 0, 1, 1], [], []>} : vector<64x32xbf16>, vector<32x64xbf16>, vector<64x64xf32> -> vector<64x64xf32>
    %c0_52 = arith.constant 0 : index
    %c0_53 = arith.constant 0 : index
    %151 = vector.load %arg9[%c0_52, %c0_53] : memref<1x64xf32, #tpu.memory_space<vmem>>, vector<1x64xf32>
    %152 = vector.broadcast %151 : vector<1x64xf32> to vector<64x64xf32>
    %153 = arith.addf %150, %152 : vector<64x64xf32>
    %154 = arith.mulf %153, %153 : vector<64x64xf32>
    %155 = arith.mulf %153, %154 : vector<64x64xf32>
    %cst_54 = arith.constant 4.471500e-02 : f32
    %156 = vector.broadcast %cst_54 : f32 to vector<64x64xf32>
    %157 = arith.mulf %156, %155 : vector<64x64xf32>
    %158 = arith.addf %153, %157 : vector<64x64xf32>
    %cst_55 = arith.constant 0.797884583 : f32
    %159 = vector.broadcast %cst_55 : f32 to vector<64x64xf32>
    %160 = arith.mulf %159, %158 : vector<64x64xf32>
    %161 = math.tanh %160 : vector<64x64xf32>
    %cst_56 = arith.constant 1.000000e+00 : f32
    %162 = vector.broadcast %cst_56 : f32 to vector<64x64xf32>
    %163 = arith.addf %162, %161 : vector<64x64xf32>
    %cst_57 = arith.constant 5.000000e-01 : f32
    %164 = vector.broadcast %cst_57 : f32 to vector<64x64xf32>
    %165 = arith.mulf %164, %163 : vector<64x64xf32>
    %166 = arith.mulf %153, %165 : vector<64x64xf32>
    %c0_58 = arith.constant 0 : index
    %c0_59 = arith.constant 0 : index
    %c0_60 = arith.constant 0 : index
    %167 = vector.load %arg10[%c0_58, %c0_59, %c0_60] : memref<1x1x4xf32, #tpu.memory_space<vmem>>, vector<1x1x4xf32>
    %168 = vector.shape_cast %167 : vector<1x1x4xf32> to vector<1x4xf32>
    %169 = vector.shape_cast %168 : vector<1x4xf32> to vector<1x4xf32>
    %170 = vector.broadcast %169 : vector<1x4xf32> to vector<64x4xf32>
    %171 = vector.extract_strided_slice %166 {offsets = [0, 0], sizes = [64, 4], strides = [1, 1]} : vector<64x64xf32> to vector<64x4xf32>
    %172 = arith.mulf %171, %170 : vector<64x4xf32>
    %cst_61 = arith.constant dense<0.000000e+00> : vector<64xf32>
    %173 = vector.multi_reduction <add>, %172, %cst_61 [1] : vector<64x4xf32> to vector<64xf32>
    %174 = vector.shape_cast %173 : vector<64xf32> to vector<64x1xf32>
    %175 = vector.extract_strided_slice %166 {offsets = [0, 4], sizes = [64, 4], strides = [1, 1]} : vector<64x64xf32> to vector<64x4xf32>
    %176 = arith.mulf %175, %170 : vector<64x4xf32>
    %cst_62 = arith.constant dense<0.000000e+00> : vector<64xf32>
    %177 = vector.multi_reduction <add>, %176, %cst_62 [1] : vector<64x4xf32> to vector<64xf32>
    %178 = vector.shape_cast %177 : vector<64xf32> to vector<64x1xf32>
    %179 = vector.extract_strided_slice %166 {offsets = [0, 8], sizes = [64, 4], strides = [1, 1]} : vector<64x64xf32> to vector<64x4xf32>
    %180 = arith.mulf %179, %170 : vector<64x4xf32>
    %cst_63 = arith.constant dense<0.000000e+00> : vector<64xf32>
    %181 = vector.multi_reduction <add>, %180, %cst_63 [1] : vector<64x4xf32> to vector<64xf32>
    %182 = vector.shape_cast %181 : vector<64xf32> to vector<64x1xf32>
    %183 = vector.extract_strided_slice %166 {offsets = [0, 12], sizes = [64, 4], strides = [1, 1]} : vector<64x64xf32> to vector<64x4xf32>
    %184 = arith.mulf %183, %170 : vector<64x4xf32>
    %cst_64 = arith.constant dense<0.000000e+00> : vector<64xf32>
    %185 = vector.multi_reduction <add>, %184, %cst_64 [1] : vector<64x4xf32> to vector<64xf32>
    %186 = vector.shape_cast %185 : vector<64xf32> to vector<64x1xf32>
    %187 = vector.extract_strided_slice %166 {offsets = [0, 16], sizes = [64, 4], strides = [1, 1]} : vector<64x64xf32> to vector<64x4xf32>
    %188 = arith.mulf %187, %170 : vector<64x4xf32>
    %cst_65 = arith.constant dense<0.000000e+00> : vector<64xf32>
    %189 = vector.multi_reduction <add>, %188, %cst_65 [1] : vector<64x4xf32> to vector<64xf32>
    %190 = vector.shape_cast %189 : vector<64xf32> to vector<64x1xf32>
    %191 = vector.extract_strided_slice %166 {offsets = [0, 20], sizes = [64, 4], strides = [1, 1]} : vector<64x64xf32> to vector<64x4xf32>
    %192 = arith.mulf %191, %170 : vector<64x4xf32>
    %cst_66 = arith.constant dense<0.000000e+00> : vector<64xf32>
    %193 = vector.multi_reduction <add>, %192, %cst_66 [1] : vector<64x4xf32> to vector<64xf32>
    %194 = vector.shape_cast %193 : vector<64xf32> to vector<64x1xf32>
    %195 = vector.extract_strided_slice %166 {offsets = [0, 24], sizes = [64, 4], strides = [1, 1]} : vector<64x64xf32> to vector<64x4xf32>
    %196 = arith.mulf %195, %170 : vector<64x4xf32>
    %cst_67 = arith.constant dense<0.000000e+00> : vector<64xf32>
    %197 = vector.multi_reduction <add>, %196, %cst_67 [1] : vector<64x4xf32> to vector<64xf32>
    %198 = vector.shape_cast %197 : vector<64xf32> to vector<64x1xf32>
    %199 = vector.extract_strided_slice %166 {offsets = [0, 28], sizes = [64, 4], strides = [1, 1]} : vector<64x64xf32> to vector<64x4xf32>
    %200 = arith.mulf %199, %170 : vector<64x4xf32>
    %cst_68 = arith.constant dense<0.000000e+00> : vector<64xf32>
    %201 = vector.multi_reduction <add>, %200, %cst_68 [1] : vector<64x4xf32> to vector<64xf32>
    %202 = vector.shape_cast %201 : vector<64xf32> to vector<64x1xf32>
    %203 = vector.extract_strided_slice %166 {offsets = [0, 32], sizes = [64, 4], strides = [1, 1]} : vector<64x64xf32> to vector<64x4xf32>
    %204 = arith.mulf %203, %170 : vector<64x4xf32>
    %cst_69 = arith.constant dense<0.000000e+00> : vector<64xf32>
    %205 = vector.multi_reduction <add>, %204, %cst_69 [1] : vector<64x4xf32> to vector<64xf32>
    %206 = vector.shape_cast %205 : vector<64xf32> to vector<64x1xf32>
    %207 = vector.extract_strided_slice %166 {offsets = [0, 36], sizes = [64, 4], strides = [1, 1]} : vector<64x64xf32> to vector<64x4xf32>
    %208 = arith.mulf %207, %170 : vector<64x4xf32>
    %cst_70 = arith.constant dense<0.000000e+00> : vector<64xf32>
    %209 = vector.multi_reduction <add>, %208, %cst_70 [1] : vector<64x4xf32> to vector<64xf32>
    %210 = vector.shape_cast %209 : vector<64xf32> to vector<64x1xf32>
    %211 = vector.extract_strided_slice %166 {offsets = [0, 40], sizes = [64, 4], strides = [1, 1]} : vector<64x64xf32> to vector<64x4xf32>
    %212 = arith.mulf %211, %170 : vector<64x4xf32>
    %cst_71 = arith.constant dense<0.000000e+00> : vector<64xf32>
    %213 = vector.multi_reduction <add>, %212, %cst_71 [1] : vector<64x4xf32> to vector<64xf32>
    %214 = vector.shape_cast %213 : vector<64xf32> to vector<64x1xf32>
    %215 = vector.extract_strided_slice %166 {offsets = [0, 44], sizes = [64, 4], strides = [1, 1]} : vector<64x64xf32> to vector<64x4xf32>
    %216 = arith.mulf %215, %170 : vector<64x4xf32>
    %cst_72 = arith.constant dense<0.000000e+00> : vector<64xf32>
    %217 = vector.multi_reduction <add>, %216, %cst_72 [1] : vector<64x4xf32> to vector<64xf32>
    %218 = vector.shape_cast %217 : vector<64xf32> to vector<64x1xf32>
    %219 = vector.extract_strided_slice %166 {offsets = [0, 48], sizes = [64, 4], strides = [1, 1]} : vector<64x64xf32> to vector<64x4xf32>
    %220 = arith.mulf %219, %170 : vector<64x4xf32>
    %cst_73 = arith.constant dense<0.000000e+00> : vector<64xf32>
    %221 = vector.multi_reduction <add>, %220, %cst_73 [1] : vector<64x4xf32> to vector<64xf32>
    %222 = vector.shape_cast %221 : vector<64xf32> to vector<64x1xf32>
    %223 = vector.extract_strided_slice %166 {offsets = [0, 52], sizes = [64, 4], strides = [1, 1]} : vector<64x64xf32> to vector<64x4xf32>
    %224 = arith.mulf %223, %170 : vector<64x4xf32>
    %cst_74 = arith.constant dense<0.000000e+00> : vector<64xf32>
    %225 = vector.multi_reduction <add>, %224, %cst_74 [1] : vector<64x4xf32> to vector<64xf32>
    %226 = vector.shape_cast %225 : vector<64xf32> to vector<64x1xf32>
    %227 = vector.extract_strided_slice %166 {offsets = [0, 56], sizes = [64, 4], strides = [1, 1]} : vector<64x64xf32> to vector<64x4xf32>
    %228 = arith.mulf %227, %170 : vector<64x4xf32>
    %cst_75 = arith.constant dense<0.000000e+00> : vector<64xf32>
    %229 = vector.multi_reduction <add>, %228, %cst_75 [1] : vector<64x4xf32> to vector<64xf32>
    %230 = vector.shape_cast %229 : vector<64xf32> to vector<64x1xf32>
    %231 = vector.extract_strided_slice %166 {offsets = [0, 60], sizes = [64, 4], strides = [1, 1]} : vector<64x64xf32> to vector<64x4xf32>
    %232 = arith.mulf %231, %170 : vector<64x4xf32>
    %cst_76 = arith.constant dense<0.000000e+00> : vector<64xf32>
    %233 = vector.multi_reduction <add>, %232, %cst_76 [1] : vector<64x4xf32> to vector<64xf32>
    %234 = vector.shape_cast %233 : vector<64xf32> to vector<64x1xf32>
    %235 = tpu.concatenate %174, %178, %182, %186, %190, %194, %198, %202, %206, %210, %214, %218, %222, %226, %230, %234 in 1 : vector<64x1xf32>, vector<64x1xf32>, vector<64x1xf32>, vector<64x1xf32>, vector<64x1xf32>, vector<64x1xf32>, vector<64x1xf32>, vector<64x1xf32>, vector<64x1xf32>, vector<64x1xf32>, vector<64x1xf32>, vector<64x1xf32>, vector<64x1xf32>, vector<64x1xf32>, vector<64x1xf32>, vector<64x1xf32> -> vector<64x16xf32>
    %236 = tpu.transpose %235, [1, 0] : vector<64x16xf32> -> vector<16x64xf32>
    %c0_77 = arith.constant 0 : index
    %c0_78 = arith.constant 0 : index
    %c0_79 = arith.constant 0 : index
    %237 = vector.load %arg11[%c0_77, %c0_78, %c0_79] : memref<1x16x64xf32, #tpu.memory_space<vmem>>, vector<1x16x64xf32>
    %238 = vector.shape_cast %237 : vector<1x16x64xf32> to vector<16x64xf32>
    %239 = vector.shape_cast %236 : vector<16x64xf32> to vector<1x16x64xf32>
    tpu.vector_store %arg11[%c0_77, %c0_78, %c0_79], %239 {strides = array<i32>} : memref<1x16x64xf32, #tpu.memory_space<vmem>>, vector<1x16x64xf32>,
    return
  }
  func.func @transform_0(%arg0: i32, %arg1: i32) -> (i32, i32, i32) {
    %c0_i32 = arith.constant 0 : i32
    %c0_i32_0 = arith.constant 0 : i32
    return %arg1, %arg0, %c0_i32 : i32, i32, i32
  }
  func.func @transform_1(%arg0: i32, %arg1: i32) -> (i32, i32, i32) {
    %c0_i32 = arith.constant 0 : i32
    %c0_i32_0 = arith.constant 0 : i32
    %c0_i32_1 = arith.constant 0 : i32
    return %c0_i32, %arg0, %c0_i32_0 : i32, i32, i32
  }
  func.func @transform_2(%arg0: i32, %arg1: i32) -> (i32, i32) {
    %c0_i32 = arith.constant 0 : i32
    %c0_i32_0 = arith.constant 0 : i32
    %c0_i32_1 = arith.constant 0 : i32
    return %c0_i32, %c0_i32_0 : i32, i32
  }
  func.func @transform_3(%arg0: i32, %arg1: i32) -> (i32, i32) {
    %c0_i32 = arith.constant 0 : i32
    %c0_i32_0 = arith.constant 0 : i32
    %c0_i32_1 = arith.constant 0 : i32
    return %c0_i32, %c0_i32_0 : i32, i32
  }
  func.func @transform_4(%arg0: i32, %arg1: i32) -> (i32, i32) {
    %c0_i32 = arith.constant 0 : i32
    %c0_i32_0 = arith.constant 0 : i32
    %c0_i32_1 = arith.constant 0 : i32
    return %c0_i32, %c0_i32_0 : i32, i32
  }
  func.func @transform_5(%arg0: i32, %arg1: i32) -> (i32, i32) {
    %c0_i32 = arith.constant 0 : i32
    %c0_i32_0 = arith.constant 0 : i32
    %c0_i32_1 = arith.constant 0 : i32
    return %c0_i32, %c0_i32_0 : i32, i32
  }
  func.func @transform_6(%arg0: i32, %arg1: i32) -> (i32, i32) {
    %c0_i32 = arith.constant 0 : i32
    %c0_i32_0 = arith.constant 0 : i32
    %c0_i32_1 = arith.constant 0 : i32
    return %c0_i32, %c0_i32_0 : i32, i32
  }
  func.func @transform_7(%arg0: i32, %arg1: i32) -> (i32, i32) {
    %c0_i32 = arith.constant 0 : i32
    %c0_i32_0 = arith.constant 0 : i32
    %c0_i32_1 = arith.constant 0 : i32
    return %c0_i32, %c0_i32_0 : i32, i32
  }
  func.func @transform_8(%arg0: i32, %arg1: i32) -> (i32, i32, i32) {
    %c0_i32 = arith.constant 0 : i32
    %c0_i32_0 = arith.constant 0 : i32
    %c0_i32_1 = arith.constant 0 : i32
    return %arg1, %c0_i32, %c0_i32_0 : i32, i32, i32
  }
  func.func @transform_9(%arg0: i32, %arg1: i32) -> (i32, i32, i32) {
    %c0_i32 = arith.constant 0 : i32
    %c0_i32_0 = arith.constant 0 : i32
    return %arg1, %c0_i32, %arg0 : i32, i32, i32
  }
}

</mosaic_0001>

<bundles_post_ra>
// kernel: tile.13
= control target key start
LH: loop header
LB: loop body
LE: loop exit
PB: predicated region body
PF: predicated region fallthrough
CT: control target
= control target key end

     0   :  { %s22_s0 = inlined_call_operand.vmem [shape: f32[8], index: 0, kind: input, shape index: {}]   ;;  %s23_s1 = inlined_call_operand.vmem [shape: f32[4,8], index: 1, kind: output, shape index: {}]  }
   0x1   :  { %v4_v0 = vld [vmem:[%s22_s0] ss:$0 sm:$0xff] }
   0x2   :  { %5 = vst [vmem:[%s23_s1] sm:$0xf] %v4_v0 }

// kernel: tile.18
= control target key start
LH: loop header
LB: loop body
LE: loop exit
PB: predicated region body
PF: predicated region fallthrough
CT: control target
= control target key end

     0   :  { %s28_s0 = inlined_call_operand.vmem [shape: f32[4], index: 0, kind: input, shape index: {}]   ;;  %s29_s1 = inlined_call_operand.vmem [shape: f32[16,4], index: 1, kind: output, shape index: {}]  }
   0x1   :  { %v4_v0 = vld [vmem:[%s28_s0] ss:$0 sm:$0xff] }
   0x2   :  { %5 = vst [vmem:[%s29_s1] sm:$0xff] %v4_v0 }
   0x3   :  { %8 = vst [vmem:[%s29_s1 + $0x8] sm:$0xff] %v4_v0 }

// kernel: tile.19
= control target key start
LH: loop header
LB: loop body
LE: loop exit
PB: predicated region body
PF: predicated region fallthrough
CT: control target
= control target key end

     0   :  { %s131_s10 = smov 60   ;;  %s132_s11 = smov 52   ;;  %vm3_vm0 = vcmask 31744   ;;  %vm9_vm1 = vcmask 523744   ;;  %vm15_vm2 = vcmask 490944   ;;  %vm21_vm3 = vcmask 458144   ;;  %s207_s0 = inlined_call_operand.vmem [shape: f32[16,4], index: 0, kind: input, shape index: {}]   ;;  %s208_s1 = inlined_call_operand.vmem [shape: f32[1,64], index: 1, kind: output, shape index: {}]  }
   0x1   :  { %v101_v0 = vld [vmem:[%s207_s0 + $0xf] sm:$0x1]   ;;  %v103_v1 = vld [vmem:[%s207_s0 + $0xd] sm:$0x1]   ;;  %v105_v2 = vld [vmem:[%s207_s0 + $0xb] sm:$0x1]  }
   0x2   :  { %7 = vrot.lane.b32.xlu0 %v101_v0, %s131_s10  ;;  %19 = vrot.lane.b32.xlu1 %v103_v1, %s132_s11  ;;  %s133_s14 = smov 44   ;;  %v102_v3 = vld [vmem:[%s207_s0 + $0xe] sm:$0x1]   ;;  %v104_v4 = vld [vmem:[%s207_s0 + $0xc] sm:$0x1]   ;;  %s134_s19 = smov 56  }
   0x3   :  { %31 = vrot.lane.b32.xlu2 %v105_v2, %s133_s14  ;;  %s135_s20 = smov 48   ;;  %v106_v5 = vld [vmem:[%s207_s0 + $0xa] sm:$0x1]   ;;  %s136_s23 = smov 40   ;;  %v107_v6 = vld [vmem:[%s207_s0 + $0x9] sm:$0x1]  }
   0x4   :  { %v108_v7 = vld [vmem:[%s207_s0 + $0x8] sm:$0x1]   ;;  %s137_s28 = smov 36   ;;  %s138_s29 = smov 32   ;;  %v109_v8 = vld [vmem:[%s207_s0 + $0x7] sm:$0x1]  }
   0x5   :  { %s139_s3 = smov 28   ;;  %v110_v9 = vld [vmem:[%s207_s0 + $0x6] sm:$0x1]   ;;  %v111_v10 = vld [vmem:[%s207_s0 + $0x5] sm:$0x1]   ;;  %s140_s8 = smov 24  }
   0x6   :  { %s141_s9 = smov 20   ;;  %v112_v11 = vld [vmem:[%s207_s0 + $0x4] sm:$0x1]   ;;  %s142_s12 = smov 16   ;;  %v113_v12 = vld [vmem:[%s207_s0 + $0x3] sm:$0x1]  }
   0x7   :  { %v114_v13 = vld [vmem:[%s207_s0 + $0x2] sm:$0x1]   ;;  %s143_s17 = smov 12   ;;  %s144_s18 = smov 8   ;;  %v115_v14 = vld [vmem:[%s207_s0 + $0x1] sm:$0x1]  }
   0x8   :  { %s145_s21 = smov 4   ;;  %v2_v15 = vld [vmem:[%s207_s0] sm:$0x1]   ;;  %vm27_vm4 = vcmask 425344   ;;  %vm33_vm5 = vcmask 392544   ;;  %vm39_vm6 = vcmask 359744  }
   0x9   :  { %4 = vst.msk [vmem:[#allocation0] sm:$0x1] %vm3_vm0, %v2_v15   ;;  %vm45_vm7 = vcmask 326944   ;;  %vm51_vm8 = vcmask 294144   ;;  %vm57_vm9 = vcmask 261344   ;;  %vm63_vm10 = vcmask 228544  }
   0xa   :  { %13 = vrot.lane.b32.xlu0 %v102_v3, %s134_s19  ;;  %25 = vrot.lane.b32.xlu1 %v104_v4, %s135_s20  ;;  %vm69_vm11 = vcmask 195744   ;;  %vm75_vm12 = vcmask 162944   ;;  %vm81_vm13 = vcmask 130144   ;;  %vm87_vm14 = vcmask 97344  }
   0xb   :  { %37 = vrot.lane.b32.xlu2 %v106_v5, %s136_s23  ;;  %vm93_vm15 = vcmask 64544  }
  0x12   :  { %43 = vrot.lane.b32.xlu0 %v107_v6, %s137_s28  ;;  %49 = vrot.lane.b32.xlu1 %v108_v7, %s138_s29 }
  0x13   :  { %55 = vrot.lane.b32.xlu2 %v109_v8, %s139_s3 }
  0x1a   :  { %61 = vrot.lane.b32.xlu0 %v110_v9, %s140_s8  ;;  %67 = vrot.lane.b32.xlu1 %v111_v10, %s141_s9 }
  0x1b   :  { %73 = vrot.lane.b32.xlu2 %v112_v11, %s142_s12 }
  0x22   :  { %79 = vrot.lane.b32.xlu0 %v113_v12, %s143_s17  ;;  %85 = vrot.lane.b32.xlu1 %v114_v13, %s144_s18 }
  0x23   :  { %91 = vrot.lane.b32.xlu2 %v115_v14, %s145_s21 }
  0x5d   :  { %v32_v16 = vpop.permute.xlu2 %31  }
  0x65   :  { %v38_v17 = vpop.permute.xlu2 %37  }
  0x6d   :  { %v56_v18 = vpop.permute.xlu2 %55  }
  0x74   :  { %v8_v19 = vpop.permute.xlu0 %7   ;;  %v20_v20 = vpop.permute.xlu1 %19  }
  0x75   :  { %10 = vst.msk [vmem:[#allocation0] sm:$0x1] %vm9_vm1, %v8_v19   ;;  %v74_v21 = vpop.permute.xlu2 %73  }
  0x7c   :  { %v14_v22 = vpop.permute.xlu0 %13   ;;  %v26_v23 = vpop.permute.xlu1 %25  }
  0x7d   :  { %16 = vst.msk [vmem:[#allocation0] sm:$0x1] %vm15_vm2, %v14_v22   ;;  %v92_v24 = vpop.permute.xlu2 %91  }
  0x7e   :  { %22 = vst.msk [vmem:[#allocation0] sm:$0x1] %vm21_vm3, %v20_v20  }
  0x7f   :  { %28 = vst.msk [vmem:[#allocation0] sm:$0x1] %vm27_vm4, %v26_v23  }
  0x80   :  { %34 = vst.msk [vmem:[#allocation0] sm:$0x1] %vm33_vm5, %v32_v16  }
  0x81   :  { %40 = vst.msk [vmem:[#allocation0] sm:$0x1] %vm39_vm6, %v38_v17  }
  0x84   :  { %v44_v25 = vpop.permute.xlu0 %43   ;;  %v50_v26 = vpop.permute.xlu1 %49  }
  0x85   :  { %46 = vst.msk [vmem:[#allocation0] sm:$0x1] %vm45_vm7, %v44_v25  }
  0x86   :  { %52 = vst.msk [vmem:[#allocation0] sm:$0x1] %vm51_vm8, %v50_v26  }
  0x87   :  { %58 = vst.msk [vmem:[#allocation0] sm:$0x1] %vm57_vm9, %v56_v18  }
  0x8c   :  { %v62_v27 = vpop.permute.xlu0 %61   ;;  %v68_v28 = vpop.permute.xlu1 %67  }
  0x8d   :  { %64 = vst.msk [vmem:[#allocation0] sm:$0x1] %vm63_vm10, %v62_v27  }
  0x8e   :  { %70 = vst.msk [vmem:[#allocation0] sm:$0x1] %vm69_vm11, %v68_v28  }
  0x8f   :  { %76 = vst.msk [vmem:[#allocation0] sm:$0x1] %vm75_vm12, %v74_v21  }
  0x94   :  { %v80_v29 = vpop.permute.xlu0 %79   ;;  %v86_v30 = vpop.permute.xlu1 %85  }
  0x95   :  { %82 = vst.msk [vmem:[#allocation0] sm:$0x1] %vm81_vm13, %v80_v29  }
  0x96   :  { %88 = vst.msk [vmem:[#allocation0] sm:$0x1] %vm87_vm14, %v86_v30  }
  0x97   :  { %94 = vst.msk [vmem:[#allocation0] sm:$0x1] %vm93_vm15, %v92_v24  }
  0x9e   :  { %v97_v31 = vld [vmem:[#allocation0] sm:$0x1] }
  0x9f   :  { %100 = vst [vmem:[%s208_s1] sm:$0x1] %v97_v31 }

// kernel: mask_decoder_forward.1
= control target key start
LH: loop header
LB: loop body
LE: loop exit
PB: predicated region body
PF: predicated region fallthrough
CT: control target
= control target key end

     0   :  { %s3659_s30 = smov 0   ;;  %s3661_s10 = smov 0   ;;  %s5950_s0 = inlined_call_operand.vmem [shape: bf16[2,64,32], index: 0, kind: input, shape index: {}]   ;;  %s5951_s1 = inlined_call_operand.vmem [shape: bf16[1,64,32], index: 1, kind: input, shape index: {}]   ;;  %s5952_s2 = inlined_call_operand.vmem [shape: bf16[32,32], index: 2, kind: input, shape index: {}]   ;;  %s5953_s3 = inlined_call_operand.vmem [shape: f32[1,32], index: 3, kind: input, shape index: {}]   ;;  %s5954_s4 = inlined_call_operand.vmem [shape: f32[1,8], index: 4, kind: input, shape index: {}]   ;;  %s5955_s5 = inlined_call_operand.vmem [shape: f32[1,8], index: 5, kind: input, shape index: {}]   ;;  %s5956_s6 = inlined_call_operand.vmem [shape: bf16[32,64], index: 6, kind: input, shape index: {}]   ;;  %s5957_s7 = inlined_call_operand.vmem [shape: f32[1,64], index: 7, kind: input, shape index: {}]   ;;  %s5958_s8 = inlined_call_operand.vmem [shape: f32[2,1,4], index: 8, kind: input, shape index: {}]   ;;  %s5959_s9 = inlined_call_operand.vmem [shape: f32[2,16,64], index: 9, kind: output, shape index: {}]  }
   0x1   :  { %s3663_s11 = smov 0  }
   0x2 LB: > { %s28_s12 = sadd.s32 1, %s3572_s10  ;;  %p3264_p0 = scmp.ge.s32.totalorder %s3576_s11, 1  ;;  %s3576_s11 = sphi %s3663_s11, %s19_s11   ;;  %s3572_s10 = sphi %s3661_s10, %s6102_s10   ;;  %s3568_s30 = sphi %s3659_s30, %s6101_s30  }
   0x3   : > { %p29_p1 = scmp.ge.s32.totalorder %s28_s12, 2  ;;  %p327_p2 = scmp.lt.s32.totalorder %s3576_s11, 3 }
   0x5   : > { %s6104_s12 = smov (%p29_p1, %s28_s12), 0  ;;  %p328_p3 = pnand %p3264_p0, %p327_p2 }
   0x7   : > { %331 = sbr.rel (%p328_p3) target bundleno = 4617 (0x1209), region = 56 }
   0xc   : > { %v3298_v0 = vld [vmem:[%s5952_s2 + $0x8] sm:$0xff]  ;;  %p379_p4 = scmp.lt.s32.totalorder %s3568_s30, 1  ;;  %v3297_v1 = vld [vmem:[%s5952_s2] sm:$0xff]  ;;  %v3337_v3 = vld [vmem:[%s5951_s1 + $0x10] sm:$0xff]   ;;  %s3578_s29 = smov 8   ;;  %vm470_vm0 = vcmask 261120  }
   0xd   : > { %v3318_v2 = vld [vmem:[%s5951_s1] sm:$0xff]   ;;  %489 = vmatpush.bf16.msra.mxu0 %v3298_v0  ;;  %3339 = vmatpush.bf16.msra.mxu2 %v3298_v0  ;;  %v3327_v8 = vunpack.c.l.bf16 %v3337_v3  ;;  %v3328_v9 = vunpack.c.h.bf16 %v3337_v3  ;;  %s3579_s16 = smov 16   ;;  %v3336_v22 = vld [vmem:[%s5951_s1 + $0x8] sm:$0xff]   ;;  %v3338_v23 = vld [vmem:[%s5951_s1 + $0x18] sm:$0xff]   ;;  %s3580_s23 = smov 112   ;;  %vm520_vm1 = vcmask 64512  }
   0xe   : > { %s6106_s30 = smov (!%p379_p4, %s3568_s30), 1  ;;  %v3400_v4 = vld [vmem:[%s5955_s5] ss:$0 sm:$0xff]  ;;  %v3319_v6 = vunpack.c.l.bf16 %v3318_v2  ;;  %v3320_v7 = vunpack.c.h.bf16 %v3318_v2  ;;  %v3323_v26 = vunpack.c.l.bf16 %v3336_v22  ;;  %v3324_v27 = vunpack.c.h.bf16 %v3336_v22  ;;  %s3581_s24 = smov 120  }
   0xf   : > { %v3697_v5 = vld [vmem:[%s5954_s4] ss:$0 sm:$0xff]  ;;  %s3295_s25 = sshll.u32 %s6106_s30, 5  ;;  %s3704_s28 = scalar_lea.vmem %s5958_s8, %s6106_s30  ;;  %1043 = vrot.lane.b32.xlu2 %v3400_v4, %s3578_s29  ;;  %v3331_v28 = vunpack.c.l.bf16 %v3338_v23  ;;  %v3332_v29 = vunpack.c.h.bf16 %v3338_v23  ;;  %v3583_v63 = vmov 8.0  }
  0x10   : > { %s386_s15 = scalar_lea.vmem %s5950_s0, %s3295_s25  ;;  %1032 = vrot.lane.b32.xlu1 %v3697_v5, %s3578_s29  ;;  %v3402_v40 = vld [vmem:[%s5953_s3] ss:$0 sm:$0xff]  ;;  %s3582_s25 = smov 104   ;;  %3404 = vrcp.f32 %v3583_v63 }
  0x11   : > { %490 = vmatpush.bf16.msra.mxu0 %v3297_v1  ;;  %3340 = vmatpush.bf16.msra.mxu2 %v3297_v1  ;;  %v3302_v10 = vld [vmem:[%s386_s15] sm:$0xff]   ;;  %v3334_v11 = vld [vmem:[%s386_s15 + $0x10] sm:$0xff]   ;;  %v3333_v24 = vld [vmem:[%s386_s15 + $0x8] sm:$0xff]   ;;  %s3584_s26 = smov 24   ;;  %s3586_s17 = smov 12  }
  0x12   : > { %v3303_v12 = vunpack.c.l.bf16 %v3302_v10  ;;  %v3304_v13 = vunpack.c.h.bf16 %v3302_v10  ;;  %v3311_v14 = vunpack.c.l.bf16 %v3334_v11  ;;  %v3312_v15 = vunpack.c.h.bf16 %v3334_v11  ;;  %v3335_v25 = vld [vmem:[%s386_s15 + $0x18] sm:$0xff]   ;;  %s3585_s15 = smov 4   ;;  %s3587_s27 = smov 124  }
  0x13   : > { %v3307_v30 = vunpack.c.l.bf16 %v3333_v24  ;;  %v3308_v31 = vunpack.c.h.bf16 %v3333_v24  ;;  %v3315_v32 = vunpack.c.l.bf16 %v3335_v25  ;;  %v3316_v33 = vunpack.c.h.bf16 %v3335_v25  ;;  %s3593_s13 = smov 32   ;;  %s3594_s14 = smov 96  }
  0x14   : > { %v438_v16 = vadd.f32 %v3319_v6, %v3303_v12  ;;  %v439_v17 = vadd.f32 %v3320_v7, %v3304_v13  ;;  %v442_v18 = vadd.f32 %v3327_v8, %v3311_v14  ;;  %v443_v19 = vadd.f32 %v3328_v9, %v3312_v15  ;;  %s3599_s18 = smov 44   ;;  %s3600_s19 = smov 84  }
  0x15   : > { %v440_v34 = vadd.f32 %v3323_v26, %v3307_v30  ;;  %v441_v35 = vadd.f32 %v3324_v27, %v3308_v31  ;;  %v444_v36 = vadd.f32 %v3331_v28, %v3315_v32  ;;  %v445_v37 = vadd.f32 %v3332_v29, %v3316_v33  ;;  %s3601_s20 = smov 48   ;;  %s3602_s21 = smov 80  }
  0x16   : > { %v446_v20 = vpack.c.bf16 %v439_v17, %v438_v16  ;;  %v448_v21 = vpack.c.bf16 %v443_v19, %v442_v18  ;;  %v3405_v1 = vpop.eup %3404  ;;  %s3603_s22 = smov 52  }
  0x17   : > { %1369 = vrot.lane.b32.xlu2 %v3400_v4, %s3579_s16  ;;  %v447_v38 = vpack.c.bf16 %v441_v35, %v440_v34  ;;  %v449_v39 = vpack.c.bf16 %v445_v37, %v444_v36  ;;  %v546_v4 = vmul.f32 8.0, %v3405_v1  ;;  %vm550_vm2 = vweird.f32 %v3405_v1 }
  0x18   : > { %3277 = vmatmul.msk.bf16.vlgmr.msra.gmra.mxu0 %vm470_vm0, %v446_v20  ;;  %3279 = vmatmul.msk.bf16.vlgmr.msra.gmra.mxu2 %vm470_vm0, %v448_v21 }
  0x19   : > { %1358 = vrot.lane.b32.xlu1 %v3697_v5, %s3579_s16  ;;  %v547_v8 = vsub.f32 1.0, %v546_v4 }
  0x1b   : > { %v548_v10 = vmul.f32 %v3405_v1, %v547_v8 }
  0x1d   : > { %v549_v12 = vadd.f32 %v3405_v1, %v548_v10 }
  0x1f   : > { %v3813_v16 = vsel %vm550_vm2, %v3405_v1, %v549_v12 }
  0x28   : > { %3278 = vmatmul.msk.bf16.gmra.mxu0 %vm470_vm0, %v447_v38  ;;  %3280 = vmatmul.msk.bf16.gmra.mxu2 %vm470_vm0, %v449_v39 }
  0x69   : > { %v3804_v7 = vpop.permute.xlu2 %1043 }
  0x71   : > { %v3811_v14 = vpop.permute.xlu2 %1369 }
  0x82   : > { %v3790_v61 = vpop.permute.xlu1 %1032 }
  0x8b   : > { %v3794_v62 = vpop.permute.xlu1 %1358 }
  0x95   : > { %v492_v41 = vpop.f32.mrf.mxu0 }
  0x96   : > { %v3728_v42 = vadd.f32 %v3402_v40, %v492_v41 }
  0x98   : > { %1126 = vrot.lane.b32.xlu0 %v3728_v42, %s3580_s23  ;;  %800 = vrot.lane.b32.xlu1 %v3728_v42, %s3581_s24  ;;  %v521_v50 = vsel %vm520_vm1, %v3728_v42, 0.0 }
  0x9b   : > { %v502_v43 = vpop.f32.mrf.mxu2 }
  0x9c   : > { %v3734_v44 = vadd.f32 %v3402_v40, %v502_v43 }
  0x9d   : > { %v494_v46 = vpop.f32.mrf.mxu0 }
  0x9e   : > { %v533_v45 = vsel %vm520_vm1, %v3734_v44, 0.0  ;;  %v3744_v47 = vadd.f32 %v3402_v40, %v494_v46 }
  0x9f   : > { %534 = vadd.xlane.f32.xlu2 %v533_v45 }
  0xa0   : > { %1452 = vrot.lane.b32.xlu0 %v3728_v42, %s3582_s25  ;;  %808 = vrot.lane.b32.xlu1 %v3734_v44, %s3581_s24  ;;  %v524_v59 = vsel %vm520_vm1, %v3744_v47, 0.0 }
  0xa3   : > { %v504_v48 = vpop.f32.mrf.mxu2 }
  0xa4   : > { %v3750_v49 = vadd.f32 %v3402_v40, %v504_v48 }
  0xa5   : > { %v497_v51 = vpop.f32.mrf.mxu0 }
  0xa6   : > { %v3756_v52 = vadd.f32 %v3402_v40, %v497_v51  ;;  %v536_v54 = vsel %vm520_vm1, %v3750_v49, 0.0 }
  0xa8   : > { %1134 = vrot.lane.b32.xlu1 %v3734_v44, %s3580_s23  ;;  %v527_v53 = vsel %vm520_vm1, %v3756_v52, 0.0 }
  0xab   : > { %v507_v55 = vpop.f32.mrf.mxu2 }
  0xac   : > { %v3766_v56 = vadd.f32 %v3402_v40, %v507_v55 }
  0xad   : > { %v499_v57 = vpop.f32.mrf.mxu0 }
  0xae   : > { %v3770_v58 = vadd.f32 %v3402_v40, %v499_v57  ;;  %v539_v27 = vsel %vm520_vm1, %v3766_v56, 0.0 }
  0xb0   : > { %1128 = vrot.lane.b32.xlu1 %v3744_v47, %s3580_s23  ;;  %v530_v60 = vsel %vm520_vm1, %v3770_v58, 0.0 }
  0xb3   : > { %v509_v2 = vpop.f32.mrf.mxu2 }
  0xb4   : > { %v3798_v6 = vadd.f32 %v3402_v40, %v509_v2 }
  0xb6   : > { %v542_v29 = vsel %vm520_vm1, %v3798_v6, 0.0 }
  0xb7   : > { %802 = vrot.lane.b32.xlu2 %v3744_v47, %s3581_s24 }
  0xbf   : > { %1462 = vrot.lane.b32.xlu2 %v3750_v49, %s3582_s25 }
  0xca   : > { %522 = vadd.xlane.f32.xlu0 %v521_v50 }
  0xda   : > { %528 = vadd.xlane.f32.xlu1 %v527_v53 }
  0xde   : > { %1460 = vrot.lane.b32.xlu0 %v3734_v44, %s3582_s25 }
  0xe6   : > { %1454 = vrot.lane.b32.xlu0 %v3744_v47, %s3582_s25 }
  0xe8   : > { %537 = vadd.xlane.f32.xlu2 %v536_v54 }
  0xf3   : > { %1464 = vrot.lane.b32.xlu1 %v3766_v56, %s3582_s25 }
  0xfb   : > { %1458 = vrot.lane.b32.xlu1 %v3770_v58, %s3582_s25 }
 0x100   : > { %1456 = vrot.lane.b32.xlu2 %v3756_v52, %s3582_s25 }
 0x108   : > { %812 = vrot.lane.b32.xlu2 %v3766_v56, %s3581_s24 }
 0x10a   : > { %v1127_v0 = vpop.permute.xlu0 %1126  ;;  %v801_v3 = vpop.permute.xlu1 %800 }
 0x10b   : > { %v824_v38 = vsel %vm520_vm1, %v801_v3, 0.0  ;;  %v1150_v48 = vsel %vm520_vm1, %v1127_v0, 0.0 }
 0x110   : > { %1138 = vrot.lane.b32.xlu2 %v3766_v56, %s3580_s23  ;;  %525 = vadd.xlane.f32.xlu0 %v524_v59 }
 0x112   : > { %v3806_v9 = vpop.permute.xlu0 %1452  ;;  %v809_v11 = vpop.permute.xlu1 %808 }
 0x113   : > { %v836_v13 = vsel %vm520_vm1, %v809_v11, 0.0  ;;  %v535_v21 = vpop.xlane.xlu2 %534 }
 0x114   : > { %v556_v41 = vmul.f32 %v3813_v16, %v535_v21 }
 0x116   : > { %v3839_v45 = vsub.f32 %v3734_v44, %v556_v41 }
 0x118   : > { %806 = vrot.lane.b32.xlu2 %v3770_v58, %s3581_s24  ;;  %v572_v57 = vmul.f32 %v3839_v45, %v3839_v45 }
 0x11a   : > { %v1135_v18 = vpop.permute.xlu1 %1134  ;;  %v588_v0 = vsel %vm520_vm1, %v572_v57, 0.0 }
 0x11b   : > { %v1162_v20 = vsel %vm520_vm1, %v1135_v18, 0.0  ;;  %v803_v24 = vpop.permute.xlu2 %802 }
 0x11c   : > { %v827_v25 = vsel %vm520_vm1, %v803_v24, 0.0 }
 0x120   : > { %1132 = vrot.lane.b32.xlu2 %v3770_v58, %s3580_s23 }
 0x122   : > { %v1129_v26 = vpop.permute.xlu1 %1128 }
 0x123   : > { %v1153_v28 = vsel %vm520_vm1, %v1129_v26, 0.0  ;;  %v3832_v35 = vpop.permute.xlu2 %1462 }
 0x124   : > { %810 = vrot.lane.b32.xlu0 %v3750_v49, %s3581_s24 }
 0x125   : > { %531 = vadd.xlane.f32.xlu1 %v530_v60 }
 0x12c   : > { %1136 = vrot.lane.b32.xlu0 %v3750_v49, %s3580_s23 }
 0x134   : > { %804 = vrot.lane.b32.xlu0 %v3756_v52, %s3581_s24 }
 0x13c   : > { %1130 = vrot.lane.b32.xlu0 %v3756_v52, %s3580_s23 }
 0x13d   : > { %v523_v15 = vpop.xlane.xlu0 %522 }
 0x13e   : > { %814 = vrot.lane.b32.xlu1 %v3798_v6, %s3581_s24  ;;  %v552_v17 = vmul.f32 %v3813_v16, %v523_v15 }
 0x140   : > { %v3817_v19 = vsub.f32 %v3728_v42, %v552_v17 }
 0x142   : > { %v568_v22 = vmul.f32 %v3817_v19, %v3817_v19 }
 0x144   : > { %v576_v23 = vsel %vm520_vm1, %v568_v22, 0.0 }
 0x146   : > { %1140 = vrot.lane.b32.xlu1 %v3798_v6, %s3580_s23 }
 0x149   : > { %837 = vadd.xlane.f32.xlu2 %v836_v13 }
 0x14d   : > { %v529_v51 = vpop.xlane.xlu1 %528 }
 0x14e   : > { %v554_v60 = vmul.f32 %v3813_v16, %v529_v51 }
 0x150   : > { %v1461_v30 = vpop.permute.xlu0 %1460  ;;  %v3858_v2 = vsub.f32 %v3756_v52, %v554_v60 }
 0x151   : > { %1163 = vadd.xlane.f32.xlu2 %v1162_v20  ;;  %v1488_v24 = vsel %vm520_vm1, %v1461_v30, 0.0 }
 0x152   : > { %v570_v12 = vmul.f32 %v3858_v2, %v3858_v2 }
 0x154   : > { %v582_v13 = vsel %vm520_vm1, %v570_v12, 0.0 }
 0x158   : > { %v1455_v31 = vpop.permute.xlu0 %1454 }
 0x159   : > { %577 = vadd.xlane.f32.xlu2 %v576_v23  ;;  %v1479_v20 = vsel %vm520_vm1, %v1455_v31, 0.0 }
 0x15b   : > { %v538_v39 = vpop.xlane.xlu2 %537 }
 0x15c   : > { %v557_v46 = vmul.f32 %v3813_v16, %v538_v39 }
 0x15e   : > { %v3844_v53 = vsub.f32 %v3750_v49, %v557_v46 }
 0x160   : > { %v573_v1 = vmul.f32 %v3844_v53, %v3844_v53 }
 0x161   : > { %828 = vadd.xlane.f32.xlu2 %v827_v25 }
 0x162   : > { %v591_v4 = vsel %vm520_vm1, %v573_v1, 0.0 }
 0x163   : > { %v1457_v59 = vpop.permute.xlu2 %1456 }
 0x165   : > { %v1465_v3 = vpop.permute.xlu1 %1464 }
 0x166   : > { %540 = vadd.xlane.f32.xlu0 %v539_v27 }
 0x169   : > { %1154 = vadd.xlane.f32.xlu2 %v1153_v28 }
 0x16b   : > { %v813_v10 = vpop.permute.xlu2 %812 }
 0x16c   : > { %v842_v17 = vsel %vm520_vm1, %v813_v10, 0.0 }
 0x16d   : > { %v1459_v15 = vpop.permute.xlu1 %1458 }
 0x170   : > { %543 = vadd.xlane.f32.xlu1 %v542_v29 }
 0x173   : > { %v1139_v18 = vpop.permute.xlu2 %1138 }
 0x174   : > { %v1168_v22 = vsel %vm520_vm1, %v1139_v18, 0.0 }
 0x17a   : > { %1466 = vrot.lane.b32.xlu0 %v3798_v6, %s3582_s25 }
 0x17b   : > { %v807_v23 = vpop.permute.xlu2 %806 }
 0x17c   : > { %v833_v26 = vsel %vm520_vm1, %v807_v23, 0.0 }
 0x183   : > { %v526_v32 = vpop.xlane.xlu0 %525  ;;  %v1133_v27 = vpop.permute.xlu2 %1132 }
 0x184   : > { %v553_v54 = vmul.f32 %v3813_v16, %v526_v32  ;;  %v1159_v31 = vsel %vm520_vm1, %v1133_v27, 0.0 }
 0x186   : > { %v3852_v63 = vsub.f32 %v3744_v47, %v553_v54  ;;  %v1482_v54 = vsel %vm520_vm1, %v1457_v59, 0.0  ;;  %v1485_v59 = vsel %vm520_vm1, %v1459_v15, 0.0 }
 0x188   : > { %v569_v8 = vmul.f32 %v3852_v63, %v3852_v63 }
 0x18a   : > { %v579_v11 = vsel %vm520_vm1, %v569_v8, 0.0 }
 0x196   : > { %v811_v33 = vpop.permute.xlu0 %810 }
 0x197   : > { %v839_v34 = vsel %vm520_vm1, %v811_v33, 0.0 }
 0x198   : > { %840 = vadd.xlane.f32.xlu1 %v839_v34  ;;  %v532_v21 = vpop.xlane.xlu1 %531 }
 0x199   : > { %v555_v46 = vmul.f32 %v3813_v16, %v532_v21 }
 0x19e   : > { %v1137_v36 = vpop.permute.xlu0 %1136 }
 0x19f   : > { %v1165_v37 = vsel %vm520_vm1, %v1137_v36, 0.0 }
 0x1a0   : > { %1166 = vadd.xlane.f32.xlu1 %v1165_v37 }
 0x1a4   : > { %825 = vadd.xlane.f32.xlu0 %v824_v38 }
 0x1a6   : > { %v805_v40 = vpop.permute.xlu0 %804 }
 0x1a7   : > { %v830_v43 = vsel %vm520_vm1, %v805_v40, 0.0 }
 0x1a8   : > { %831 = vadd.xlane.f32.xlu1 %v830_v43 }
 0x1ac   : > { %1151 = vadd.xlane.f32.xlu0 %v1150_v48 }
 0x1ae   : > { %v1131_v50 = vpop.permute.xlu0 %1130 }
 0x1af   : > { %v1156_v55 = vsel %vm520_vm1, %v1131_v50, 0.0  ;;  %v3890_v50 = vsub.f32 %v3770_v58, %v555_v46 }
 0x1b0   : > { %1157 = vadd.xlane.f32.xlu1 %v1156_v55  ;;  %v815_v25 = vpop.permute.xlu1 %814 }
 0x1b1   : > { %v845_v40 = vsel %vm520_vm1, %v815_v25, 0.0  ;;  %v571_v55 = vmul.f32 %v3890_v50, %v3890_v50 }
 0x1b3   : > { %v585_v60 = vsel %vm520_vm1, %v571_v55, 0.0 }
 0x1b4   : > { %589 = vadd.xlane.f32.xlu0 %v588_v0  ;;  %v1494_v0 = vsel %vm520_vm1, %v1465_v3, 0.0 }
 0x1b8   : > { %592 = vadd.xlane.f32.xlu1 %v591_v4  ;;  %v1141_v32 = vpop.permute.xlu1 %1140  ;;  %v1476_v4 = vsel %vm520_vm1, %v3806_v9, 0.0  ;;  %v1491_v9 = vsel %vm520_vm1, %v3832_v35, 0.0 }
 0x1b9   : > { %v1171_v51 = vsel %vm520_vm1, %v1141_v32, 0.0 }
 0x1bc   : > { %580 = vadd.xlane.f32.xlu0 %v579_v11  ;;  %v838_v36 = vpop.xlane.xlu2 %837 }
 0x1c0   : > { %583 = vadd.xlane.f32.xlu1 %v582_v13 }
 0x1c4   : > { %843 = vadd.xlane.f32.xlu0 %v842_v17  ;;  %v1164_v48 = vpop.xlane.xlu2 %1163 }
 0x1c8   : > { %1480 = vadd.xlane.f32.xlu1 %v1479_v20 }
 0x1cc   : > { %1169 = vadd.xlane.f32.xlu0 %v1168_v22  ;;  %v3896_v57 = vpop.xlane.xlu2 %577 }
 0x1d0   : > { %1489 = vadd.xlane.f32.xlu1 %v1488_v24 }
 0x1d4   : > { %834 = vadd.xlane.f32.xlu0 %v833_v26  ;;  %v829_v1 = vpop.xlane.xlu2 %828 }
 0x1d5   : > { %v849_v8 = vmul.f32 %v829_v1, %v3813_v16 }
 0x1d7   : > { %v3905_v10 = vsub.f32 %v3744_v47, %v849_v8 }
 0x1d9   : > { %v541_v28 = vpop.xlane.xlu0 %540  ;;  %v865_v3 = vmul.f32 %v3905_v10, %v3905_v10 }
 0x1da   : > { %v558_v29 = vmul.f32 %v3813_v16, %v541_v28 }
 0x1dc   : > { %v3875_v33 = vsub.f32 %v3766_v56, %v558_v29  ;;  %1160 = vadd.xlane.f32.xlu0 %v1159_v31  ;;  %v1155_v11 = vpop.xlane.xlu2 %1154  ;;  %v852_v29 = vmul.f32 %v838_v36, %v3813_v16 }
 0x1dd   : > { %v1175_v12 = vmul.f32 %v1155_v11, %v3813_v16 }
 0x1de   : > { %v574_v34 = vmul.f32 %v3875_v33, %v3875_v33 }
 0x1df   : > { %v3916_v17 = vsub.f32 %v3744_v47, %v1175_v12 }
 0x1e0   : > { %v594_v30 = vsel %vm520_vm1, %v574_v34, 0.0 }
 0x1e1   : > { %595 = vadd.xlane.f32.xlu2 %v594_v30  ;;  %v1191_v15 = vmul.f32 %v3916_v17, %v3916_v17 }
 0x1e3   : > { %v544_v37 = vpop.xlane.xlu1 %543 }
 0x1e4   : > { %v559_v38 = vmul.f32 %v3813_v16, %v544_v37  ;;  %v3946_v37 = vsub.f32 %v3734_v44, %v852_v29 }
 0x1e6   : > { %v3882_v39 = vsub.f32 %v3798_v6, %v559_v38 }
 0x1e8   : > { %v575_v41 = vmul.f32 %v3882_v39, %v3882_v39 }
 0x1e9   : > { %846 = vadd.xlane.f32.xlu2 %v845_v40  ;;  %v1178_v40 = vmul.f32 %v1164_v48, %v3813_v16 }
 0x1ea   : > { %v597_v43 = vsel %vm520_vm1, %v575_v41, 0.0  ;;  %v868_v41 = vmul.f32 %v3946_v37, %v3946_v37 }
 0x1eb   : > { %598 = vadd.xlane.f32.xlu0 %v597_v43 }
 0x1ec   : > { %v3910_v13 = vpop.permute.xlu0 %1466 }
 0x1f1   : > { %1172 = vadd.xlane.f32.xlu2 %v1171_v51 }
 0x1f3   : > { %1483 = vadd.xlane.f32.xlu0 %v1482_v54  ;;  %v3962_v54 = vsub.f32 %v3734_v44, %v1178_v40 }
 0x1f9   : > { %586 = vadd.xlane.f32.xlu2 %v585_v60  ;;  %v1194_v60 = vmul.f32 %v3962_v54, %v3962_v54 }
 0x1fb   : > { %1495 = vadd.xlane.f32.xlu0 %v1494_v0 }
 0x201   : > { %1477 = vadd.xlane.f32.xlu2 %v1476_v4 }
 0x209   : > { %1486 = vadd.xlane.f32.xlu2 %v1485_v59 }
 0x20b   : > { %v841_v18 = vpop.xlane.xlu1 %840 }
 0x20c   : > { %v853_v35 = vmul.f32 %v841_v18, %v3813_v16 }
 0x20e   : > { %v3934_v28 = vsub.f32 %v3750_v49, %v853_v35 }
 0x20f   : > { %882 = vrot.lane.b32.xlu0 %v865_v3, %s3581_s24 }
 0x210   : > { %v869_v30 = vmul.f32 %v3934_v28, %v3934_v28 }
 0x211   : > { %1492 = vadd.xlane.f32.xlu2 %v1491_v9 }
 0x213   : > { %v1167_v25 = vpop.xlane.xlu1 %1166 }
 0x214   : > { %v1179_v31 = vmul.f32 %v1167_v25, %v3813_v16 }
 0x216   : > { %v3950_v36 = vsub.f32 %v3750_v49, %v1179_v31 }
 0x217   : > { %1208 = vrot.lane.b32.xlu0 %v1191_v15, %s3580_s23  ;;  %v826_v20 = vpop.xlane.xlu0 %825 }
 0x218   : > { %v848_v21 = vmul.f32 %v826_v20, %v3813_v16  ;;  %5983 = vst [vmem:[#allocation2_spill] sm:$0xff] %v3950_v36  ;;  %v1195_v51 = vmul.f32 %v3950_v36, %v3950_v36 }
 0x21a   : > { %v3923_v22 = vsub.f32 %v3728_v42, %v848_v21 }
 0x21b   : > { %v832_v38 = vpop.xlane.xlu1 %831 }
 0x21c   : > { %v864_v23 = vmul.f32 %v3923_v22, %v3923_v22  ;;  %v850_v43 = vmul.f32 %v832_v38, %v3813_v16 }
 0x21e   : > { %880 = vrot.lane.b32.xlu1 %v864_v23, %s3581_s24  ;;  %v3966_v55 = vsub.f32 %v3756_v52, %v850_v43 }
 0x21f   : > { %v1152_v24 = vpop.xlane.xlu0 %1151 }
 0x220   : > { %v1174_v26 = vmul.f32 %v1152_v24, %v3813_v16  ;;  %5984 = vst [vmem:[#allocation3_spill] sm:$0xff] %v3966_v55  ;;  %v866_v4 = vmul.f32 %v3966_v55, %v3966_v55 }
 0x222   : > { %v3931_v27 = vsub.f32 %v3728_v42, %v1174_v26 }
 0x223   : > { %v1158_v48 = vpop.xlane.xlu1 %1157 }
 0x224   : > { %v1190_v32 = vmul.f32 %v3931_v27, %v3931_v27  ;;  %v1176_v0 = vmul.f32 %v1158_v48, %v3813_v16 }
 0x226   : > { %1206 = vrot.lane.b32.xlu1 %v1190_v32, %s3580_s23  ;;  %v3980_v11 = vsub.f32 %v3756_v52, %v1176_v0 }
 0x227   : > { %v3941_v34 = vpop.xlane.xlu0 %589 }
 0x228   : > { %5986 = vst [vmem:[#allocation5_spill] sm:$0xff] %v3980_v11  ;;  %v1192_v9 = vmul.f32 %v3980_v11, %v3980_v11 }
 0x229   : > { %890 = vrot.lane.b32.xlu2 %v869_v30, %s3581_s24  ;;  %v1497_v30 = vsel %vm520_vm1, %v3910_v13, 0.0 }
 0x22b   : > { %v4013_v40 = vpop.xlane.xlu1 %592 }
 0x22e   : > { %888 = vrot.lane.b32.xlu1 %v868_v41, %s3581_s24 }
 0x22f   : > { %v3957_v46 = vpop.xlane.xlu0 %580 }
 0x231   : > { %1216 = vrot.lane.b32.xlu2 %v1195_v51, %s3580_s23 }
 0x233   : > { %v4019_v48 = vpop.xlane.xlu1 %583 }
 0x236   : > { %1214 = vrot.lane.b32.xlu1 %v1194_v60, %s3580_s23 }
 0x237   : > { %v844_v1 = vpop.xlane.xlu0 %843 }
 0x238   : > { %v854_v8 = vmul.f32 %v844_v1, %v3813_v16 }
 0x239   : > { %884 = vrot.lane.b32.xlu2 %v866_v4, %s3581_s24 }
 0x23a   : > { %v3977_v59 = vsub.f32 %v3766_v56, %v854_v8 }
 0x23b   : > { %v1481_v4 = vpop.xlane.xlu1 %1480 }
 0x23c   : > { %5985 = vst [vmem:[#allocation4_spill] sm:$0xff] %v3977_v59  ;;  %v870_v12 = vmul.f32 %v3977_v59, %v3977_v59 }
 0x23e   : > { %892 = vrot.lane.b32.xlu0 %v870_v12, %s3581_s24 }
 0x23f   : > { %v1170_v3 = vpop.xlane.xlu0 %1169 }
 0x240   : > { %v1180_v15 = vmul.f32 %v1170_v3, %v3813_v16 }
 0x241   : > { %1210 = vrot.lane.b32.xlu2 %v1192_v9, %s3580_s23 }
 0x242   : > { %v3990_v18 = vsub.f32 %v3766_v56, %v1180_v15 }
 0x243   : > { %v1490_v9 = vpop.xlane.xlu1 %1489 }
 0x244   : > { %5987 = vst [vmem:[#allocation6_spill] sm:$0xff] %v3990_v18  ;;  %v1196_v20 = vmul.f32 %v3990_v18, %v3990_v18 }
 0x246   : > { %1218 = vrot.lane.b32.xlu0 %v1196_v20, %s3580_s23 }
 0x247   : > { %v835_v21 = vpop.xlane.xlu0 %834 }
 0x248   : > { %v851_v23 = vmul.f32 %v835_v21, %v3813_v16 }
 0x24a   : > { %v3997_v35 = vsub.f32 %v3770_v58, %v851_v23 }
 0x24c   : > { %5988 = vst [vmem:[#allocation7_spill] sm:$0xff] %v3997_v35  ;;  %v867_v24 = vmul.f32 %v3997_v35, %v3997_v35 }
 0x24e   : > { %886 = vrot.lane.b32.xlu0 %v867_v24, %s3581_s24 }
 0x24f   : > { %v1161_v25 = vpop.xlane.xlu0 %1160 }
 0x250   : > { %v1177_v26 = vmul.f32 %v1161_v25, %v3813_v16 }
 0x252   : > { %v4004_v29 = vsub.f32 %v3770_v58, %v1177_v26 }
 0x254   : > { %5989 = vst [vmem:[#allocation8_spill] sm:$0xff] %v4004_v29  ;;  %v1193_v32 = vmul.f32 %v4004_v29, %v4004_v29  ;;  %v4009_v31 = vpop.xlane.xlu2 %595 }
 0x256   : > { %1212 = vrot.lane.b32.xlu0 %v1193_v32, %s3580_s23 }
 0x25c   : > { %v847_v38 = vpop.xlane.xlu2 %846 }
 0x25d   : > { %v855_v41 = vmul.f32 %v847_v38, %v3813_v16 }
 0x25e   : > { %v4033_v12 = vpop.xlane.xlu0 %598 }
 0x25f   : > { %v4017_v51 = vsub.f32 %v3798_v6, %v855_v41 }
 0x260   : > { %1498 = vadd.xlane.f32.xlu1 %v1497_v30 }
 0x261   : > { %5990 = vst [vmem:[#allocation9_spill] sm:$0xff] %v4017_v51  ;;  %v871_v0 = vmul.f32 %v4017_v51, %v4017_v51 }
 0x264   : > { %v1173_v43 = vpop.xlane.xlu2 %1172 }
 0x265   : > { %v1181_v60 = vmul.f32 %v1173_v43, %v3813_v16 }
 0x266   : > { %v1484_v15 = vpop.xlane.xlu0 %1483 }
 0x267   : > { %v4028_v13 = vsub.f32 %v3798_v6, %v1181_v60 }
 0x269   : > { %5991 = vst [vmem:[#allocation10_spill] sm:$0xff] %v4028_v13  ;;  %v1197_v8 = vmul.f32 %v4028_v13, %v4028_v13 }
 0x26c   : > { %v4024_v1 = vpop.xlane.xlu2 %586 }
 0x26e   : > { %v4038_v24 = vpop.xlane.xlu0 %1495 }
 0x274   : > { %v1478_v3 = vpop.xlane.xlu2 %1477 }
 0x279   : > { %894 = vrot.lane.b32.xlu1 %v871_v0, %s3581_s24 }
 0x27c   : > { %v4035_v20 = vpop.xlane.xlu2 %1486 }
 0x281   : > { %1220 = vrot.lane.b32.xlu1 %v1197_v8, %s3580_s23  ;;  %v883_v30 = vpop.permute.xlu0 %882 }
 0x282   : > { %v907_v51 = vsel %vm520_vm1, %v883_v30, 0.0 }
 0x284   : > { %v1493_v25 = vpop.xlane.xlu2 %1492 }
 0x289   : > { %v1209_v60 = vpop.permute.xlu0 %1208 }
 0x28a   : > { %v1233_v29 = vsel %vm520_vm1, %v1209_v60, 0.0 }
 0x28c   : > { %v891_v41 = vpop.permute.xlu2 %890 }
 0x290   : > { %v881_v21 = vpop.permute.xlu1 %880 }
 0x291   : > { %v904_v23 = vsel %vm520_vm1, %v881_v21, 0.0  ;;  %v919_v21 = vsel %vm520_vm1, %v891_v41, 0.0 }
 0x292   : > { %905 = vadd.xlane.f32.xlu2 %v904_v23 }
 0x294   : > { %v1217_v23 = vpop.permute.xlu2 %1216 }
 0x298   : > { %v1207_v26 = vpop.permute.xlu1 %1206 }
 0x299   : > { %v1230_v32 = vsel %vm520_vm1, %v1207_v26, 0.0 }
 0x29a   : > { %1231 = vadd.xlane.f32.xlu2 %v1230_v32  ;;  %v1245_v32 = vsel %vm520_vm1, %v1217_v23, 0.0 }
 0x2a0   : > { %v889_v38 = vpop.permute.xlu1 %888 }
 0x2a1   : > { %v916_v43 = vsel %vm520_vm1, %v889_v38, 0.0  ;;  %v885_v38 = vpop.permute.xlu2 %884 }
 0x2a2   : > { %917 = vadd.xlane.f32.xlu0 %v916_v43  ;;  %v910_v41 = vsel %vm520_vm1, %v885_v38, 0.0 }
 0x2a8   : > { %v1215_v0 = vpop.permute.xlu1 %1214 }
 0x2a9   : > { %v1242_v8 = vsel %vm520_vm1, %v1215_v0, 0.0 }
 0x2aa   : > { %1243 = vadd.xlane.f32.xlu0 %v1242_v8  ;;  %v1211_v8 = vpop.permute.xlu2 %1210 }
 0x2ab   : > { %920 = vadd.xlane.f32.xlu1 %v919_v21  ;;  %v1501_v21 = vmul.f32 %v1481_v4, %v3813_v16  ;;  %v1505_v4 = vmul.f32 %v1493_v25, %v3813_v16 }
 0x2ad   : > { %v4054_v23 = vsub.f32 %v3744_v47, %v1501_v21 }
 0x2af   : > { %5992 = vst [vmem:[#allocation11_spill] sm:$0xff] %v4054_v23 }
 0x2b0   : > { %v893_v13 = vpop.permute.xlu0 %892 }
 0x2b1   : > { %v922_v26 = vsel %vm520_vm1, %v893_v13, 0.0 }
 0x2b2   : > { %908 = vadd.xlane.f32.xlu0 %v907_v51  ;;  %923 = vadd.xlane.f32.xlu2 %v922_v26  ;;  %v1236_v51 = vsel %vm520_vm1, %v1211_v8, 0.0  ;;  %v1517_v26 = vmul.f32 %v4054_v23, %v4054_v23 }
 0x2b3   : > { %1246 = vadd.xlane.f32.xlu1 %v1245_v32  ;;  %v1502_v32 = vmul.f32 %v1484_v15, %v3813_v16  ;;  %v1504_v15 = vmul.f32 %v1490_v9, %v3813_v16 }
 0x2b5   : > { %v4062_v38 = vsub.f32 %v3756_v52, %v1502_v32  ;;  %v4082_v25 = vsub.f32 %v3734_v44, %v1504_v15 }
 0x2b7   : > { %5993 = vst [vmem:[#allocation12_spill] sm:$0xff] %v4062_v38  ;;  %v1518_v47 = vmul.f32 %v4062_v38, %v4062_v38 }
 0x2b8   : > { %v1219_v43 = vpop.permute.xlu0 %1218  ;;  %5996 = vst [vmem:[#allocation15_spill] sm:$0xff] %v4082_v25 }
 0x2b9   : > { %v1248_v0 = vsel %vm520_vm1, %v1219_v43, 0.0  ;;  %v1500_v43 = vmul.f32 %v1478_v3, %v3813_v16 }
 0x2ba   : > { %1234 = vadd.xlane.f32.xlu0 %v1233_v29  ;;  %1249 = vadd.xlane.f32.xlu2 %v1248_v0 }
 0x2bb   : > { %911 = vadd.xlane.f32.xlu1 %v910_v41  ;;  %v4069_v0 = vsub.f32 %v3728_v42, %v1500_v43  ;;  %v4073_v41 = vsub.f32 %v3750_v49, %v1505_v4  ;;  %v1520_v49 = vmul.f32 %v4082_v25, %v4082_v25 }
 0x2bd   : > { %5994 = vst [vmem:[#allocation13_spill] sm:$0xff] %v4069_v0  ;;  %v1516_v52 = vmul.f32 %v4069_v0, %v4069_v0  ;;  %v1521_v3 = vmul.f32 %v4073_v41, %v4073_v41 }
 0x2be   : > { %5995 = vst [vmem:[#allocation14_spill] sm:$0xff] %v4073_v41 }
 0x2c0   : > { %v887_v30 = vpop.permute.xlu0 %886 }
 0x2c1   : > { %v913_v13 = vsel %vm520_vm1, %v887_v30, 0.0 }
 0x2c2   : > { %914 = vadd.xlane.f32.xlu2 %v913_v13 }
 0x2c3   : > { %1237 = vadd.xlane.f32.xlu1 %v1236_v51 }
 0x2c8   : > { %v1213_v60 = vpop.permute.xlu0 %1212 }
 0x2c9   : > { %v1239_v29 = vsel %vm520_vm1, %v1213_v60, 0.0  ;;  %v1503_v60 = vmul.f32 %v4035_v20, %v3813_v16 }
 0x2ca   : > { %1240 = vadd.xlane.f32.xlu2 %v1239_v29 }
 0x2cb   : > { %v4100_v29 = vsub.f32 %v3770_v58, %v1503_v60 }
 0x2cd   : > { %5998 = vst [vmem:[#allocation17_spill] sm:$0xff] %v4100_v29 }
 0x2ce   : > { %1534 = vrot.lane.b32.xlu0 %v1517_v26, %s3582_s25  ;;  %v1519_v26 = vmul.f32 %v4100_v29, %v4100_v29 }
 0x2d3   : > { %v1499_v42 = vpop.xlane.xlu1 %1498 }
 0x2d4   : > { %v1507_v8 = vmul.f32 %v1499_v42, %v3813_v16 }
 0x2d6   : > { %v4090_v9 = vsub.f32 %v3798_v6, %v1507_v8  ;;  %v1506_v6 = vmul.f32 %v4038_v24, %v3813_v16 }
 0x2d8   : > { %5997 = vst [vmem:[#allocation16_spill] sm:$0xff] %v4090_v9  ;;  %v1523_v30 = vmul.f32 %v4090_v9, %v4090_v9  ;;  %v4110_v43 = vsub.f32 %v3766_v56, %v1506_v6 }
 0x2da   : > { %5999 = vst [vmem:[#allocation18_spill] sm:$0xff] %v4110_v43  ;;  %v1522_v4 = vmul.f32 %v4110_v43, %v4110_v43 }
 0x2dc   : > { %1536 = vrot.lane.b32.xlu1 %v1518_v47, %s3582_s25 }
 0x2e2   : > { %1532 = vrot.lane.b32.xlu2 %v1516_v52, %s3582_s25 }
 0x2e4   : > { %1542 = vrot.lane.b32.xlu1 %v1521_v3, %s3582_s25 }
 0x2ea   : > { %1540 = vrot.lane.b32.xlu2 %v1520_v49, %s3582_s25 }
 0x2eb   : > { %v895_v13 = vpop.permute.xlu1 %894 }
 0x2ec   : > { %v925_v44 = vsel %vm520_vm1, %v895_v13, 0.0 }
 0x2f2   : > { %1546 = vrot.lane.b32.xlu2 %v1523_v30, %s3582_s25 }
 0x2f3   : > { %v1221_v51 = vpop.permute.xlu1 %1220 }
 0x2f4   : > { %v1251_v21 = vsel %vm520_vm1, %v1221_v51, 0.0 }
 0x2f8   : > { %926 = vadd.xlane.f32.xlu0 %v925_v44 }
 0x300   : > { %1252 = vadd.xlane.f32.xlu0 %v1251_v21 }
 0x305   : > { %v4106_v32 = vpop.xlane.xlu2 %905 }
 0x30d   : > { %v4115_v58 = vpop.xlane.xlu2 %1231 }
 0x314   : > { %1538 = vrot.lane.b32.xlu0 %v1519_v26, %s3582_s25 }
 0x315   : > { %v4117_v20 = vpop.xlane.xlu0 %917 }
 0x31c   : > { %1544 = vrot.lane.b32.xlu0 %v1522_v4, %s3582_s25 }
 0x31d   : > { %v4121_v47 = vpop.xlane.xlu0 %1243 }
 0x31e   : > { %v4123_v15 = vpop.xlane.xlu1 %920 }
 0x325   : > { %v4119_v24 = vpop.xlane.xlu2 %923  ;;  %v4127_v3 = vpop.xlane.xlu0 %908 }
 0x326   : > { %v4129_v56 = vpop.xlane.xlu1 %1246 }
 0x32d   : > { %v4125_v52 = vpop.xlane.xlu2 %1249  ;;  %v4133_v8 = vpop.xlane.xlu0 %1234 }
 0x32e   : > { %v4135_v49 = vpop.xlane.xlu1 %911 }
 0x335   : > { %v4131_v42 = vpop.xlane.xlu2 %914 }
 0x336   : > { %v4139_v51 = vpop.xlane.xlu1 %1237 }
 0x33d   : > { %v4137_v30 = vpop.xlane.xlu2 %1240 }
 0x340   : > { %v1535_v13 = vpop.permute.xlu0 %1534 }
 0x341   : > { %v1559_v21 = vsel %vm520_vm1, %v1535_v13, 0.0  ;;  %v600_v13 = vmul.f32 %v3896_v57, %v3813_v16 }
 0x345   : > { %v1533_v44 = vpop.permute.xlu2 %1532 }
 0x346   : > { %v1556_v60 = vsel %vm520_vm1, %v1533_v44, 0.0  ;;  %1560 = vadd.xlane.f32.xlu0 %v1559_v21  ;;  %v608_v44 = vadd.f32 1e-06, %v600_v13  ;;  %v604_v21 = vmul.f32 %v3941_v34, %v3813_v16 }
 0x347   : > { %1557 = vadd.xlane.f32.xlu1 %v1556_v60  ;;  %v605_v60 = vmul.f32 %v4013_v40, %v3813_v16 }
 0x348   : > { %3406 = vrsqrt.f32 %v608_v44  ;;  %vm622_vm4 = vweird.f32 %v608_v44 }
 0x34d   : > { %v1541_v6 = vpop.permute.xlu2 %1540 }
 0x34e   : > { %v1537_v26 = vpop.permute.xlu1 %1536  ;;  %v1568_v4 = vsel %vm520_vm1, %v1541_v6, 0.0  ;;  %v613_v6 = vadd.f32 1e-06, %v605_v60 }
 0x34f   : > { %1569 = vadd.xlane.f32.xlu0 %v1568_v4  ;;  %v1562_v43 = vsel %vm520_vm1, %v1537_v26, 0.0 }
 0x350   : > { %1563 = vadd.xlane.f32.xlu2 %v1562_v43  ;;  %v612_v43 = vadd.f32 1e-06, %v604_v21  ;;  %vm672_vm10 = vweird.f32 %v613_v6 }
 0x352   : > { %3408 = vrsqrt.f32 %v612_v43  ;;  %vm662_vm8 = vweird.f32 %v612_v43 }
 0x353   : > { %3410 = vrsqrt.f32 %v613_v6 }
 0x355   : > { %v1547_v23 = vpop.permute.xlu2 %1546 }
 0x356   : > { %v1543_v29 = vpop.permute.xlu1 %1542  ;;  %v1577_v41 = vsel %vm520_vm1, %v1547_v23, 0.0  ;;  %v601_v23 = vmul.f32 %v3957_v46, %v3813_v16 }
 0x357   : > { %1578 = vadd.xlane.f32.xlu0 %v1577_v41  ;;  %v1571_v9 = vsel %vm520_vm1, %v1543_v29, 0.0  ;;  %v3407_v41 = vpop.eup %3406 }
 0x358   : > { %1572 = vadd.xlane.f32.xlu2 %v1571_v9  ;;  %v602_v9 = vmul.f32 %v4019_v48, %v3813_v16  ;;  %v617_v57 = vmul.f32 %v3407_v41, %v608_v44  ;;  %v4157_v29 = vadd.f32 1e-06, %v601_v23  ;;  %v3409_v26 = vpop.eup %3408  ;;  %vm623_vm3 = vweird.f32 %v3407_v41 }
 0x359   : > { %v3411_v40 = vpop.eup %3410  ;;  %v657_v13 = vmul.f32 %v3409_v26, %v612_v43  ;;  %vm624_vm5 = vmor %vm622_vm4, %vm623_vm3  ;;  %vm663_vm6 = vweird.f32 %v3409_v26 }
 0x35a   : > { %v4159_v34 = vadd.f32 1e-06, %v602_v9  ;;  %v618_v4 = vmul.f32 %v3407_v41, %v617_v57  ;;  %3412 = vrsqrt.f32 %v4157_v29  ;;  %v667_v21 = vmul.f32 %v3411_v40, %v613_v6  ;;  %v4172_v57 = vld [vmem:[%s3704_s28] ss:$0 sm:$0xff]  ;;  %vm664_vm9 = vmor %vm662_vm8, %vm663_vm6 }
 0x35b   : > { %v658_v48 = vmul.f32 %v3409_v26, %v657_v13  ;;  %vm673_vm7 = vweird.f32 %v3411_v40  ;;  %vm632_vm13 = vweird.f32 %v4157_v29 }
 0x35c   : > { %3414 = vrsqrt.f32 %v4159_v34  ;;  %v619_v46 = vmul.f32 0.5, %v618_v4  ;;  %v668_v23 = vmul.f32 %v3411_v40, %v667_v21  ;;  %vm674_vm11 = vmor %vm672_vm10, %vm673_vm7  ;;  %vm642_vm2 = vweird.f32 %v4159_v34 }
 0x35d   : > { %v659_v0 = vmul.f32 0.5, %v658_v48  ;;  %v606_v48 = vmul.f32 %v4009_v31, %v3813_v16 }
 0x35e   : > { %v620_v25 = vsub.f32 1.5, %v619_v46  ;;  %v669_v18 = vmul.f32 0.5, %v668_v23 }
 0x35f   : > { %v660_v21 = vsub.f32 1.5, %v659_v0 }
 0x360   : > { %v4165_v60 = vpop.eup %3412  ;;  %v621_v13 = vmul.f32 %v3407_v41, %v620_v25  ;;  %v670_v46 = vsub.f32 1.5, %v669_v18 }
 0x361   : > { %v627_v11 = vmul.f32 %v4165_v60, %v4157_v29  ;;  %v661_v36 = vmul.f32 %v3409_v26, %v660_v21  ;;  %vm633_vm12 = vweird.f32 %v4165_v60 }
 0x362   : > { %v4169_v9 = vpop.eup %3414  ;;  %v625_v55 = vsel %vm624_vm5, %v3407_v41, %v621_v13  ;;  %v671_v0 = vmul.f32 %v3411_v40, %v670_v46  ;;  %vm634_vm15 = vmor %vm632_vm13, %vm633_vm12  ;;  %v4224_v46 = vld [vmem:[%s5955_s5] ss:$0 sm:$0xff] }
 0x363   : > { %v637_v4 = vmul.f32 %v4169_v9, %v4159_v34  ;;  %v628_v35 = vmul.f32 %v4165_v60, %v627_v11  ;;  %v607_v11 = vmul.f32 %v4033_v12, %v3813_v16  ;;  %v696_v31 = vmul.f32 %v625_v55, %v3817_v19  ;;  %v4204_v12 = vld [vmem:[%s5954_s4] ss:$0 sm:$0xff] }
 0x364   : > { %v665_v44 = vsel %vm664_vm9, %v3409_v26, %v661_v36  ;;  %vm643_vm14 = vweird.f32 %v4169_v9 }
 0x365   : > { %v629_v25 = vmul.f32 0.5, %v628_v35  ;;  %v4197_v35 = vadd.f32 1e-06, %v607_v11  ;;  %v704_v19 = vmul.f32 %v4204_v12, %v696_v31  ;;  %v700_v55 = vmul.f32 %v665_v44, %v3839_v45  ;;  %vm644_vm3 = vmor %vm642_vm2, %vm643_vm14 }
 0x367   : > { %v630_v41 = vsub.f32 1.5, %v629_v25 }
 0x369   : > { %v631_v6 = vmul.f32 %v4165_v60, %v630_v41 }
 0x36b   : > { %v4167_v38 = vpop.xlane.xlu0 %926  ;;  %1978 = vrot.lane.b32.xlu0 %v4172_v57, %s3585_s15  ;;  %s3595_s15 = smov 36  }
 0x36c   : > { %6000 = vst [vmem:[#allocation19_spill] sm:$0xff] %v4167_v38  ;;  %v4190_v38 = vadd.f32 1e-06, %v606_v48  ;;  %v4227_v48 = vadd.f32 %v4224_v46, %v704_v19 }
 0x36e   : > { %v720_v34 = vmul.f32 %v4227_v48, %v4227_v48  ;;  %vm682_vm8 = vweird.f32 %v4190_v38 }
 0x370   : > { %1684 = vrot.lane.b32.xlu2 %v3697_v5, %s3584_s26  ;;  %v603_v5 = vmul.f32 %v4024_v1, %v3813_v16  ;;  %v638_v1 = vmul.f32 %v4169_v9, %v637_v4 }
 0x372   : > { %v4185_v23 = vadd.f32 1e-06, %v603_v5  ;;  %v639_v18 = vmul.f32 0.5, %v638_v1  ;;  %v675_v5 = vsel %vm674_vm11, %v3411_v40, %v671_v0  ;;  %v635_v1 = vsel %vm634_vm15, %v4165_v60, %v631_v6 }
 0x373   : > { %v4188_v59 = vpop.xlane.xlu0 %1252  ;;  %v701_v43 = vmul.f32 %v675_v5, %v3844_v53  ;;  %v708_v53 = vmul.f32 %v4204_v12, %v700_v55  ;;  %v697_v60 = vmul.f32 %v635_v1, %v3852_v63  ;;  %vm692_vm11 = vweird.f32 %v4197_v35  ;;  %2112 = vrot.lane.b32.xlu0 %v4172_v57, %s3586_s17  ;;  %s3596_s17 = smov 92  }
 0x374   : > { %3416 = vrsqrt.f32 %v4185_v23  ;;  %v640_v4 = vsub.f32 1.5, %v639_v18  ;;  %v928_v18 = vmul.f32 %v4106_v32, %v3813_v16  ;;  %vm652_vm5 = vweird.f32 %v4185_v23 }
 0x375   : > { %3418 = vrsqrt.f32 %v4190_v38  ;;  %v709_v29 = vmul.f32 %v4204_v12, %v701_v43  ;;  %v4241_v44 = vadd.f32 %v4224_v46, %v708_v53  ;;  %v705_v43 = vmul.f32 %v4204_v12, %v697_v60 }
 0x376   : > { %3420 = vrsqrt.f32 %v4197_v35  ;;  %v641_v40 = vmul.f32 %v4169_v9, %v640_v4 }
 0x377   : > { %v724_v63 = vmul.f32 %v4241_v44, %v4241_v44 }
 0x378   : > { %2045 = vrot.lane.b32.xlu2 %v4172_v57, %s3578_s29  ;;  %v645_v25 = vsel %vm644_vm3, %v4169_v9, %v641_v40  ;;  %v4247_v9 = vadd.f32 %v4224_v46, %v709_v29  ;;  %v4266_v29 = vadd.f32 %v4224_v46, %v705_v43  ;;  %s3588_s29 = smov 116  }
 0x379   : > { %v698_v4 = vmul.f32 %v645_v25, %v3858_v2  ;;  %v732_v1 = vmul.f32 %v724_v63, %v4241_v44  ;;  %v1254_v63 = vmul.f32 %v4115_v58, %v3813_v16 }
 0x37a   : > { %v4199_v13 = vpop.eup %3416  ;;  %v725_v6 = vmul.f32 %v4247_v9, %v4247_v9 }
 0x37b   : > { %v647_v45 = vmul.f32 %v4199_v13, %v4185_v23  ;;  %v4218_v21 = vpop.eup %3418  ;;  %v706_v2 = vmul.f32 %v4204_v12, %v698_v4  ;;  %vm653_vm4 = vweird.f32 %v4199_v13  ;;  %2179 = vrot.lane.b32.xlu0 %v4172_v57, %s3579_s16  ;;  %s3597_s16 = smov 40  }
 0x37c   : > { %v677_v0 = vmul.f32 %v4218_v21, %v4190_v38  ;;  %v4238_v31 = vpop.eup %3420  ;;  %vm654_vm6 = vmor %vm652_vm5, %vm653_vm4  ;;  %vm683_vm7 = vweird.f32 %v4218_v21  ;;  %v929_v38 = vmul.f32 %v4127_v3, %v3813_v16 }
 0x37d   : > { %v648_v11 = vmul.f32 %v4199_v13, %v647_v45  ;;  %v687_v19 = vmul.f32 %v4238_v31, %v4197_v35  ;;  %vm684_vm9 = vmor %vm682_vm8, %vm683_vm7  ;;  %vm693_vm10 = vweird.f32 %v4238_v31 }
 0x37e   : > { %v678_v32 = vmul.f32 %v4218_v21, %v677_v0  ;;  %v733_v0 = vmul.f32 %v725_v6, %v4247_v9  ;;  %vm694_vm12 = vmor %vm692_vm11, %vm693_vm10 }
 0x37f   : > { %v649_v55 = vmul.f32 0.5, %v648_v11  ;;  %v688_v45 = vmul.f32 %v4238_v31, %v687_v19  ;;  %v4271_v11 = vadd.f32 %v4224_v46, %v706_v2 }
 0x380   : > { %v679_v40 = vmul.f32 0.5, %v678_v32  ;;  %v741_v19 = vmul.f32 0.044715, %v733_v0 }
 0x381   : > { %v650_v53 = vsub.f32 1.5, %v649_v55  ;;  %6001 = vst [vmem:[#allocation20_spill] sm:$0xff] %v4271_v11  ;;  %v689_v60 = vmul.f32 0.5, %v688_v45  ;;  %v722_v55 = vmul.f32 %v4271_v11, %v4271_v11 }
 0x383   : > { %v690_v6 = vsub.f32 1.5, %v689_v60 }
 0x386   : > { %v1539_v36 = vpop.permute.xlu0 %1538 }
 0x387   : > { %v1565_v26 = vsel %vm520_vm1, %v1539_v36, 0.0  ;;  %v4254_v36 = vadd.f32 1e-06, %v928_v18  ;;  %v680_v18 = vsub.f32 1.5, %v679_v40 }
 0x388   : > { %1566 = vadd.xlane.f32.xlu1 %v1565_v26  ;;  %v728_v26 = vmul.f32 %v720_v34, %v4227_v48  ;;  %v721_v34 = vmul.f32 %v4266_v29, %v4266_v29 }
 0x389   : > { %3422 = vrsqrt.f32 %v4254_v36  ;;  %v681_v43 = vmul.f32 %v4218_v21, %v680_v18  ;;  %v691_v18 = vmul.f32 %v4238_v31, %v690_v6  ;;  %vm950_vm14 = vweird.f32 %v4254_v36 }
 0x38a   : > { %v736_v25 = vmul.f32 0.044715, %v728_v26  ;;  %v729_v2 = vmul.f32 %v721_v34, %v4266_v29 }
 0x38b   : > { %v685_v0 = vsel %vm684_vm9, %v4218_v21, %v681_v43 }
 0x38c   : > { %v744_v32 = vadd.f32 %v736_v25, %v4227_v48  ;;  %v730_v25 = vmul.f32 %v722_v55, %v4271_v11 }
 0x38e   : > { %v1545_v41 = vpop.permute.xlu0 %1544  ;;  %v752_v45 = vmul.f32 0.7978846, %v744_v32  ;;  %v695_v32 = vsel %vm694_vm12, %v4238_v31, %v691_v18  ;;  %v738_v3 = vmul.f32 0.044715, %v730_v25 }
 0x38f   : > { %v1574_v5 = vsel %vm520_vm1, %v1545_v41, 0.0  ;;  %v651_v41 = vmul.f32 %v4199_v13, %v650_v53  ;;  %v4277_v4 = vpop.eup %3422  ;;  %v749_v53 = vadd.f32 %v741_v19, %v4247_v9  ;;  %v4313_v19 = vadd.f32 1e-06, %v929_v38 }
 0x390   : > { %1575 = vadd.xlane.f32.xlu1 %v1574_v5  ;;  %v740_v5 = vmul.f32 0.044715, %v732_v1  ;;  %v945_v23 = vmul.f32 %v4277_v4, %v4254_v36  ;;  %v4295_v1 = vadd.f32 1e-06, %v1254_v63  ;;  %v703_v35 = vmul.f32 %v695_v32, %v3882_v39 }
 0x391   : > { %v655_v26 = vsel %vm654_vm6, %v4199_v13, %v651_v41  ;;  %v932_v13 = vmul.f32 %v4117_v20, %v3813_v16  ;;  %v737_v41 = vmul.f32 0.044715, %v729_v2  ;;  %v757_v34 = vmul.f32 0.7978846, %v749_v53 }
 0x392   : > { %v748_v40 = vadd.f32 %v740_v5, %v4241_v44  ;;  %v699_v58 = vmul.f32 %v655_v26, %v3890_v50  ;;  %v946_v60 = vmul.f32 %v4277_v4, %v945_v23  ;;  %v702_v20 = vmul.f32 %v685_v0, %v3875_v33 }
 0x393   : > { %3424 = vrsqrt.f32 %v4295_v1  ;;  %v4310_v21 = vadd.f32 1e-06, %v932_v13  ;;  %v745_v63 = vadd.f32 %v737_v41, %v4266_v29  ;;  %v746_v31 = vadd.f32 %v738_v3, %v4271_v11 }
 0x394   : > { %v756_v50 = vmul.f32 0.7978846, %v748_v40  ;;  %v707_v5 = vmul.f32 %v4204_v12, %v699_v58  ;;  %3426 = vtanh.f32 %v752_v45  ;;  %v947_v55 = vmul.f32 0.5, %v946_v60 }
 0x395   : > { %v710_v33 = vmul.f32 %v4204_v12, %v702_v20  ;;  %v1255_v23 = vmul.f32 %v4133_v8, %v3813_v16  ;;  %v753_v2 = vmul.f32 0.7978846, %v745_v63  ;;  %v711_v53 = vmul.f32 %v4204_v12, %v703_v35 }
 0x396   : > { %3428 = vtanh.f32 %v756_v50  ;;  %v4319_v43 = vadd.f32 %v4224_v46, %v707_v5  ;;  %v948_v26 = vsub.f32 1.5, %v947_v55  ;;  %v933_v0 = vmul.f32 %v4123_v15, %v3813_v16 }
 0x397   : > { %3430 = vtanh.f32 %v757_v34  ;;  %v4331_v45 = vadd.f32 %v4224_v46, %v710_v33  ;;  %v754_v18 = vmul.f32 0.7978846, %v746_v31  ;;  %vm951_vm13 = vweird.f32 %v4277_v4 }
 0x398   : > { %6002 = vst [vmem:[#allocation21_spill] sm:$0xff] %v4319_v43  ;;  %3432 = vrsqrt.f32 %v4310_v21  ;;  %v723_v58 = vmul.f32 %v4319_v43, %v4319_v43  ;;  %v949_v38 = vmul.f32 %v4277_v4, %v948_v26  ;;  %v4344_v60 = vadd.f32 1e-06, %v1255_v23  ;;  %vm4357_vm15 = vmor %vm950_vm14, %vm951_vm13 }
 0x399   : > { %3434 = vrsqrt.f32 %v4313_v19  ;;  %v4326_v6 = vpop.eup %3424  ;;  %6003 = vst [vmem:[#allocation22_spill] sm:$0xff] %v4331_v45  ;;  %v1258_v41 = vmul.f32 %v4121_v47, %v3813_v16  ;;  %v726_v15 = vmul.f32 %v4331_v45, %v4331_v45  ;;  %v4353_v20 = vadd.f32 %v4224_v46, %v711_v53 }
 0x39a   : > { %v3427_v39 = vpop.eup %3426  ;;  %v1271_v25 = vmul.f32 %v4326_v6, %v4295_v1  ;;  %3436 = vtanh.f32 %v753_v2  ;;  %v731_v5 = vmul.f32 %v723_v58, %v4319_v43  ;;  %v4362_v55 = vadd.f32 1e-06, %v933_v0 }
 0x39b   : > { %v768_v50 = vadd.f32 1.0, %v3427_v39  ;;  %6004 = vst [vmem:[#allocation23_spill] sm:$0xff] %v4353_v20  ;;  %3438 = vtanh.f32 %v754_v18  ;;  %v953_v63 = vsel %vm4357_vm15, %v4277_v4, %v949_v38  ;;  %v4372_v33 = vadd.f32 1e-06, %v1258_v41 }
 0x39c   : > { %v3429_v40 = vpop.eup %3428  ;;  %v1272_v3 = vmul.f32 %v4326_v6, %v1271_v25  ;;  %3440 = vrsqrt.f32 %v4344_v60  ;;  %v727_v26 = vmul.f32 %v4353_v20, %v4353_v20  ;;  %v739_v2 = vmul.f32 0.044715, %v731_v5 }
 0x39d   : > { %v3431_v13 = vpop.eup %3430  ;;  %v772_v34 = vadd.f32 1.0, %v3429_v40  ;;  %v776_v35 = vmul.f32 0.5, %v768_v50  ;;  %v734_v39 = vmul.f32 %v726_v15, %v4331_v45  ;;  %v1024_v4 = vmul.f32 %v953_v63, %v3923_v22 }
 0x39e   : > { %v4340_v8 = vpop.eup %3432  ;;  %v773_v47 = vadd.f32 1.0, %v3431_v13  ;;  %v1273_v40 = vmul.f32 0.5, %v1272_v3  ;;  %3442 = vrsqrt.f32 %v4362_v55  ;;  %v934_v53 = vmul.f32 %v4119_v24, %v3813_v16 }
 0x39f   : > { %v4346_v12 = vpop.eup %3434  ;;  %v780_v23 = vmul.f32 0.5, %v772_v34  ;;  %v1259_v25 = vmul.f32 %v4129_v56, %v3813_v16  ;;  %3444 = vrsqrt.f32 %v4372_v33  ;;  %v930_v22 = vmul.f32 %v4135_v49, %v3813_v16 }
 0x3a0   : > { %v955_v36 = vmul.f32 %v4346_v12, %v4313_v19  ;;  %v3437_v31 = vpop.eup %3436  ;;  %v781_v0 = vmul.f32 0.5, %v773_v47  ;;  %v4389_v41 = vmul.f32 %v776_v35, %v4227_v48  ;;  %v747_v34 = vadd.f32 %v739_v2, %v4319_v43 }
 0x3a1   : > { %v3439_v18 = vpop.eup %3438  ;;  %v769_v38 = vadd.f32 1.0, %v3437_v31  ;;  %v4394_v24 = vmul.f32 %v780_v23, %v4241_v44  ;;  %v735_v56 = vmul.f32 %v727_v26, %v4353_v20  ;;  %v742_v15 = vmul.f32 0.044715, %v734_v39 }
 0x3a2   : > { %v956_v13 = vmul.f32 %v4346_v12, %v955_v36  ;;  %v4391_v50 = vpop.eup %3440  ;;  %v1035_v5 = vmul.f32 %v3790_v61, %v1024_v4  ;;  %v1274_v32 = vsub.f32 1.5, %v1273_v40  ;;  %v4399_v3 = vadd.f32 1e-06, %v934_v53 }
 0x3a3   : > { %6007 = vst [vmem:[#allocation24_spill] sm:$0xff] %v4394_v24  ;;  %v931_v49 = vmul.f32 %v4131_v42, %v3813_v16  ;;  %v4403_v63 = vadd.f32 1e-06, %v1259_v25  ;;  %v4406_v44 = vmul.f32 %v781_v0, %v4247_v9  ;;  %v1281_v36 = vmul.f32 %v4391_v50, %v4344_v60 }
 0x3a4   : > { %v957_v47 = vmul.f32 0.5, %v956_v13  ;;  %v4412_v35 = vadd.f32 1e-06, %v930_v22  ;;  %v777_v31 = vmul.f32 0.5, %v769_v38  ;;  %v770_v26 = vadd.f32 1.0, %v3439_v18 }
 0x3a5   : > { %6008 = vst [vmem:[#allocation25_spill] sm:$0xff] %v4406_v44  ;;  %vm1277_vm2 = vweird.f32 %v4326_v6  ;;  %v755_v23 = vmul.f32 0.7978846, %v747_v34  ;;  %v743_v42 = vmul.f32 0.044715, %v735_v56  ;;  %v750_v2 = vadd.f32 %v742_v15, %v4331_v45 }
 0x3a6   : > { %v4419_v9 = vadd.f32 %v3804_v7, %v1035_v5  ;;  %v1275_v4 = vmul.f32 %v4326_v6, %v1274_v32  ;;  %3446 = vrsqrt.f32 %v4399_v3  ;;  %v4423_v40 = vadd.f32 1e-06, %v931_v49 }
 0x3a7   : > { %v958_v13 = vsub.f32 1.5, %v957_v47  ;;  %3448 = vrsqrt.f32 %v4403_v63  ;;  %vm1276_vm3 = vweird.f32 %v4295_v1  ;;  %v1260_v25 = vmul.f32 %v4125_v52, %v3813_v16 }
 0x3a8   : > { %v1282_v0 = vmul.f32 %v4391_v50, %v1281_v36  ;;  %3450 = vrsqrt.f32 %v4412_v35  ;;  %vm4435_vm4 = vmor %vm1276_vm3, %vm1277_vm2  ;;  %v751_v38 = vadd.f32 %v743_v42, %v4353_v20  ;;  %v758_v1 = vmul.f32 0.7978846, %v750_v2 }
 0x3a9   : > { %1695 = vrot.lane.b32.xlu1 %v4224_v46, %s3584_s26  ;;  %v985_v46 = vmul.f32 %v4340_v8, %v4310_v21  ;;  %3452 = vtanh.f32 %v755_v23  ;;  %v1054_v52 = vmul.f32 %v4419_v9, %v4419_v9  ;;  %v1279_v34 = vsel %vm4435_vm4, %v4326_v6, %v1275_v4 }
 0x3aa   : > { %vm991_vm5 = vweird.f32 %v4340_v8  ;;  %3454 = vrsqrt.f32 %v4423_v40  ;;  %v959_v5 = vmul.f32 %v4346_v12, %v958_v13  ;;  %vm961_vm6 = vweird.f32 %v4346_v12 }
 0x3ab   : > { %v986_v58 = vmul.f32 %v4340_v8, %v985_v46  ;;  %v4408_v46 = vpop.eup %3442  ;;  %vm990_vm7 = vweird.f32 %v4310_v21  ;;  %v4456_v49 = vadd.f32 1e-06, %v1260_v25  ;;  %v1256_v6 = vmul.f32 %v4139_v51, %v3813_v16 }
 0x3ac   : > { %v4416_v39 = vpop.eup %3444  ;;  %vm4462_vm8 = vmor %vm990_vm7, %vm991_vm5  ;;  %vm960_vm9 = vweird.f32 %v4313_v19  ;;  %v4469_v42 = vmul.f32 %v777_v31, %v4266_v29  ;;  %v759_v21 = vmul.f32 0.7978846, %v751_v38  ;;  %v1350_v4 = vmul.f32 %v1279_v34, %v3931_v27 }
 0x3ad   : > { %v987_v48 = vmul.f32 0.5, %v986_v58  ;;  %v995_v58 = vmul.f32 %v4408_v46, %v4362_v55  ;;  %v1311_v22 = vmul.f32 %v4416_v39, %v4372_v33  ;;  %v4453_v32 = vpop.eup %3446  ;;  %vm4474_vm10 = vmor %vm960_vm9, %vm961_vm6  ;;  %3456 = vtanh.f32 %v758_v1 }
 0x3ae   : > { %v4460_v47 = vpop.eup %3448  ;;  %v1005_v31 = vmul.f32 %v4453_v32, %v4399_v3  ;;  %v963_v27 = vsel %vm4474_vm10, %v4346_v12, %v959_v5  ;;  %3458 = vrsqrt.f32 %v4456_v49  ;;  %v4494_v18 = vadd.f32 1e-06, %v1256_v6 }
 0x3af   : > { %v988_v53 = vsub.f32 1.5, %v987_v48  ;;  %v996_v15 = vmul.f32 %v4408_v46, %v995_v58  ;;  %v1283_v48 = vmul.f32 0.5, %v1282_v0  ;;  %v1312_v23 = vmul.f32 %v4416_v39, %v1311_v22  ;;  %v4471_v2 = vpop.eup %3450 }
 0x3b0   : > { %v4479_v58 = vmul.f32 0.5, %v770_v26  ;;  %v3453_v13 = vpop.eup %3452  ;;  %v1321_v26 = vmul.f32 %v4460_v47, %v4403_v63  ;;  %v1257_v38 = vmul.f32 %v4137_v30, %v3813_v16  ;;  %3460 = vtanh.f32 %v759_v21 }
 0x3b1   : > { %v989_v56 = vmul.f32 %v4340_v8, %v988_v53  ;;  %v1062_v53 = vmul.f32 %v1054_v52, %v4419_v9  ;;  %v997_v19 = vmul.f32 0.5, %v996_v15  ;;  %v4489_v25 = vpop.eup %3454  ;;  %v1284_v0 = vsub.f32 1.5, %v1283_v48 }
 0x3b2   : > { %6015 = vst [vmem:[#allocation26_spill] sm:$0xff] %v4479_v58  ;;  %v1313_v22 = vmul.f32 0.5, %v1312_v23  ;;  %v1361_v12 = vmul.f32 %v3794_v62, %v1350_v4  ;;  %v1025_v1 = vmul.f32 %v963_v27, %v3905_v10  ;;  %v4502_v34 = vadd.f32 1.0, %v3453_v13 }
 0x3b3   : > { %v993_v29 = vsel %vm4462_vm8, %v4340_v8, %v989_v56  ;;  %v965_v8 = vmul.f32 %v4471_v2, %v4412_v35  ;;  %v1070_v52 = vmul.f32 0.044715, %v1062_v53  ;;  %v998_v15 = vsub.f32 1.5, %v997_v19  ;;  %v4508_v6 = vpop.eup %3456 }
 0x3b4   : > { %6016 = vst [vmem:[#allocation27_spill] sm:$0xff] %v4502_v34  ;;  %v1028_v56 = vmul.f32 %v993_v29, %v3946_v37  ;;  %v1006_v5 = vmul.f32 %v4453_v32, %v1005_v31  ;;  %v975_v48 = vmul.f32 %v4489_v25, %v4423_v40  ;;  %v1322_v30 = vmul.f32 %v4460_v47, %v1321_v26  ;;  %v4519_v21 = vpop.eup %3458 }
 0x3b5   : > { %6017 = vst [vmem:[#allocation28_spill] sm:$0xff] %v4508_v6  ;;  %v1285_v36 = vmul.f32 %v4391_v50, %v1284_v0  ;;  %vm1287_vm11 = vweird.f32 %v4391_v50  ;;  %3462 = vrsqrt.f32 %v4494_v18  ;;  %v1314_v10 = vsub.f32 1.5, %v1313_v22 }
 0x3b6   : > { %vm1000_vm12 = vweird.f32 %v4362_v55  ;;  %v966_v37 = vmul.f32 %v4471_v2, %v965_v8  ;;  %v4516_v23 = vadd.f32 1e-06, %v1257_v38  ;;  %v4522_v4 = vadd.f32 %v3811_v14, %v1361_v12  ;;  %v4527_v13 = vpop.eup %3460 }
 0x3b7   : > { %v1036_v51 = vmul.f32 %v3790_v61, %v1025_v1  ;;  %vm1286_vm13 = vweird.f32 %v4344_v60  ;;  %v1078_v53 = vadd.f32 %v1070_v52, %v4419_v9  ;;  %6018 = vst [vmem:[#allocation29_spill] sm:$0xff] %v4527_v13  ;;  %v1039_v29 = vmul.f32 %v3790_v61, %v1028_v56 }
 0x3b8   : > { %v999_v19 = vmul.f32 %v4408_v46, %v998_v15  ;;  %vm1001_vm14 = vweird.f32 %v4408_v46  ;;  %vm4534_vm15 = vmor %vm1286_vm13, %vm1287_vm11  ;;  %v976_v27 = vmul.f32 %v4489_v25, %v975_v48  ;;  %vm1317_vm2 = vweird.f32 %v4416_v39 }
 0x3b9   : > { %v1007_v60 = vmul.f32 0.5, %v1006_v5  ;;  %v1323_v26 = vmul.f32 0.5, %v1322_v30  ;;  %v1289_v0 = vsel %vm4534_vm15, %v4391_v50, %v1285_v36  ;;  %v1315_v22 = vmul.f32 %v4416_v39, %v1314_v10  ;;  %vm4552_vm4 = vmor %vm1000_vm12, %vm1001_vm14 }
 0x3ba   : > { %v1331_v8 = vmul.f32 %v4519_v21, %v4456_v49  ;;  %v967_v38 = vmul.f32 0.5, %v966_v37  ;;  %3464 = vrsqrt.f32 %v4516_v23  ;;  %vm1316_vm3 = vweird.f32 %v4372_v33 }
 0x3bb   : > { %v4547_v12 = vpop.eup %3462  ;;  %v4557_v50 = vadd.f32 %v3804_v7, %v1036_v51  ;;  %v1086_v52 = vmul.f32 0.7978846, %v1078_v53  ;;  %v1380_v56 = vmul.f32 %v4522_v4, %v4522_v4  ;;  %v4562_v15 = vadd.f32 %v3804_v7, %v1039_v29  ;;  %vm4570_vm5 = vmor %vm1316_vm3, %vm1317_vm2 }
 0x3bc   : > { %v1003_v33 = vsel %vm4552_vm4, %v4408_v46, %v999_v19  ;;  %v1351_v55 = vmul.f32 %v1289_v0, %v3916_v17  ;;  %v977_v5 = vmul.f32 0.5, %v976_v27  ;;  %v1008_v30 = vsub.f32 1.5, %v1007_v60  ;;  %v4597_v0 = vpop.xlane.xlu0 %1560 }
 0x3bd   : > { %vm1010_vm6 = vweird.f32 %v4399_v3  ;;  %v1324_v36 = vsub.f32 1.5, %v1323_v26  ;;  %vm1326_vm7 = vweird.f32 %v4403_v63  ;;  %v1319_v10 = vsel %vm4570_vm5, %v4416_v39, %v1315_v22 }
 0x3be   : > { %v1332_v46 = vmul.f32 %v4519_v21, %v1331_v8  ;;  %v968_v17 = vsub.f32 1.5, %v967_v38  ;;  %v1291_v37 = vmul.f32 %v4547_v12, %v4494_v18  ;;  %v1029_v51 = vmul.f32 %v1003_v33, %v3934_v28 }
 0x3bf   : > { %v1055_v53 = vmul.f32 %v4557_v50, %v4557_v50  ;;  %3466 = vtanh.f32 %v1086_v52  ;;  %v1388_v29 = vmul.f32 %v1380_v56, %v4522_v4  ;;  %v1058_v39 = vmul.f32 %v4562_v15, %v4562_v15 }
 0x3c0   : > { %v4587_v19 = vpop.eup %3464  ;;  %vm1011_vm8 = vweird.f32 %v4453_v32  ;;  %v1362_v31 = vmul.f32 %v3794_v62, %v1351_v55  ;;  %v978_v27 = vsub.f32 1.5, %v977_v5  ;;  %v1354_v60 = vmul.f32 %v1319_v10, %v3962_v54  ;;  %v6035_v54 = vld [vmem:[#allocation7_spill] sm:$0xff] }
 0x3c1   : > { %v1009_v28 = vmul.f32 %v4453_v32, %v1008_v30  ;;  %v1325_v26 = vmul.f32 %v4460_v47, %v1324_v36  ;;  %vm1327_vm9 = vweird.f32 %v4460_v47  ;;  %v1333_v22 = vmul.f32 0.5, %v1332_v46  ;;  %vm4605_vm11 = vmor %vm1010_vm6, %vm1011_vm8 }
 0x3c2   : > { %v969_v8 = vmul.f32 %v4471_v2, %v968_v17  ;;  %vm971_vm10 = vweird.f32 %v4471_v2  ;;  %v1292_v38 = vmul.f32 %v4547_v12, %v1291_v37  ;;  %v1040_v1 = vmul.f32 %v3790_v61, %v1029_v51  ;;  %vm4615_vm13 = vmor %vm1326_vm7, %vm1327_vm9 }
 0x3c3   : > { %vm970_vm12 = vweird.f32 %v4412_v35  ;;  %v1301_v52 = vmul.f32 %v4587_v19, %v4516_v23  ;;  %v1063_v56 = vmul.f32 %v1055_v53, %v4557_v50  ;;  %v4620_v55 = vadd.f32 %v3811_v14, %v1362_v31  ;;  %v6029_v35 = vld [vmem:[#allocation19_spill] sm:$0xff] }
 0x3c4   : > { %v979_v3 = vmul.f32 %v4489_v25, %v978_v27  ;;  %vm981_vm14 = vweird.f32 %v4489_v25  ;;  %v935_v5 = vmul.f32 %v6029_v35, %v3813_v16  ;;  %v1365_v30 = vmul.f32 %v3794_v62, %v1354_v60  ;;  %vm4635_vm15 = vmor %vm970_vm12, %vm971_vm10  ;;  %v6033_v60 = vld [vmem:[#allocation4_spill] sm:$0xff]  ;;  %v1570_v33 = vpop.xlane.xlu0 %1569 }
 0x3c5   : > { %v3467_v48 = vpop.eup %3466  ;;  %v1013_v63 = vsel %vm4605_vm11, %v4453_v32, %v1009_v28  ;;  %v1329_v36 = vsel %vm4615_vm13, %v4460_v47, %v1325_v26  ;;  %v1396_v46 = vmul.f32 0.044715, %v1388_v29  ;;  %v1334_v17 = vsub.f32 1.5, %v1333_v22  ;;  %v6032_v29 = vld [vmem:[#allocation2_spill] sm:$0xff]  ;;  %v6034_v26 = vld [vmem:[#allocation3_spill] sm:$0xff] }
 0x3c6   : > { %v973_v37 = vsel %vm4635_vm15, %v4471_v2, %v969_v8  ;;  %vm980_vm2 = vweird.f32 %v4423_v40  ;;  %v1293_v51 = vmul.f32 0.5, %v1292_v38  ;;  %v4646_v32 = vadd.f32 %v3804_v7, %v1040_v1 }
 0x3c7   : > { %vm1336_vm3 = vweird.f32 %v4456_v49  ;;  %vm982_vm4 = vmor %vm980_vm2, %vm981_vm14  ;;  %v1302_v47 = vmul.f32 %v4587_v19, %v1301_v52  ;;  %v1071_v53 = vmul.f32 0.044715, %v1063_v56  ;;  %v1355_v31 = vmul.f32 %v1329_v36, %v6032_v29 }
 0x3c8   : > { %v983_v2 = vsel %vm982_vm4, %v4489_v25, %v979_v3  ;;  %v4654_v40 = vadd.f32 1e-06, %v935_v5  ;;  %v1381_v57 = vmul.f32 %v4620_v55, %v4620_v55  ;;  %v4659_v27 = vadd.f32 %v3811_v14, %v1365_v30 }
 0x3c9   : > { %v1030_v28 = vmul.f32 %v1013_v63, %v6033_v60  ;;  %v1026_v22 = vmul.f32 %v973_v37, %v6034_v26  ;;  %v1404_v8 = vadd.f32 %v1396_v46, %v4522_v4  ;;  %v1335_v38 = vmul.f32 %v4519_v21, %v1334_v17  ;;  %v1564_v63 = vpop.xlane.xlu2 %1563  ;;  %v6038_v60 = vld [vmem:[#allocation6_spill] sm:$0xff] }
 0x3ca   : > { %vm1337_vm5 = vweird.f32 %v4519_v21  ;;  %v1294_v1 = vsub.f32 1.5, %v1293_v51  ;;  %v1261_v25 = vmul.f32 %v4188_v59, %v3813_v16  ;;  %v1027_v52 = vmul.f32 %v983_v2, %v6035_v54 }
 0x3cb   : > { %v1303_v56 = vmul.f32 0.5, %v1302_v47  ;;  %v1079_v3 = vadd.f32 %v1071_v53, %v4557_v50  ;;  %v1066_v35 = vmul.f32 %v1058_v39, %v4562_v15  ;;  %v1059_v5 = vmul.f32 %v4646_v32, %v4646_v32  ;;  %vm4679_vm6 = vmor %vm1336_vm3, %vm1337_vm5 }
 0x3cc   : > { %v1366_v30 = vmul.f32 %v3794_v62, %v1355_v31  ;;  %3468 = vrsqrt.f32 %v4654_v40  ;;  %v1389_v36 = vmul.f32 %v1381_v57, %v4620_v55  ;;  %v1041_v59 = vmul.f32 %v3790_v61, %v1030_v28  ;;  %v1579_v10 = vpop.xlane.xlu0 %1578 }
 0x3cd   : > { %v1037_v39 = vmul.f32 %v3790_v61, %v1026_v22  ;;  %v1102_v46 = vadd.f32 1.0, %v3467_v48  ;;  %v1412_v17 = vmul.f32 0.7978846, %v1404_v8  ;;  %v1339_v37 = vsel %vm4679_vm6, %v4519_v21, %v1335_v38  ;;  %v1558_v38 = vpop.xlane.xlu1 %1557 }
 0x3ce   : > { %v1295_v51 = vmul.f32 %v4547_v12, %v1294_v1  ;;  %vm1297_vm7 = vweird.f32 %v4547_v12  ;;  %v4689_v47 = vadd.f32 1e-06, %v1261_v25  ;;  %v1038_v49 = vmul.f32 %v3790_v61, %v1027_v52 }
 0x3cf   : > { %v1304_v53 = vsub.f32 1.5, %v1303_v56  ;;  %v1087_v29 = vmul.f32 0.7978846, %v1079_v3  ;;  %v1074_v31 = vmul.f32 0.044715, %v1066_v35  ;;  %v4693_v2 = vadd.f32 %v3811_v14, %v1366_v30 }
 0x3d0   : > { %vm1296_vm8 = vweird.f32 %v4494_v18  ;;  %v1397_v48 = vmul.f32 0.044715, %v1389_v36  ;;  %v1067_v57 = vmul.f32 %v1059_v5, %v4646_v32  ;;  %v4698_v21 = vadd.f32 %v3804_v7, %v1041_v59  ;;  %v6043_v5 = vld [vmem:[#allocation5_spill] sm:$0xff] }
 0x3d1   : > { %v1356_v28 = vmul.f32 %v1339_v37, %v6038_v60  ;;  %v4702_v26 = vadd.f32 %v3804_v7, %v1037_v39  ;;  %vm4704_vm9 = vmor %vm1296_vm8, %vm1297_vm7  ;;  %3470 = vtanh.f32 %v1412_v17  ;;  %vm1307_vm10 = vweird.f32 %v4587_v19  ;;  %v1573_v37 = vpop.xlane.xlu2 %1572 }
 0x3d2   : > { %v4708_v8 = vpop.eup %3468  ;;  %v1299_v18 = vsel %vm4704_vm9, %v4547_v12, %v1295_v51  ;;  %3472 = vrsqrt.f32 %v4689_v47  ;;  %v1384_v1 = vmul.f32 %v4659_v27, %v4659_v27  ;;  %v4718_v25 = vadd.f32 %v3804_v7, %v1038_v49 }
 0x3d3   : > { %6039 = vst [vmem:[#allocation19_spill] sm:$0xff] %v4702_v26  ;;  %v1305_v54 = vmul.f32 %v4587_v19, %v1304_v53  ;;  %3474 = vtanh.f32 %v1087_v29  ;;  %v1082_v52 = vadd.f32 %v1074_v31, %v4562_v15  ;;  %vm1306_vm11 = vweird.f32 %v4516_v23 }
 0x3d4   : > { %6042 = vst [vmem:[#allocation2_spill] sm:$0xff] %v4718_v25  ;;  %v1405_v12 = vadd.f32 %v1397_v48, %v4620_v55  ;;  %v1075_v56 = vmul.f32 0.044715, %v1067_v57  ;;  %v1385_v3 = vmul.f32 %v4693_v2, %v4693_v2  ;;  %v4727_v35 = vmul.f32 %v3794_v62, %v1356_v28  ;;  %vm4737_vm12 = vmor %vm1306_vm11, %vm1307_vm10 }
 0x3d5   : > { %v1352_v30 = vmul.f32 %v1299_v18, %v6043_v5  ;;  %v1015_v36 = vmul.f32 %v4708_v8, %v4654_v40  ;;  %v1580_v59 = vmul.f32 %v1558_v38, %v3813_v16  ;;  %v1056_v23 = vmul.f32 %v4702_v26, %v4702_v26 }
 0x3d6   : > { %v1584_v17 = vmul.f32 %v1570_v33, %v3813_v16  ;;  %v1110_v51 = vmul.f32 0.5, %v1102_v46  ;;  %v1392_v49 = vmul.f32 %v1384_v1, %v4659_v27  ;;  %v1057_v29 = vmul.f32 %v4718_v25, %v4718_v25 }
 0x3d7   : > { %v3471_v53 = vpop.eup %3470  ;;  %v1309_v31 = vsel %vm4737_vm12, %v4587_v19, %v1305_v54  ;;  %v1582_v48 = vmul.f32 %v1564_v63, %v3813_v16  ;;  %v1090_v57 = vmul.f32 0.7978846, %v1082_v52  ;;  %v1587_v28 = vmul.f32 %v1579_v10, %v3813_v16  ;;  %v6046_v63 = vld [vmem:[#allocation8_spill] sm:$0xff] }
 0x3d8   : > { %v4749_v60 = vpop.eup %3472  ;;  %v1413_v33 = vmul.f32 0.7978846, %v1405_v12  ;;  %v1083_v46 = vadd.f32 %v1075_v56, %v4646_v32  ;;  %v1393_v22 = vmul.f32 %v1385_v3, %v4693_v2  ;;  %v1363_v38 = vmul.f32 %v3794_v62, %v1352_v30 }
 0x3d9   : > { %v3475_v18 = vpop.eup %3474  ;;  %v1016_v1 = vmul.f32 %v4708_v8, %v1015_v36  ;;  %v4756_v5 = vadd.f32 1e-06, %v1580_v59  ;;  %v1585_v19 = vmul.f32 %v1573_v37, %v3813_v16  ;;  %v1353_v54 = vmul.f32 %v1309_v31, %v6046_v63 }
 0x3da   : > { %v1581_v52 = vmul.f32 %v4597_v0, %v3813_v16  ;;  %v4762_v10 = vadd.f32 1e-06, %v1584_v17  ;;  %v1400_v12 = vmul.f32 0.044715, %v1392_v49  ;;  %v1341_v56 = vmul.f32 %v4749_v60, %v4689_v47 }
 0x3db   : > { %v4766_v3 = vadd.f32 1e-06, %v1582_v48  ;;  %v1428_v30 = vadd.f32 1.0, %v3471_v53  ;;  %3476 = vtanh.f32 %v1090_v57  ;;  %v4768_v36 = vadd.f32 1e-06, %v1587_v28 }
 0x3dc   : > { %v1103_v59 = vadd.f32 1.0, %v3475_v18  ;;  %3478 = vtanh.f32 %v1413_v33  ;;  %v1401_v39 = vmul.f32 0.044715, %v1393_v22  ;;  %v4771_v37 = vadd.f32 %v3811_v14, %v1363_v38 }
 0x3dd   : > { %v1017_v31 = vmul.f32 0.5, %v1016_v1  ;;  %3480 = vrsqrt.f32 %v4756_v5  ;;  %v4774_v0 = vadd.f32 1e-06, %v1585_v19  ;;  %v1364_v17 = vmul.f32 %v3794_v62, %v1353_v54 }
 0x3de   : > { %v4777_v49 = vadd.f32 1e-06, %v1581_v52  ;;  %3482 = vrsqrt.f32 %v4762_v10  ;;  %v1408_v53 = vadd.f32 %v1400_v12, %v4659_v27  ;;  %v1342_v48 = vmul.f32 %v4749_v60, %v1341_v56 }
 0x3df   : > { %3484 = vrsqrt.f32 %v4766_v3  ;;  %v1118_v57 = vmul.f32 %v1110_v51, %v4419_v9  ;;  %v1091_v28 = vmul.f32 0.7978846, %v1083_v46  ;;  %v1111_v33 = vmul.f32 0.5, %v1103_v59 }
 0x3e0   : > { %3486 = vrsqrt.f32 %v4768_v36  ;;  %v1436_v22 = vmul.f32 0.5, %v1428_v30  ;;  %v1409_v18 = vadd.f32 %v1401_v39, %v4693_v2  ;;  %v1018_v1 = vsub.f32 1.5, %v1017_v31 }
 0x3e1   : > { %v3477_v38 = vpop.eup %3476  ;;  %3488 = vrsqrt.f32 %v4774_v0  ;;  %v1064_v19 = vmul.f32 %v1056_v23, %v4702_v26  ;;  %v1065_v63 = vmul.f32 %v1057_v29, %v4718_v25  ;;  %v4790_v52 = vadd.f32 %v3811_v14, %v1364_v17 }
 0x3e2   : > { %v3479_v54 = vpop.eup %3478  ;;  %3490 = vrsqrt.f32 %v4777_v49  ;;  %v1416_v9 = vmul.f32 0.7978846, %v1408_v53  ;;  %v1382_v51 = vmul.f32 %v4771_v37, %v4771_v37  ;;  %v1060_v12 = vmul.f32 %v4698_v21, %v4698_v21 }
 0x3e3   : > { %v4795_v46 = vpop.eup %3480  ;;  %v4801_v23 = vadd.f32 %v3811_v14, %v4727_v35  ;;  %v1343_v29 = vmul.f32 0.5, %v1342_v48  ;;  %v4805_v56 = vsel %vm520_vm1, %v4389_v41, %v1118_v57  ;;  %v4810_v59 = vmul.f32 %v1111_v33, %v4557_v50 }
 0x3e4   : > { %v4807_v30 = vpop.eup %3482  ;;  %v4813_v39 = vmul.f32 %v1436_v22, %v4522_v4  ;;  %3492 = vtanh.f32 %v1091_v28  ;;  %v1417_v31 = vmul.f32 0.7978846, %v1409_v18  ;;  %v1019_v35 = vmul.f32 %v4708_v8, %v1018_v1  ;;  %v3300_v4 = vld [vmem:[%s5956_s6 + $0x8] sm:$0xff] }
 0x3e5   : > { %v4815_v17 = vpop.eup %3484  ;;  %vm1021_vm13 = vweird.f32 %v4708_v8  ;;  %v1072_v48 = vmul.f32 0.044715, %v1064_v19  ;;  %v1073_v41 = vmul.f32 0.044715, %v1065_v63  ;;  %3494 = vtanh.f32 %v1416_v9  ;;  %1846 = vmatpush.bf16.msra.mxu1 %v3300_v4  ;;  %3341 = vmatpush.bf16.msra.mxu3 %v3300_v4 }
 0x3e6   : > { %v4819_v57 = vpop.eup %3486  ;;  %v1383_v50 = vmul.f32 %v4790_v52, %v4790_v52  ;;  %v1390_v28 = vmul.f32 %v1382_v51, %v4771_v37  ;;  %vm1020_vm14 = vweird.f32 %v4654_v40  ;;  %v1344_v22 = vsub.f32 1.5, %v1343_v29 }
 0x3e7   : > { %v4828_v33 = vpop.eup %3488  ;;  %v4831_v18 = vadd.f32 1.0, %v3477_v38  ;;  %v1068_v1 = vmul.f32 %v1060_v12, %v4698_v21  ;;  %vm4838_vm15 = vmor %vm1020_vm14, %vm1021_vm13  ;;  %v1597_v9 = vmul.f32 %v4795_v46, %v4756_v5  ;;  %v1637_v51 = vmul.f32 %v4807_v30, %v4762_v10  ;;  %v3299_v38 = vld [vmem:[%s5956_s6] sm:$0xff] }
 0x3e8   : > { %v4834_v19 = vpop.eup %3490  ;;  %3496 = vtanh.f32 %v1417_v31  ;;  %v1023_v12 = vsel %vm4838_vm15, %v4708_v8, %v1019_v35  ;;  %v1617_v29 = vmul.f32 %v4815_v17, %v4766_v3  ;;  %v1647_v4 = vmul.f32 %v4828_v33, %v4774_v0 }
 0x3e9   : > { %v4862_v43 = vadd.f32 1.0, %v3479_v54  ;;  %v1081_v31 = vadd.f32 %v1073_v41, %v4718_v25  ;;  %v1345_v8 = vmul.f32 %v4749_v60, %v1344_v22  ;;  %vm1347_vm2 = vweird.f32 %v4749_v60  ;;  %1847 = vmatpush.bf16.msra.mxu1 %v3299_v38  ;;  %3342 = vmatpush.bf16.msra.mxu3 %v3299_v38 }
 0x3ea   : > { %v3493_v45 = vpop.eup %3492  ;;  %v1607_v35 = vmul.f32 %v4834_v19, %v4777_v49  ;;  %v1391_v63 = vmul.f32 %v1383_v50, %v4790_v52  ;;  %v1598_v11 = vmul.f32 %v4795_v46, %v1597_v9  ;;  %v1638_v54 = vmul.f32 %v4807_v30, %v1637_v51 }
 0x3eb   : > { %v1398_v41 = vmul.f32 0.044715, %v1390_v28  ;;  %vm1346_vm3 = vweird.f32 %v4689_v47  ;;  %v1618_v22 = vmul.f32 %v4815_v17, %v1617_v29  ;;  %v1076_v13 = vmul.f32 0.044715, %v1068_v1 }
 0x3ec   : > { %vm4882_vm4 = vmor %vm1346_vm3, %vm1347_vm2  ;;  %v1648_v9 = vmul.f32 %v4828_v33, %v1647_v4  ;;  %v4888_v51 = vadd.f32 1.0, %v3493_v45  ;;  %v1608_v1 = vmul.f32 %v4834_v19, %v1607_v35  ;;  %v4894_v29 = vmul.f32 0.044715, %v1391_v63 }
 0x3ed   : > { %v1349_v38 = vsel %vm4882_vm4, %v4749_v60, %v1345_v8  ;;  %v1599_v44 = vmul.f32 0.5, %v1598_v11  ;;  %v1639_v4 = vmul.f32 0.5, %v1638_v54  ;;  %v1406_v60 = vadd.f32 %v1398_v41, %v4771_v37 }
 0x3ee   : > { %v4907_v35 = vadd.f32 %v1076_v13, %v4698_v21  ;;  %vm1603_vm5 = vweird.f32 %v4795_v46  ;;  %vm1602_vm6 = vweird.f32 %v4756_v5  ;;  %vm1643_vm7 = vweird.f32 %v4807_v30 }
 0x3ef   : > { %v1600_v63 = vsub.f32 1.5, %v1599_v44  ;;  %v1640_v54 = vsub.f32 1.5, %v1639_v4  ;;  %vm1642_vm8 = vweird.f32 %v4762_v10  ;;  %vm1623_vm9 = vweird.f32 %v4815_v17  ;;  %vm4922_vm10 = vmor %vm1602_vm6, %vm1603_vm5 }
 0x3f0   : > { %vm1622_vm11 = vweird.f32 %v4766_v3  ;;  %vm1673_vm12 = vweird.f32 %v4819_v57  ;;  %vm4931_vm13 = vmor %vm1642_vm8, %vm1643_vm7  ;;  %vm1653_vm14 = vweird.f32 %v4828_v33  ;;  %vm1672_vm2 = vweird.f32 %v4768_v36 }
 0x3f1   : > { %vm4943_vm15 = vmor %vm1622_vm11, %vm1623_vm9  ;;  %vm1613_vm4 = vweird.f32 %v4834_v19  ;;  %vm1652_vm6 = vweird.f32 %v4774_v0  ;;  %vm1612_vm7 = vweird.f32 %v4777_v49  ;;  %v1092_v3 = vmul.f32 0.7978846, %v4907_v35 }
 0x3f2   : > { %vm4955_vm5 = vmor %vm1672_vm2, %vm1673_vm12  ;;  %vm1795_vm2 = vcmask 195584  }
 0x3f3   : > { %vm4966_vm8 = vmor %vm1652_vm6, %vm1653_vm14  ;;  %vm3018_vm6 = vcmask 39936  }
 0x3f4   : > { %vm4988_vm11 = vmor %vm1612_vm7, %vm1613_vm4  ;;  %vm2992_vm4 = vcmask 15360   ;;  %vm3027_vm7 = vcmask 48128  }
 0x3fb   : > { %v1567_v53 = vpop.xlane.xlu1 %1566 }
 0x3fc   : > { %v1583_v20 = vmul.f32 %v1567_v53, %v3813_v16  ;;  %v1667_v53 = vmul.f32 %v4819_v57, %v4768_v36 }
 0x3fe   : > { %v4846_v40 = vadd.f32 1e-06, %v1583_v20  ;;  %v1080_v20 = vadd.f32 %v1072_v48, %v4702_v26  ;;  %v4870_v48 = vpop.eup %3494  ;;  %v6049_v26 = vld [vmem:[#allocation9_spill] sm:$0xff]  ;;  %v1668_v25 = vmul.f32 %v4819_v57, %v1667_v53 }
 0x3ff   : > { %v1031_v58 = vmul.f32 %v1023_v12, %v6049_v26  ;;  %v4878_v50 = vpop.eup %3496  ;;  %v1089_v12 = vmul.f32 0.7978846, %v1081_v31  ;;  %v1649_v31 = vmul.f32 0.5, %v1648_v9 }
 0x400   : > { %3498 = vrsqrt.f32 %v4846_v40  ;;  %v1088_v47 = vmul.f32 0.7978846, %v1080_v20  ;;  %v1669_v45 = vmul.f32 0.5, %v1668_v25  ;;  %v6052_v20 = vld [vmem:[#allocation10_spill] sm:$0xff]  ;;  %vm1632_vm9 = vweird.f32 %v4846_v40 }
 0x401   : > { %v1042_v6 = vmul.f32 %v3790_v61, %v1031_v58  ;;  %v1357_v8 = vmul.f32 %v1349_v38, %v6052_v20  ;;  %v1609_v61 = vmul.f32 0.5, %v1608_v1  ;;  %v1386_v58 = vmul.f32 %v4801_v23, %v4801_v23 }
 0x402   : > { %v1650_v9 = vsub.f32 1.5, %v1649_v31 }
 0x403   : > { %v1576_v34 = vpop.xlane.xlu1 %1575  ;;  %v4913_v25 = vadd.f32 %v3804_v7, %v1042_v6  ;;  %v1368_v13 = vmul.f32 %v3794_v62, %v1357_v8  ;;  %v1601_v6 = vmul.f32 %v4795_v46, %v1600_v63  ;;  %v1641_v62 = vmul.f32 %v4807_v30, %v1640_v54 }
 0x404   : > { %v1586_v28 = vmul.f32 %v1576_v34, %v3813_v16  ;;  %v1619_v16 = vmul.f32 0.5, %v1618_v22  ;;  %v1670_v22 = vsub.f32 1.5, %v1669_v45 }
 0x405   : > { %v1605_v36 = vsel %vm4922_vm10, %v4795_v46, %v1601_v6  ;;  %v1645_v0 = vsel %vm4931_vm13, %v4807_v30, %v1641_v62  ;;  %v5000_v54 = vadd.f32 %v3811_v14, %v1368_v13 }
 0x406   : > { %v4896_v53 = vpop.eup %3498  ;;  %v4899_v24 = vadd.f32 1e-06, %v1586_v28  ;;  %v1620_v41 = vsub.f32 1.5, %v1619_v16  ;;  %v1610_v28 = vsub.f32 1.5, %v1609_v61  ;;  %v1671_v1 = vmul.f32 %v4819_v57, %v1670_v22 }
 0x407   : > { %v1627_v34 = vmul.f32 %v4896_v53, %v4846_v40  ;;  %v1651_v16 = vmul.f32 %v4828_v33, %v1650_v9  ;;  %vm1633_vm3 = vweird.f32 %v4896_v53  ;;  %v1414_v61 = vmul.f32 0.7978846, %v1406_v60 }
 0x408   : > { %3500 = vrsqrt.f32 %v4899_v24  ;;  %v1621_v38 = vmul.f32 %v4815_v17, %v1620_v41  ;;  %v1675_v46 = vsel %vm4955_vm5, %v4819_v57, %v1671_v1  ;;  %vm4980_vm10 = vmor %vm1632_vm9, %vm1633_vm3  ;;  %v1061_v40 = vmul.f32 %v4913_v25, %v4913_v25  ;;  %v6073_v1 = vld [vmem:[#allocation11_spill] sm:$0xff] }
 0x409   : > { %v1628_v11 = vmul.f32 %v4896_v53, %v1627_v34  ;;  %3502 = vtanh.f32 %v1088_v47  ;;  %v1611_v34 = vmul.f32 %v4834_v19, %v1610_v28  ;;  %v1394_v60 = vmul.f32 %v1386_v58, %v4801_v23  ;;  %v6068_v28 = vld [vmem:[#allocation15_spill] sm:$0xff]  ;;  %v6070_v47 = vld [vmem:[#allocation16_spill] sm:$0xff]  ;;  %v1685_v58 = vpop.permute.xlu2 %1684 }
 0x40a   : > { %3504 = vtanh.f32 %v1089_v12  ;;  %v1625_v49 = vsel %vm4943_vm15, %v4815_v17, %v1621_v38  ;;  %v1655_v17 = vsel %vm4966_vm8, %v4828_v33, %v1651_v16  ;;  %v6069_v33 = vld [vmem:[#allocation12_spill] sm:$0xff]  ;;  %v1683_v62 = vmul.f32 %v1675_v46, %v6070_v47  ;;  %v6072_v38 = vld [vmem:[#allocation17_spill] sm:$0xff] }
 0x40b   : > { %v1629_v26 = vmul.f32 0.5, %v1628_v11  ;;  %v1615_v41 = vsel %vm4988_vm11, %v4834_v19, %v1611_v34  ;;  %v1678_v6 = vmul.f32 %v1625_v49, %v6069_v33  ;;  %vm1662_vm13 = vweird.f32 %v4899_v24 }
 0x40c   : > { %v1677_v19 = vmul.f32 %v1615_v41, %v6073_v1  ;;  %3506 = vtanh.f32 %v1414_v61  ;;  %v1387_v34 = vmul.f32 %v5000_v54, %v5000_v54  ;;  %v1402_v20 = vmul.f32 0.044715, %v1394_v60 }
 0x40d   : > { %v1630_v7 = vsub.f32 1.5, %v1629_v26  ;;  %v6067_v26 = vld [vmem:[#allocation13_spill] sm:$0xff]  ;;  %vm1786_vm15 = vcmask 130048   ;;  %3508 = vtanh.f32 %v1092_v3  ;;  %vm2983_vm3 = vcmask 7168  }
 0x40e   : > { %v3501_v44 = vpop.eup %3500  ;;  %v1676_v9 = vmul.f32 %v1605_v36, %v6067_v26  ;;  %v1688_v31 = vmul.f32 %v1685_v58, %v1677_v19  ;;  %v1395_v1 = vmul.f32 %v1387_v34, %v5000_v54  ;;  %vm3001_vm5 = vcmask 23552  }
 0x40f   : > { %v4929_v5 = vpop.eup %3502  ;;  %v1657_v12 = vmul.f32 %v3501_v44, %v4899_v24  ;;  %v1631_v45 = vmul.f32 %v4896_v53, %v1630_v7  ;;  %vm1663_vm12 = vweird.f32 %v3501_v44  ;;  %v1680_v7 = vmul.f32 %v1645_v0, %v6068_v28 }
 0x410   : > { %v4939_v4 = vpop.eup %3504  ;;  %vm1664_vm14 = vmor %vm1662_vm13, %vm1663_vm12  ;;  %v1687_v24 = vmul.f32 %v1685_v58, %v1676_v9  ;;  %vm3036_vm8 = vcmask 56320   ;;  %vm3053_vm9 = vcmask 72704   ;;  %vm3080_vm11 = vcmask 97280  }
 0x411   : > { %v1658_v8 = vmul.f32 %v3501_v44, %v1657_v12  ;;  %v1635_v57 = vsel %vm4980_vm10, %v4896_v53, %v1631_v45  ;;  %v6071_v53 = vld [vmem:[#allocation14_spill] sm:$0xff]  ;;  %v5015_v12 = vadd.f32 %v4894_v29, %v4790_v52  ;;  %v1069_v45 = vmul.f32 %v1061_v40, %v4913_v25 }
 0x412   : > { %v1681_v10 = vmul.f32 %v1655_v17, %v6071_v53  ;;  %v1679_v14 = vmul.f32 %v1635_v57, %v6072_v38  ;;  %v1691_v0 = vmul.f32 %v1685_v58, %v1680_v7  ;;  %v1689_v29 = vmul.f32 %v1685_v58, %v1678_v6  ;;  %v5036_v41 = vpop.eup %3506 }
 0x413   : > { %v1659_v63 = vmul.f32 0.5, %v1658_v8  ;;  %v6074_v8 = vld [vmem:[#allocation18_spill] sm:$0xff]  ;;  %vm3071_vm10 = vcmask 89088   ;;  %vm3089_vm12 = vcmask 105472   ;;  %vm3098_vm13 = vcmask 113664  }
 0x414   : > { %v1690_v49 = vmul.f32 %v1685_v58, %v1679_v14  ;;  %v1692_v11 = vmul.f32 %v1685_v58, %v1681_v10 }
 0x415   : > { %v1660_v22 = vsub.f32 1.5, %v1659_v63  ;;  %v1694_v63 = vmul.f32 %v1685_v58, %v1683_v62 }
 0x417   : > { %v1661_v13 = vmul.f32 %v3501_v44, %v1660_v22 }
 0x419   : > { %v1665_v16 = vsel %vm1664_vm14, %v3501_v44, %v1661_v13  ;;  %vm3107_vm14 = vcmask 121856  }
 0x41a   : > { %v1682_v36 = vmul.f32 %v1665_v16, %v6074_v8 }
 0x41b   : > { %v1696_v46 = vpop.permute.xlu1 %1695 }
 0x41c   : > { %v1693_v61 = vmul.f32 %v1685_v58, %v1682_v36  ;;  %v5022_v30 = vadd.f32 %v1696_v46, %v1687_v24  ;;  %v5024_v35 = vadd.f32 %v1696_v46, %v1688_v31  ;;  %v5026_v44 = vadd.f32 %v1696_v46, %v1691_v0 }
 0x41d   : > { %v5028_v40 = vadd.f32 %v1696_v46, %v1692_v11  ;;  %v5030_v17 = vadd.f32 %v1696_v46, %v1689_v29  ;;  %v5032_v57 = vadd.f32 %v1696_v46, %v1690_v49  ;;  %v5034_v60 = vadd.f32 %v1696_v46, %v1694_v63 }
 0x41e   : > { %v1706_v22 = vmul.f32 %v5022_v30, %v5022_v30  ;;  %v1707_v26 = vmul.f32 %v5024_v35, %v5024_v35  ;;  %v1710_v9 = vmul.f32 %v5026_v44, %v5026_v44  ;;  %v5044_v28 = vadd.f32 %v1696_v46, %v1693_v61 }
 0x41f   : > { %v1711_v7 = vmul.f32 %v5028_v40, %v5028_v40  ;;  %v1708_v33 = vmul.f32 %v5030_v17, %v5030_v17  ;;  %v1709_v6 = vmul.f32 %v5032_v57, %v5032_v57  ;;  %v1713_v47 = vmul.f32 %v5034_v60, %v5034_v60 }
 0x420   : > { %v1714_v62 = vmul.f32 %v1706_v22, %v5022_v30  ;;  %v1715_v53 = vmul.f32 %v1707_v26, %v5024_v35  ;;  %v1718_v10 = vmul.f32 %v1710_v9, %v5026_v44  ;;  %v1712_v58 = vmul.f32 %v5044_v28, %v5044_v28 }
 0x421   : > { %v1719_v38 = vmul.f32 %v1711_v7, %v5028_v40  ;;  %v1716_v14 = vmul.f32 %v1708_v33, %v5030_v17  ;;  %v1717_v13 = vmul.f32 %v1709_v6, %v5032_v57  ;;  %v1721_v49 = vmul.f32 %v1713_v47, %v5034_v60 }
 0x422   : > { %v1722_v19 = vmul.f32 0.044715, %v1714_v62  ;;  %v1723_v16 = vmul.f32 0.044715, %v1715_v53  ;;  %v1726_v8 = vmul.f32 0.044715, %v1718_v10  ;;  %v1720_v36 = vmul.f32 %v1712_v58, %v5044_v28 }
 0x423   : > { %v1727_v24 = vmul.f32 0.044715, %v1719_v38  ;;  %v1724_v31 = vmul.f32 0.044715, %v1716_v14  ;;  %v1725_v0 = vmul.f32 0.044715, %v1717_v13  ;;  %v1410_v22 = vadd.f32 %v1402_v20, %v4801_v23 }
 0x424   : > { %v1730_v46 = vadd.f32 %v1722_v19, %v5022_v30  ;;  %v1731_v11 = vadd.f32 %v1723_v16, %v5024_v35  ;;  %v1734_v29 = vadd.f32 %v1726_v8, %v5026_v44  ;;  %v1077_v63 = vmul.f32 0.044715, %v1069_v45 }
 0x425   : > { %v1735_v34 = vadd.f32 %v1727_v24, %v5028_v40  ;;  %v1403_v61 = vmul.f32 0.044715, %v1395_v1  ;;  %v1728_v26 = vmul.f32 0.044715, %v1720_v36  ;;  %v1732_v6 = vadd.f32 %v1724_v31, %v5030_v17  ;;  %v3509_v36 = vpop.eup %3508 }
 0x426   : > { %v1738_v9 = vmul.f32 0.7978846, %v1730_v46  ;;  %v1739_v7 = vmul.f32 0.7978846, %v1731_v11  ;;  %v1742_v33 = vmul.f32 0.7978846, %v1734_v29  ;;  %v1733_v47 = vadd.f32 %v1725_v0, %v5032_v57 }
 0x427   : > { %v1743_v62 = vmul.f32 0.7978846, %v1735_v34  ;;  %v1729_v53 = vmul.f32 0.044715, %v1721_v49  ;;  %v1432_v10 = vadd.f32 1.0, %v4870_v48  ;;  %v1085_v58 = vadd.f32 %v1077_v63, %v4913_v25 }
 0x428   : > { %3510 = vtanh.f32 %v1738_v9  ;;  %v1415_v45 = vmul.f32 0.7978846, %v5015_v12  ;;  %v1433_v20 = vadd.f32 1.0, %v4878_v50  ;;  %v1418_v38 = vmul.f32 0.7978846, %v1410_v22 }
 0x429   : > { %3512 = vtanh.f32 %v1739_v7  ;;  %v1736_v14 = vadd.f32 %v1728_v26, %v5044_v28  ;;  %v1114_v13 = vmul.f32 0.5, %v4831_v18  ;;  %v1740_v1 = vmul.f32 0.7978846, %v1732_v6 }
 0x42a   : > { %3514 = vtanh.f32 %v1742_v33  ;;  %v1411_v3 = vadd.f32 %v1403_v61, %v5000_v54  ;;  %v1437_v19 = vmul.f32 0.5, %v4862_v43  ;;  %v1741_v48 = vmul.f32 0.7978846, %v1733_v47 }
 0x42b   : > { %3516 = vtanh.f32 %v1743_v62  ;;  %v1737_v12 = vadd.f32 %v1729_v53, %v5034_v60  ;;  %v1115_v16 = vmul.f32 0.5, %v4888_v51  ;;  %v1440_v8 = vmul.f32 0.5, %v1432_v10  ;;  %v6075_v62 = vld [vmem:[#allocation24_spill] sm:$0xff]  ;;  %v6076_v10 = vld [vmem:[#allocation25_spill] sm:$0xff] }
 0x42c   : > { %3518 = vtanh.f32 %v1415_v45  ;;  %v1093_v50 = vmul.f32 0.7978846, %v1085_v58  ;;  %v1787_v18 = vsel %vm1786_vm15, %v4805_v56, %v4813_v39  ;;  %v1441_v24 = vmul.f32 0.5, %v1433_v20 }
 0x42d   : > { %3520 = vtanh.f32 %v1418_v38  ;;  %v1744_v31 = vmul.f32 0.7978846, %v1736_v14  ;;  %v1779_v43 = vsel %vm520_vm1, %v4469_v42, %v4810_v59  ;;  %v1122_v49 = vmul.f32 %v1114_v13, %v4562_v15 }
 0x42e   : > { %v3511_v0 = vpop.eup %3510  ;;  %3522 = vtanh.f32 %v1740_v1  ;;  %v1419_v51 = vmul.f32 0.7978846, %v1411_v3  ;;  %v1445_v11 = vmul.f32 %v1437_v19, %v4620_v55  ;;  %v1745_v63 = vmul.f32 0.7978846, %v1737_v12 }
 0x42f   : > { %v3513_v46 = vpop.eup %3512  ;;  %v1754_v29 = vadd.f32 1.0, %v3511_v0  ;;  %3524 = vtanh.f32 %v1741_v48  ;;  %v1123_v39 = vmul.f32 %v1115_v16, %v4646_v32  ;;  %v1448_v61 = vmul.f32 %v1440_v8, %v4659_v27 }
 0x430   : > { %v3515_v34 = vpop.eup %3514  ;;  %v1755_v56 = vadd.f32 1.0, %v3513_v46  ;;  %3526 = vtanh.f32 %v1093_v50  ;;  %v1449_v42 = vmul.f32 %v1441_v24, %v4693_v2  ;;  %v1782_v32 = vsel %vm520_vm1, %v6075_v62, %v1122_v49  ;;  %v6082_v62 = vld [vmem:[#allocation19_spill] sm:$0xff] }
 0x431   : > { %v3517_v22 = vpop.eup %3516  ;;  %v1762_v26 = vmul.f32 0.5, %v1754_v29  ;;  %v1758_v15 = vadd.f32 1.0, %v3515_v34  ;;  %3528 = vtanh.f32 %v1744_v31  ;;  %v1788_v2 = vsel %vm1786_vm15, %v1779_v43, %v1445_v11  ;;  %v6077_v43 = vld [vmem:[#allocation28_spill] sm:$0xff]  ;;  %v6079_v34 = vld [vmem:[#allocation27_spill] sm:$0xff] }
 0x432   : > { %v3519_v59 = vpop.eup %3518  ;;  %v1763_v9 = vmul.f32 0.5, %v1755_v56  ;;  %v1759_v55 = vadd.f32 1.0, %v3517_v22  ;;  %3530 = vtanh.f32 %v1419_v51  ;;  %v1783_v45 = vsel %vm520_vm1, %v6076_v10, %v1123_v39  ;;  %v6084_v10 = vld [vmem:[#allocation21_spill] sm:$0xff] }
 0x433   : > { %v3521_v7 = vpop.eup %3520  ;;  %v1770_v33 = vmul.f32 %v1762_v26, %v5022_v30  ;;  %v1766_v6 = vmul.f32 0.5, %v1758_v15  ;;  %3532 = vtanh.f32 %v1745_v63  ;;  %v1791_v30 = vsel %vm1786_vm15, %v1782_v32, %v1448_v61 }
 0x434   : > { %v3523_v27 = vpop.eup %3522  ;;  %v1771_v47 = vmul.f32 %v1763_v9, %v5024_v35  ;;  %v1767_v53 = vmul.f32 0.5, %v1759_v55  ;;  %v1104_v14 = vadd.f32 1.0, %v4929_v5  ;;  %v1792_v3 = vsel %vm1786_vm15, %v1783_v45, %v1449_v42  ;;  %v6081_v9 = vld [vmem:[#allocation26_spill] sm:$0xff] }
 0x435   : > { %v3525_v58 = vpop.eup %3524  ;;  %v1796_v20 = vsel %vm1795_vm2, %v1787_v18, %v1770_v33  ;;  %v1774_v38 = vmul.f32 %v1766_v6, %v5026_v44  ;;  %v1105_v19 = vadd.f32 1.0, %v4939_v4  ;;  %v1430_v8 = vadd.f32 1.0, %v5036_v41  ;;  %v6078_v4 = vld [vmem:[#allocation29_spill] sm:$0xff] }
 0x436   : > { %v3527_v13 = vpop.eup %3526  ;;  %v1797_v1 = vsel %vm1795_vm2, %v1788_v2, %v1771_v47  ;;  %v1775_v35 = vmul.f32 %v1767_v53, %v5028_v40  ;;  %v1431_v44 = vadd.f32 1.0, %v3519_v59  ;;  %v1756_v5 = vadd.f32 1.0, %v3523_v27  ;;  %v6080_v59 = vld [vmem:[#allocation20_spill] sm:$0xff]  ;;  %v6083_v27 = vld [vmem:[#allocation2_spill] sm:$0xff] }
 0x437   : > { %v3529_v48 = vpop.eup %3528  ;;  %v1804_v12 = vpack.c.bf16 %v1797_v1, %v1796_v20  ;;  %v1800_v16 = vsel %vm1795_vm2, %v1791_v30, %v1774_v38  ;;  %v1757_v24 = vadd.f32 1.0, %v3525_v58  ;;  %v1108_v31 = vadd.f32 1.0, %v3509_v36 }
 0x438   : > { %v3531_v50 = vpop.eup %3530  ;;  %v1801_v18 = vsel %vm1795_vm2, %v1792_v3, %v1775_v35  ;;  %v774_v49 = vadd.f32 1.0, %v6077_v43  ;;  %v775_v51 = vadd.f32 1.0, %v6078_v4  ;;  %v1434_v46 = vadd.f32 1.0, %v3521_v7  ;;  %v6085_v35 = vld [vmem:[#allocation22_spill] sm:$0xff]  ;;  %v5153_v4 = vpop.permute.xlu0 %1978 }
 0x439   : > { %v3533_v0 = vpop.eup %3532  ;;  %3289 = vmatmul.msk.bf16.vlgmr.msra.gmra.mxu1 %vm470_vm0, %v1804_v12  ;;  %v1806_v40 = vpack.c.bf16 %v1801_v18, %v1800_v16  ;;  %v1112_v11 = vmul.f32 0.5, %v1104_v14  ;;  %v1113_v29 = vmul.f32 0.5, %v1105_v19  ;;  %v1109_v63 = vadd.f32 1.0, %v3527_v13 }
 0x43a   : > { %v1760_v41 = vadd.f32 1.0, %v3529_v48  ;;  %v779_v56 = vmul.f32 0.5, %v6079_v34  ;;  %v1438_v39 = vmul.f32 0.5, %v1430_v8  ;;  %v1439_v61 = vmul.f32 0.5, %v1431_v44 }
 0x43b   : > { %3291 = vmatmul.msk.bf16.vlgmr.msra.gmra.mxu3 %vm470_vm0, %v1806_v40  ;;  %v1435_v36 = vadd.f32 1.0, %v3531_v50  ;;  %v1764_v22 = vmul.f32 0.5, %v1756_v5  ;;  %v1765_v26 = vmul.f32 0.5, %v1757_v24  ;;  %v1116_v42 = vmul.f32 0.5, %v1108_v31 }
 0x43c   : > { %v1761_v15 = vadd.f32 1.0, %v3533_v0  ;;  %v786_v55 = vmul.f32 %v6081_v9, %v6080_v59  ;;  %v782_v33 = vmul.f32 0.5, %v774_v49  ;;  %v783_v7 = vmul.f32 0.5, %v775_v51 }
 0x43d   : > { %v1442_v6 = vmul.f32 0.5, %v1434_v46  ;;  %v1120_v32 = vmul.f32 %v1112_v11, %v6082_v62  ;;  %v1121_v47 = vmul.f32 %v1113_v29, %v6083_v27  ;;  %v1117_v2 = vmul.f32 0.5, %v1109_v63 }
 0x43e   : > { %v1768_v53 = vmul.f32 0.5, %v1760_v41  ;;  %v787_v45 = vmul.f32 %v779_v56, %v6084_v10  ;;  %v1446_v58 = vmul.f32 %v1438_v39, %v4771_v37  ;;  %v1447_v20 = vmul.f32 %v1439_v61, %v4790_v52 }
 0x43f   : > { %v1443_v38 = vmul.f32 0.5, %v1435_v36  ;;  %v1772_v30 = vmul.f32 %v1764_v22, %v5030_v17  ;;  %v1773_v14 = vmul.f32 %v1765_v26, %v5032_v57  ;;  %v1124_v13 = vmul.f32 %v1116_v42, %v4698_v21  ;;  %v6086_v57 = vld [vmem:[#allocation23_spill] sm:$0xff] }
 0x440   : > { %v1769_v1 = vmul.f32 0.5, %v1761_v15  ;;  %v790_v3 = vmul.f32 %v782_v33, %v6085_v35  ;;  %v1450_v19 = vmul.f32 %v1442_v6, %v4801_v23  ;;  %v1780_v48 = vsel %vm520_vm1, %v786_v55, %v1120_v32  ;;  %v5157_v26 = vpop.permute.xlu0 %2112 }
 0x441   : > { %v1781_v12 = vsel %vm520_vm1, %v787_v45, %v1121_v47  ;;  %v1125_v37 = vmul.f32 %v1117_v2, %v4913_v25  ;;  %v1776_v52 = vmul.f32 %v1768_v53, %v5044_v28  ;;  %v1789_v16 = vsel %vm1786_vm15, %v1780_v48, %v1446_v58  ;;  %v5162_v53 = vpop.permute.xlu2 %2045 }
 0x442   : > { %v1790_v17 = vsel %vm1786_vm15, %v1781_v12, %v1447_v20  ;;  %v791_v8 = vmul.f32 %v783_v7, %v6086_v57  ;;  %v1451_v21 = vmul.f32 %v1443_v38, %v5000_v54  ;;  %v1798_v44 = vsel %vm1795_vm2, %v1789_v16, %v1772_v30 }
 0x443   : > { %v1799_v23 = vsel %vm1795_vm2, %v1790_v17, %v1773_v14  ;;  %v1777_v50 = vmul.f32 %v1769_v1, %v5034_v60  ;;  %v1784_v18 = vsel %vm520_vm1, %v790_v3, %v1124_v13  ;;  %v5150_v60 = vld [vmem:[%s5957_s7] ss:$0 sm:$0xff] }
 0x444   : > { %v1793_v25 = vsel %vm1786_vm15, %v1784_v18, %v1450_v19  ;;  %v1785_v28 = vsel %vm520_vm1, %v791_v8, %v1125_v37  ;;  %v1805_v24 = vpack.c.bf16 %v1799_v23, %v1798_v44 }
 0x445   : > { %v1802_v5 = vsel %vm1795_vm2, %v1793_v25, %v1776_v52  ;;  %v1794_v31 = vsel %vm1786_vm15, %v1785_v28, %v1451_v21  ;;  %vm3148_vm15 = vcmask 523264  }
 0x446   : > { %v1803_v0 = vsel %vm1795_vm2, %v1794_v31, %v1777_v50 }
 0x447   : > { %v1807_v54 = vpack.c.bf16 %v1803_v0, %v1802_v5 }
 0x448   : > { %v5164_v10 = vpop.permute.xlu0 %2179 }
 0x449   : > { %3290 = vmatmul.msk.bf16.gmra.mxu1 %vm470_vm0, %v1805_v24 }
 0x44b   : > { %3292 = vmatmul.msk.bf16.gmra.mxu3 %vm470_vm0, %v1807_v54  ;;  %vm1953_vm0 = vcmask 31744  }
 0x4b6   : > { %v1849_v40 = vpop.f32.mrf.mxu1 }
 0x4b7   : > { %v1850_v43 = vadd.f32 %v5150_v60, %v1849_v40 }
 0x4b9   : > { %v1869_v49 = vmul.f32 %v1850_v43, %v1850_v43 }
 0x4bb   : > { %v1877_v51 = vmul.f32 %v1869_v49, %v1850_v43 }
 0x4bd   : > { %v1885_v46 = vmul.f32 0.044715, %v1877_v51 }
 0x4be   : > { %v1859_v11 = vpop.f32.mrf.mxu3  ;;  %v1851_v29 = vpop.f32.mrf.mxu1 }
 0x4bf   : > { %v1893_v63 = vadd.f32 %v1885_v46, %v1850_v43  ;;  %v1860_v41 = vadd.f32 %v5150_v60, %v1859_v11  ;;  %v1852_v34 = vadd.f32 %v5150_v60, %v1851_v29  ;;  %v5206_v11 = vld [vmem:[%s3704_s28] ss:$0 sm:$0xff] }
 0x4c1   : > { %v1901_v56 = vmul.f32 0.7978846, %v1893_v63  ;;  %v1873_v39 = vmul.f32 %v1860_v41, %v1860_v41  ;;  %v1870_v61 = vmul.f32 %v1852_v34, %v1852_v34 }
 0x4c3   : > { %3534 = vtanh.f32 %v1901_v56  ;;  %v1881_v36 = vmul.f32 %v1873_v39, %v1860_v41  ;;  %v1878_v22 = vmul.f32 %v1870_v61, %v1852_v34 }
 0x4c5   : > { %v1886_v42 = vmul.f32 0.044715, %v1878_v22  ;;  %v1889_v9 = vmul.f32 0.044715, %v1881_v36 }
 0x4c6   : > { %v1861_v15 = vpop.f32.mrf.mxu3  ;;  %v5159_v59 = vpop.f32.mrf.mxu1 }
 0x4c7   : > { %v1894_v55 = vadd.f32 %v1886_v42, %v1852_v34  ;;  %v1862_v33 = vadd.f32 %v5150_v60, %v1861_v15  ;;  %v1897_v27 = vadd.f32 %v1889_v9, %v1860_v41  ;;  %v1855_v36 = vadd.f32 %v5150_v60, %v5159_v59 }
 0x4c9   : > { %v3535_v7 = vpop.eup %3534  ;;  %v1902_v6 = vmul.f32 0.7978846, %v1894_v55  ;;  %v1874_v62 = vmul.f32 %v1862_v33, %v1862_v33  ;;  %v1905_v58 = vmul.f32 0.7978846, %v1897_v27  ;;  %v1871_v42 = vmul.f32 %v1855_v36, %v1855_v36 }
 0x4ca   : > { %v1917_v32 = vadd.f32 1.0, %v3535_v7 }
 0x4cb   : > { %v1882_v47 = vmul.f32 %v1874_v62, %v1862_v33  ;;  %3536 = vtanh.f32 %v1902_v6  ;;  %v1879_v9 = vmul.f32 %v1871_v42, %v1855_v36 }
 0x4cc   : > { %v1925_v2 = vmul.f32 0.5, %v1917_v32  ;;  %3538 = vtanh.f32 %v1905_v58 }
 0x4cd   : > { %v1890_v20 = vmul.f32 0.044715, %v1882_v47 }
 0x4ce   : > { %v5166_v45 = vmul.f32 %v1925_v2, %v1850_v43  ;;  %v1856_v38 = vpop.f32.mrf.mxu1  ;;  %v1864_v55 = vpop.f32.mrf.mxu3 }
 0x4cf   : > { %v1898_v3 = vadd.f32 %v1890_v20, %v1862_v33  ;;  %v1857_v19 = vadd.f32 %v5150_v60, %v1856_v38  ;;  %v1865_v7 = vadd.f32 %v5150_v60, %v1864_v55 }
 0x4d0   : > { %v2048_v30 = vmul.f32 %v5162_v53, %v5166_v45  ;;  %v1981_v14 = vmul.f32 %v5153_v4, %v5166_v45  ;;  %v2182_v13 = vmul.f32 %v5164_v10, %v5166_v45  ;;  %v2115_v16 = vmul.f32 %v5157_v26, %v5166_v45 }
 0x4d1   : > { %v3537_v1 = vpop.eup %3536  ;;  %v1906_v37 = vmul.f32 0.7978846, %v1898_v3  ;;  %v1872_v52 = vmul.f32 %v1857_v19, %v1857_v19  ;;  %v1945_v29 = vmul.f32 %v5206_v11, %v5166_v45  ;;  %v1875_v62 = vmul.f32 %v1865_v7, %v1865_v7 }
 0x4d2   : > { %2064 = vrot.lane.b32.xlu0 %v2048_v30, %s3581_s24  ;;  %1997 = vrot.lane.b32.xlu2 %v1981_v14, %s3587_s27  ;;  %v1918_v35 = vadd.f32 1.0, %v3537_v1  ;;  %v3539_v17 = vpop.eup %3538 }
 0x4d3   : > { %2198 = vrot.lane.b32.xlu1 %v2182_v13, %s3580_s23  ;;  %3540 = vtanh.f32 %v1906_v37  ;;  %v1880_v8 = vmul.f32 %v1872_v52, %v1857_v19  ;;  %v1921_v21 = vadd.f32 1.0, %v3539_v17  ;;  %v1883_v2 = vmul.f32 %v1875_v62, %v1865_v7 }
 0x4d4   : > { %v1926_v48 = vmul.f32 0.5, %v1918_v35 }
 0x4d5   : > { %v1888_v44 = vmul.f32 0.044715, %v1880_v8  ;;  %v1929_v23 = vmul.f32 0.5, %v1921_v21  ;;  %v1891_v58 = vmul.f32 0.044715, %v1883_v2 }
 0x4d6   : > { %v5178_v12 = vmul.f32 %v1926_v48, %v1852_v34  ;;  %v1954_v34 = vsel %vm1953_vm0, %v1945_v29, 0.0  ;;  %v1866_v14 = vpop.f32.mrf.mxu3 }
 0x4d7   : > { %v1896_v28 = vadd.f32 %v1888_v44, %v1857_v19  ;;  %v5192_v5 = vmul.f32 %v1929_v23, %v1860_v41  ;;  %v1899_v30 = vadd.f32 %v1891_v58, %v1865_v7  ;;  %v1867_v35 = vadd.f32 %v5150_v60, %v1866_v14 }
 0x4d8   : > { %v1982_v57 = vmul.f32 %v5153_v4, %v5178_v12  ;;  %v2183_v50 = vmul.f32 %v5164_v10, %v5178_v12  ;;  %v2049_v25 = vmul.f32 %v5162_v53, %v5178_v12  ;;  %v2116_v40 = vmul.f32 %v5157_v26, %v5178_v12 }
 0x4d9   : > { %v3541_v18 = vpop.eup %3540  ;;  %v1904_v31 = vmul.f32 0.7978846, %v1896_v28  ;;  %v1985_v54 = vmul.f32 %v5153_v4, %v5192_v5  ;;  %v1946_v39 = vmul.f32 %v5206_v11, %v5178_v12  ;;  %v1949_v6 = vmul.f32 %v5206_v11, %v5192_v5 }
 0x4da   : > { %2131 = vrot.lane.b32.xlu2 %v2115_v16, %s3588_s29  ;;  %v1922_v24 = vadd.f32 1.0, %v3541_v18  ;;  %v2052_v47 = vmul.f32 %v5162_v53, %v5192_v5  ;;  %v2119_v20 = vmul.f32 %v5157_v26, %v5192_v5  ;;  %v1907_v1 = vmul.f32 0.7978846, %v1899_v30 }
 0x4db   : > { %1999 = vrot.lane.b32.xlu1 %v1982_v57, %s3587_s27  ;;  %3542 = vtanh.f32 %v1904_v31  ;;  %v1957_v22 = vsel %vm1953_vm0, %v1946_v39, 0.0  ;;  %v1966_v32 = vsel %vm1953_vm0, %v1949_v6, 0.0  ;;  %v1876_v48 = vmul.f32 %v1867_v35, %v1867_v35 }
 0x4dc   : > { %v1930_v0 = vmul.f32 0.5, %v1922_v24 }
 0x4dd   : > { %v1884_v52 = vmul.f32 %v1876_v48, %v1867_v35 }
 0x4de   : > { %v5200_v43 = vmul.f32 %v1930_v0, %v1862_v33  ;;  %v1887_v33 = vmul.f32 0.044715, %v1879_v9 }
 0x4df   : > { %v1892_v21 = vmul.f32 0.044715, %v1884_v52 }
 0x4e0   : > { %v2053_v49 = vmul.f32 %v5162_v53, %v5200_v43  ;;  %v2187_v41 = vmul.f32 %v5164_v10, %v5200_v43  ;;  %v1895_v59 = vadd.f32 %v1887_v33, %v1855_v36  ;;  %v2120_v16 = vmul.f32 %v5157_v26, %v5200_v43 }
 0x4e1   : > { %v3543_v51 = vpop.eup %3542 }
 0x4e2   : > { %2200 = vrot.lane.b32.xlu2 %v2183_v50, %s3580_s23  ;;  %v1920_v46 = vadd.f32 1.0, %v3543_v51  ;;  %v1903_v27 = vmul.f32 0.7978846, %v1895_v59  ;;  %v1900_v50 = vadd.f32 %v1892_v21, %v1867_v35 }
 0x4e3   : > { %2066 = vrot.lane.b32.xlu1 %v2049_v25, %s3581_s24 }
 0x4e4   : > { %v1928_v63 = vmul.f32 0.5, %v1920_v46  ;;  %3544 = vtanh.f32 %v1903_v27  ;;  %v1908_v24 = vmul.f32 0.7978846, %v1900_v50 }
 0x4e5   : > { %3546 = vtanh.f32 %v1907_v1 }
 0x4e6   : > { %v5214_v56 = vmul.f32 %v1928_v63, %v1857_v19  ;;  %v2186_v19 = vmul.f32 %v5164_v10, %v5192_v5  ;;  %3548 = vtanh.f32 %v1908_v24 }
 0x4e8   : > { %v2051_v61 = vmul.f32 %v5162_v53, %v5214_v56  ;;  %v2118_v15 = vmul.f32 %v5157_v26, %v5214_v56  ;;  %v1948_v57 = vmul.f32 %v5206_v11, %v5214_v56  ;;  %v2185_v18 = vmul.f32 %v5164_v10, %v5214_v56 }
 0x4ea   : > { %2005 = vrot.lane.b32.xlu2 %v1985_v54, %s3587_s27  ;;  %v3545_v38 = vpop.eup %3544  ;;  %v1963_v44 = vsel %vm1953_vm0, %v1948_v57, 0.0 }
 0x4eb   : > { %2133 = vrot.lane.b32.xlu1 %v2116_v40, %s3588_s29  ;;  %v1919_v13 = vadd.f32 1.0, %v3545_v38  ;;  %v3547_v17 = vpop.eup %3546 }
 0x4ec   : > { %v1923_v8 = vadd.f32 1.0, %v3547_v17  ;;  %v3549_v54 = vpop.eup %3548 }
 0x4ed   : > { %v1927_v3 = vmul.f32 0.5, %v1919_v13 }
 0x4ee   : > { %v1931_v23 = vmul.f32 0.5, %v1923_v8  ;;  %v1950_v8 = vmul.f32 %v5206_v11, %v5200_v43 }
 0x4ef   : > { %v5241_v37 = vmul.f32 %v1927_v3, %v1855_v36 }
 0x4f0   : > { %v5257_v28 = vmul.f32 %v1931_v23, %v1865_v7 }
 0x4f1   : > { %v1983_v60 = vmul.f32 %v5153_v4, %v5241_v37  ;;  %v2050_v25 = vmul.f32 %v5162_v53, %v5241_v37  ;;  %v2117_v0 = vmul.f32 %v5157_v26, %v5241_v37  ;;  %v2184_v51 = vmul.f32 %v5164_v10, %v5241_v37 }
 0x4f2   : > { %2074 = vrot.lane.b32.xlu2 %v2053_v49, %s3581_s24  ;;  %v1987_v31 = vmul.f32 %v5153_v4, %v5257_v28  ;;  %v2054_v40 = vmul.f32 %v5162_v53, %v5257_v28  ;;  %v1924_v49 = vadd.f32 1.0, %v3549_v54  ;;  %v2121_v29 = vmul.f32 %v5157_v26, %v5257_v28 }
 0x4f3   : > { %v2188_v63 = vmul.f32 %v5164_v10, %v5257_v28 }
 0x4f4   : > { %v1932_v46 = vmul.f32 0.5, %v1924_v49  ;;  %v1951_v49 = vmul.f32 %v5206_v11, %v5257_v28 }
 0x4fa   : > { %2208 = vrot.lane.b32.xlu2 %v2187_v41, %s3580_s23  ;;  %v5277_v41 = vmul.f32 %v1932_v46, %v1867_v35 }
 0x4fc   : > { %1955 = vadd.xlane.f32.xlu0 %v1954_v34  ;;  %v1988_v34 = vmul.f32 %v5153_v4, %v5277_v41 }
 0x502   : > { %2070 = vrot.lane.b32.xlu2 %v2051_v61, %s3581_s24 }
 0x504   : > { %1958 = vadd.xlane.f32.xlu0 %v1957_v22 }
 0x50a   : > { %2137 = vrot.lane.b32.xlu2 %v2118_v15, %s3588_s29  ;;  %v1947_v15 = vmul.f32 %v5206_v11, %v5241_v37 }
 0x50c   : > { %v1960_v55 = vsel %vm1953_vm0, %v1947_v15, 0.0 }
 0x515   : > { %1967 = vadd.xlane.f32.xlu1 %v1966_v32 }
 0x518   : > { %2072 = vrot.lane.b32.xlu0 %v2052_v47, %s3581_s24 }
 0x520   : > { %2139 = vrot.lane.b32.xlu0 %v2119_v20, %s3588_s29  ;;  %v1986_v20 = vmul.f32 %v5153_v4, %v5200_v43 }
 0x528   : > { %2206 = vrot.lane.b32.xlu0 %v2186_v19, %s3580_s23 }
 0x52c   : > { %v5283_v39 = vpop.permute.xlu2 %1997 }
 0x52e   : > { %2141 = vrot.lane.b32.xlu1 %v2120_v16, %s3588_s29 }
 0x530   : > { %2001 = vrot.lane.b32.xlu0 %v1983_v60, %s3587_s27 }
 0x533   : > { %1964 = vadd.xlane.f32.xlu2 %v1963_v44  ;;  %v1969_v44 = vsel %vm1953_vm0, %v1950_v8, 0.0 }
 0x534   : > { %v2132_v61 = vpop.permute.xlu2 %2131 }
 0x535   : > { %v2155_v6 = vsel %vm1953_vm0, %v2132_v61, 0.0  ;;  %v2055_v61 = vmul.f32 %v5162_v53, %v5277_v41  ;;  %v2021_v53 = vsel %vm1953_vm0, %v5283_v39, 0.0 }
 0x536   : > { %2204 = vrot.lane.b32.xlu1 %v2185_v18, %s3580_s23 }
 0x538   : > { %2068 = vrot.lane.b32.xlu0 %v2050_v25, %s3581_s24  ;;  %v1984_v25 = vmul.f32 %v5153_v4, %v5214_v56 }
 0x53c   : > { %v5287_v22 = vpop.permute.xlu2 %2200 }
 0x53e   : > { %2009 = vrot.lane.b32.xlu1 %v1987_v31, %s3587_s27 }
 0x540   : > { %2135 = vrot.lane.b32.xlu0 %v2117_v0, %s3588_s29 }
 0x544   : > { %v2065_v9 = vpop.permute.xlu0 %2064  ;;  %v2006_v33 = vpop.permute.xlu2 %2005 }
 0x545   : > { %v5285_v36 = vpop.permute.xlu1 %2198  ;;  %v2088_v62 = vsel %vm1953_vm0, %v2065_v9, 0.0  ;;  %v2033_v13 = vsel %vm1953_vm0, %v2006_v33, 0.0  ;;  %v2122_v9 = vmul.f32 %v5157_v26, %v5277_v41  ;;  %v1952_v33 = vmul.f32 %v5206_v11, %v5277_v41 }
 0x546   : > { %2076 = vrot.lane.b32.xlu1 %v2054_v40, %s3581_s24 }
 0x548   : > { %2202 = vrot.lane.b32.xlu0 %v2184_v51, %s3580_s23  ;;  %v1972_v51 = vsel %vm1953_vm0, %v1951_v49, 0.0 }
 0x54b   : > { %2143 = vrot.lane.b32.xlu2 %v2121_v29, %s3588_s29 }
 0x54c   : > { %v5296_v32 = vpop.permute.xlu2 %2074 }
 0x54d   : > { %v2000_v42 = vpop.permute.xlu1 %1999 }
 0x54e   : > { %2210 = vrot.lane.b32.xlu1 %v2188_v63, %s3580_s23  ;;  %v2024_v27 = vsel %vm1953_vm0, %v2000_v42, 0.0 }
 0x553   : > { %2011 = vrot.lane.b32.xlu2 %v1988_v34, %s3587_s27 }
 0x554   : > { %v5306_v30 = vpop.permute.xlu2 %2208 }
 0x555   : > { %v2067_v7 = vpop.permute.xlu1 %2066 }
 0x556   : > { %v2091_v38 = vsel %vm1953_vm0, %v2067_v7, 0.0  ;;  %v1975_v7 = vsel %vm1953_vm0, %v1952_v33, 0.0 }
 0x55c   : > { %v2071_v1 = vpop.permute.xlu2 %2070 }
 0x55d   : > { %v2134_v47 = vpop.permute.xlu1 %2133  ;;  %v2097_v42 = vsel %vm1953_vm0, %v2071_v1, 0.0  ;;  %v2225_v1 = vsel %vm1953_vm0, %v5287_v22, 0.0  ;;  %v2237_v22 = vsel %vm1953_vm0, %v5306_v30, 0.0 }
 0x55e   : > { %v2158_v58 = vsel %vm1953_vm0, %v2134_v47, 0.0 }
 0x564   : > { %v2138_v52 = vpop.permute.xlu2 %2137 }
 0x565   : > { %v2164_v16 = vsel %vm1953_vm0, %v2138_v52, 0.0  ;;  %v2222_v52 = vsel %vm1953_vm0, %v5285_v36, 0.0 }
 0x56f   : > { %v5293_v59 = vpop.xlane.xlu0 %1955 }
 0x572   : > { %1961 = vadd.xlane.f32.xlu0 %v1960_v55 }
 0x577   : > { %v5299_v2 = vpop.xlane.xlu0 %1958 }
 0x578   : > { %2156 = vadd.xlane.f32.xlu1 %v2155_v6 }
 0x57c   : > { %2089 = vadd.xlane.f32.xlu2 %v2088_v62  ;;  %v2103_v62 = vsel %vm1953_vm0, %v5296_v32, 0.0 }
 0x580   : > { %2025 = vadd.xlane.f32.xlu1 %v2024_v27 }
 0x584   : > { %2159 = vadd.xlane.f32.xlu2 %v2158_v58 }
 0x586   : > { %2007 = vrot.lane.b32.xlu0 %v1986_v20, %s3587_s27 }
 0x588   : > { %2092 = vadd.xlane.f32.xlu1 %v2091_v38  ;;  %v5325_v0 = vpop.xlane.xlu1 %1967 }
 0x58a   : > { %v2073_v14 = vpop.permute.xlu0 %2072 }
 0x58b   : > { %v2100_v19 = vsel %vm1953_vm0, %v2073_v14, 0.0 }
 0x590   : > { %2034 = vadd.xlane.f32.xlu1 %v2033_v13 }
 0x592   : > { %v2140_v35 = vpop.permute.xlu0 %2139 }
 0x593   : > { %v2167_v3 = vsel %vm1953_vm0, %v2140_v35, 0.0 }
 0x594   : > { %2168 = vadd.xlane.f32.xlu2 %v2167_v3  ;;  %v2189_v3 = vmul.f32 %v5164_v10, %v5277_v41 }
 0x598   : > { %2101 = vadd.xlane.f32.xlu1 %v2100_v19 }
 0x59a   : > { %v5311_v48 = vpop.permute.xlu0 %2206 }
 0x59b   : > { %v2234_v19 = vsel %vm1953_vm0, %v5311_v48, 0.0 }
 0x5a0   : > { %2165 = vadd.xlane.f32.xlu1 %v2164_v16  ;;  %v2142_v54 = vpop.permute.xlu1 %2141 }
 0x5a1   : > { %v2170_v47 = vsel %vm1953_vm0, %v2142_v54, 0.0 }
 0x5a2   : > { %v2002_v17 = vpop.permute.xlu0 %2001 }
 0x5a3   : > { %v2027_v60 = vsel %vm1953_vm0, %v2002_v17, 0.0 }
 0x5a4   : > { %2028 = vadd.xlane.f32.xlu2 %v2027_v60 }
 0x5a6   : > { %v5315_v57 = vpop.xlane.xlu2 %1964 }
 0x5a8   : > { %v2205_v29 = vpop.permute.xlu1 %2204 }
 0x5a9   : > { %v2231_v16 = vsel %vm1953_vm0, %v2205_v29, 0.0 }
 0x5aa   : > { %v2069_v24 = vpop.permute.xlu0 %2068 }
 0x5ab   : > { %v2094_v6 = vsel %vm1953_vm0, %v2069_v24, 0.0 }
 0x5ae   : > { %v2144_v21 = vpop.permute.xlu2 %2143 }
 0x5af   : > { %v2173_v23 = vsel %vm1953_vm0, %v2144_v21, 0.0 }
 0x5b0   : > { %1970 = vadd.xlane.f32.xlu0 %v1969_v44  ;;  %2174 = vadd.xlane.f32.xlu1 %v2173_v23  ;;  %v2010_v34 = vpop.permute.xlu1 %2009 }
 0x5b1   : > { %v2039_v39 = vsel %vm1953_vm0, %v2010_v34, 0.0 }
 0x5b2   : > { %v2136_v31 = vpop.permute.xlu0 %2135 }
 0x5b3   : > { %v2161_v26 = vsel %vm1953_vm0, %v2136_v31, 0.0 }
 0x5b6   : > { %v2012_v50 = vpop.permute.xlu2 %2011 }
 0x5b7   : > { %v2042_v18 = vsel %vm1953_vm0, %v2012_v50, 0.0 }
 0x5b8   : > { %2043 = vadd.xlane.f32.xlu1 %v2042_v18  ;;  %v2077_v15 = vpop.permute.xlu1 %2076 }
 0x5b9   : > { %v2106_v55 = vsel %vm1953_vm0, %v2077_v15, 0.0 }
 0x5ba   : > { %v2203_v40 = vpop.permute.xlu0 %2202 }
 0x5bb   : > { %v2228_v10 = vsel %vm1953_vm0, %v2203_v40, 0.0 }
 0x5c0   : > { %v2211_v60 = vpop.permute.xlu1 %2210 }
 0x5c1   : > { %v2240_v36 = vsel %vm1953_vm0, %v2211_v60, 0.0 }
 0x5c4   : > { %2003 = vrot.lane.b32.xlu0 %v1984_v25, %s3587_s27  ;;  %s3604_s27 = smov 76  }
 0x5e5   : > { %v5330_v46 = vpop.xlane.xlu0 %1961 }
 0x5eb   : > { %v5416_v33 = vpop.xlane.xlu1 %2156 }
 0x5ec   : > { %6088 = vst [vmem:[#allocation3_spill] sm:$0xff] %v5416_v33 }
 0x5ee   : > { %1973 = vadd.xlane.f32.xlu0 %v1972_v51 }
 0x5ef   : > { %v5378_v8 = vpop.xlane.xlu2 %2089 }
 0x5f7   : > { %v5382_v30 = vpop.xlane.xlu2 %2159 }
 0x5f8   : > { %v2008_v63 = vpop.permute.xlu0 %2007 }
 0x5f9   : > { %v2036_v4 = vsel %vm1953_vm0, %v2008_v63, 0.0 }
 0x5fa   : > { %2037 = vadd.xlane.f32.xlu2 %v2036_v4 }
 0x602   : > { %2078 = vrot.lane.b32.xlu0 %v2055_v61, %s3581_s24  ;;  %2098 = vadd.xlane.f32.xlu2 %v2097_v42  ;;  %s3590_s24 = smov 108  }
 0x607   : > { %v5386_v23 = vpop.xlane.xlu2 %2168 }
 0x60a   : > { %2145 = vrot.lane.b32.xlu0 %v2122_v9, %s3588_s29  ;;  %2107 = vadd.xlane.f32.xlu2 %v2106_v55  ;;  %s3605_s29 = smov 56  }
 0x617   : > { %v5390_v18 = vpop.xlane.xlu2 %2028 }
 0x623   : > { %v5350_v27 = vpop.xlane.xlu0 %1970 }
 0x634   : > { %1976 = vadd.xlane.f32.xlu0 %v1975_v7 }
 0x636   : > { %v2004_v58 = vpop.permute.xlu0 %2003 }
 0x637   : > { %v2030_v20 = vsel %vm1953_vm0, %v2004_v58, 0.0 }
 0x63c   : > { %2022 = vadd.xlane.f32.xlu0 %v2021_v53 }
 0x644   : > { %2095 = vadd.xlane.f32.xlu0 %v2094_v6 }
 0x64c   : > { %2162 = vadd.xlane.f32.xlu0 %v2161_v26  ;;  %v5421_v26 = vpop.xlane.xlu1 %2025 }
 0x654   : > { %2104 = vadd.xlane.f32.xlu0 %v2103_v62  ;;  %v5425_v58 = vpop.xlane.xlu1 %2092 }
 0x65c   : > { %2171 = vadd.xlane.f32.xlu0 %v2170_v47 }
 0x661   : > { %v5355_v38 = vpop.xlane.xlu0 %1973 }
 0x664   : > { %2031 = vadd.xlane.f32.xlu0 %v2030_v20  ;;  %v5427_v20 = vpop.xlane.xlu1 %2034 }
 0x66c   : > { %2040 = vadd.xlane.f32.xlu0 %v2039_v39  ;;  %v5429_v39 = vpop.xlane.xlu1 %2101 }
 0x66d   : > { %v5392_v25 = vpop.xlane.xlu2 %2037 }
 0x674   : > { %v2079_v14 = vpop.permute.xlu0 %2078 }
 0x675   : > { %v2109_v13 = vsel %vm1953_vm0, %v2079_v14, 0.0  ;;  %v5396_v31 = vpop.xlane.xlu2 %2098  ;;  %v5431_v14 = vpop.xlane.xlu1 %2165 }
 0x676   : > { %2110 = vadd.xlane.f32.xlu1 %v2109_v13 }
 0x67c   : > { %v2146_v32 = vpop.permute.xlu0 %2145 }
 0x67d   : > { %v2176_v35 = vsel %vm1953_vm0, %v2146_v32, 0.0  ;;  %v5400_v40 = vpop.xlane.xlu2 %2107  ;;  %v5433_v13 = vpop.xlane.xlu1 %2174 }
 0x67e   : > { %2226 = vadd.xlane.f32.xlu1 %v2225_v1  ;;  %2177 = vadd.xlane.f32.xlu2 %v2176_v35 }
 0x680   : > { %2212 = vrot.lane.b32.xlu0 %v2189_v3, %s3580_s23  ;;  %s3589_s23 = smov 20  }
 0x685   : > { %v5435_v32 = vpop.xlane.xlu1 %2043 }
 0x686   : > { %2235 = vadd.xlane.f32.xlu1 %v2234_v19  ;;  %2223 = vadd.xlane.f32.xlu2 %v2222_v52 }
 0x68e   : > { %2232 = vadd.xlane.f32.xlu2 %v2231_v16 }
 0x696   : > { %2238 = vadd.xlane.f32.xlu2 %v2237_v22 }
 0x6a7   : > { %v5371_v17 = vpop.xlane.xlu0 %1976 }
 0x6aa   : > { %2229 = vadd.xlane.f32.xlu0 %v2228_v10 }
 0x6ae   : > { %2246 = vrot.lane.b32.xlu2 %v5206_v11, %s3589_s23  ;;  %s3606_s23 = smov 60  }
 0x6af   : > { %v5375_v48 = vpop.xlane.xlu0 %2022 }
 0x6b2   : > { %2241 = vadd.xlane.f32.xlu0 %v2240_v36 }
 0x6b7   : > { %v5380_v21 = vpop.xlane.xlu0 %2095 }
 0x6bf   : > { %v5384_v44 = vpop.xlane.xlu0 %2162 }
 0x6c7   : > { %v5388_v50 = vpop.xlane.xlu0 %2104 }
 0x6cf   : > { %v5394_v24 = vpop.xlane.xlu0 %2171 }
 0x6d7   : > { %v5398_v54 = vpop.xlane.xlu0 %2031 }
 0x6df   : > { %v5402_v49 = vpop.xlane.xlu0 %2040 }
 0x6e9   : > { %v5437_v1 = vpop.xlane.xlu1 %2110 }
 0x6f1   : > { %v5404_v51 = vpop.xlane.xlu2 %2177  ;;  %v5439_v35 = vpop.xlane.xlu1 %2226 }
 0x6f2   : > { %v2213_v29 = vpop.permute.xlu0 %2212 }
 0x6f3   : > { %v2243_v63 = vsel %vm1953_vm0, %v2213_v29, 0.0 }
 0x6f4   : > { %2244 = vadd.xlane.f32.xlu1 %v2243_v63 }
 0x6f9   : > { %v5407_v4 = vpop.xlane.xlu2 %2223  ;;  %v5443_v19 = vpop.xlane.xlu1 %2235 }
 0x6fa   : > { %6087 = vst [vmem:[#allocation4_spill] sm:$0xff] %v5407_v4 }
 0x701   : > { %v5409_v34 = vpop.xlane.xlu2 %2232 }
 0x709   : > { %v5411_v61 = vpop.xlane.xlu2 %2238 }
 0x711   : > { %v2247_v42 = vpop.permute.xlu2 %2246 }
 0x712   : > { %v2252_v15 = vmul.f32 %v2247_v42, %v5214_v56  ;;  %v2249_v9 = vmul.f32 %v2247_v42, %v5166_v45  ;;  %v2250_v55 = vmul.f32 %v2247_v42, %v5178_v12  ;;  %v2255_v7 = vmul.f32 %v2247_v42, %v5257_v28 }
 0x713   : > { %v2251_v53 = vmul.f32 %v2247_v42, %v5241_v37  ;;  %v2254_v6 = vmul.f32 %v2247_v42, %v5200_v43  ;;  %v2253_v62 = vmul.f32 %v2247_v42, %v5192_v5  ;;  %v2256_v47 = vmul.f32 %v2247_v42, %v5277_v41 }
 0x714   : > { %2271 = vrot.lane.b32.xlu2 %v2252_v15, %s3590_s24  ;;  %2265 = vrot.lane.b32.xlu0 %v2249_v9, %s3590_s24 }
 0x715   : > { %2267 = vrot.lane.b32.xlu1 %v2250_v55, %s3590_s24 }
 0x71c   : > { %2277 = vrot.lane.b32.xlu2 %v2255_v7, %s3590_s24  ;;  %2269 = vrot.lane.b32.xlu0 %v2251_v53, %s3590_s24 }
 0x71d   : > { %2275 = vrot.lane.b32.xlu1 %v2254_v6, %s3590_s24  ;;  %v5441_v3 = vpop.xlane.xlu0 %2229 }
 0x71e   : > { %6089 = vst [vmem:[#allocation7_spill] sm:$0xff] %v5441_v3 }
 0x724   : > { %2273 = vrot.lane.b32.xlu0 %v2253_v62, %s3590_s24 }
 0x725   : > { %v5445_v52 = vpop.xlane.xlu0 %2241 }
 0x72c   : > { %2279 = vrot.lane.b32.xlu0 %v2256_v47, %s3590_s24  ;;  %s3607_s24 = smov 72  }
 0x767   : > { %v5447_v16 = vpop.xlane.xlu1 %2244 }
 0x76e   : > { %v2272_v29 = vpop.permute.xlu2 %2271 }
 0x76f   : > { %v2298_v42 = vsel %vm1953_vm0, %v2272_v29, 0.0 }
 0x776   : > { %v2278_v9 = vpop.permute.xlu2 %2277 }
 0x777   : > { %v2307_v53 = vsel %vm1953_vm0, %v2278_v9, 0.0 }
 0x786   : > { %v2266_v22 = vpop.permute.xlu0 %2265 }
 0x787   : > { %v2268_v10 = vpop.permute.xlu1 %2267  ;;  %v2289_v60 = vsel %vm1953_vm0, %v2266_v22, 0.0 }
 0x788   : > { %v2292_v36 = vsel %vm1953_vm0, %v2268_v10, 0.0  ;;  %2290 = vadd.xlane.f32.xlu1 %v2289_v60 }
 0x789   : > { %2293 = vadd.xlane.f32.xlu2 %v2292_v36 }
 0x78e   : > { %v2270_v63 = vpop.permute.xlu0 %2269 }
 0x78f   : > { %v2295_v15 = vsel %vm1953_vm0, %v2270_v63, 0.0  ;;  %v2276_v55 = vpop.permute.xlu1 %2275 }
 0x790   : > { %2299 = vadd.xlane.f32.xlu1 %v2298_v42  ;;  %2296 = vadd.xlane.f32.xlu0 %v2295_v15  ;;  %v2304_v6 = vsel %vm1953_vm0, %v2276_v55, 0.0 }
 0x796   : > { %v2274_v7 = vpop.permute.xlu0 %2273 }
 0x797   : > { %v2301_v62 = vsel %vm1953_vm0, %v2274_v7, 0.0 }
 0x798   : > { %2308 = vadd.xlane.f32.xlu1 %v2307_v53  ;;  %2305 = vadd.xlane.f32.xlu0 %v2304_v6 }
 0x799   : > { %2302 = vadd.xlane.f32.xlu2 %v2301_v62 }
 0x79e   : > { %v2280_v47 = vpop.permute.xlu0 %2279 }
 0x79f   : > { %v2310_v22 = vsel %vm1953_vm0, %v2280_v47, 0.0 }
 0x7a1   : > { %2311 = vadd.xlane.f32.xlu2 %v2310_v22 }
 0x7ac   : > { %2313 = vrot.lane.b32.xlu0 %v5206_v11, %s3584_s26  ;;  %s3592_s26 = smov 100  }
 0x7fb   : > { %v5483_v22 = vpop.xlane.xlu1 %2290 }
 0x7fc   : > { %v5479_v6 = vpop.xlane.xlu2 %2293  ;;  %6091 = vst [vmem:[#allocation5_spill] sm:$0xff] %v5483_v22 }
 0x803   : > { %v5459_v10 = vpop.xlane.xlu0 %2296 }
 0x804   : > { %6090 = vst [vmem:[#allocation6_spill] sm:$0xff] %v5459_v10 }
 0x80b   : > { %v5461_v60 = vpop.xlane.xlu0 %2305 }
 0x80c   : > { %v5481_v62 = vpop.xlane.xlu2 %2302 }
 0x814   : > { %v2312_v47 = vpop.xlane.xlu2 %2311 }
 0x81e   : > { %v2314_v36 = vpop.permute.xlu0 %2313 }
 0x81f   : > { %v2318_v29 = vmul.f32 %v2314_v36, %v5241_v37  ;;  %v2317_v63 = vmul.f32 %v2314_v36, %v5178_v12  ;;  %v2316_v42 = vmul.f32 %v2314_v36, %v5166_v45  ;;  %v2321_v15 = vmul.f32 %v2314_v36, %v5200_v43 }
 0x820   : > { %v2319_v9 = vmul.f32 %v2314_v36, %v5214_v56  ;;  %v2320_v55 = vmul.f32 %v2314_v36, %v5192_v5  ;;  %v2322_v7 = vmul.f32 %v2314_v36, %v5257_v28  ;;  %v2323_v53 = vmul.f32 %v2314_v36, %v5277_v41 }
 0x821   : > { %2336 = vrot.lane.b32.xlu0 %v2318_v29, %s3582_s25  ;;  %2334 = vrot.lane.b32.xlu2 %v2317_v63, %s3582_s25 }
 0x822   : > { %2332 = vrot.lane.b32.xlu1 %v2316_v42, %s3582_s25  ;;  %v5486_v42 = vpop.xlane.xlu1 %2299 }
 0x829   : > { %2342 = vrot.lane.b32.xlu0 %v2321_v15, %s3582_s25  ;;  %2338 = vrot.lane.b32.xlu2 %v2319_v9, %s3582_s25 }
 0x82a   : > { %2340 = vrot.lane.b32.xlu1 %v2320_v55, %s3582_s25  ;;  %v2309_v15 = vpop.xlane.xlu1 %2308 }
 0x831   : > { %2344 = vrot.lane.b32.xlu2 %v2322_v7, %s3582_s25 }
 0x832   : > { %2346 = vrot.lane.b32.xlu1 %v2323_v53, %s3582_s25  ;;  %s3591_s25 = smov 28  }
 0x87b   : > { %v2335_v29 = vpop.permute.xlu2 %2334 }
 0x87c   : > { %v2359_v63 = vsel %vm1953_vm0, %v2335_v29, 0.0 }
 0x87d   : > { %2360 = vadd.xlane.f32.xlu2 %v2359_v63 }
 0x883   : > { %v2339_v53 = vpop.permute.xlu2 %2338 }
 0x884   : > { %v2365_v29 = vsel %vm1953_vm0, %v2339_v53, 0.0 }
 0x88b   : > { %v2345_v3 = vpop.permute.xlu2 %2344 }
 0x893   : > { %v2337_v9 = vpop.permute.xlu0 %2336 }
 0x894   : > { %v2333_v36 = vpop.permute.xlu1 %2332  ;;  %v2362_v55 = vsel %vm1953_vm0, %v2337_v9, 0.0  ;;  %v2374_v9 = vsel %vm1953_vm0, %v2345_v3, 0.0  ;;  %v2991_v3 = vsel %vm2983_vm3, %v5371_v17, %v5435_v32 }
 0x895   : > { %2363 = vadd.xlane.f32.xlu1 %v2362_v55  ;;  %v2356_v7 = vsel %vm1953_vm0, %v2333_v36, 0.0  ;;  %v3000_v53 = vsel %vm2992_vm4, %v2991_v3, %v5437_v1 }
 0x896   : > { %2357 = vadd.xlane.f32.xlu0 %v2356_v7 }
 0x89b   : > { %v2343_v10 = vpop.permute.xlu0 %2342 }
 0x89c   : > { %v2341_v4 = vpop.permute.xlu1 %2340  ;;  %v2371_v22 = vsel %vm1953_vm0, %v2343_v10, 0.0 }
 0x89d   : > { %2372 = vadd.xlane.f32.xlu1 %v2371_v22  ;;  %v2368_v63 = vsel %vm1953_vm0, %v2341_v4, 0.0  ;;  %v2990_v4 = vsel %vm2983_vm3, %v5355_v38, %v5402_v49  ;;  %v3009_v38 = vsel %vm3001_vm5, %v3000_v53, %v5404_v51 }
 0x89e   : > { %2366 = vadd.xlane.f32.xlu0 %v2365_v29  ;;  %2369 = vadd.xlane.f32.xlu2 %v2368_v63 }
 0x8a4   : > { %v2347_v33 = vpop.permute.xlu1 %2346 }
 0x8a5   : > { %v2377_v55 = vsel %vm1953_vm0, %v2347_v33, 0.0  ;;  %v2999_v33 = vsel %vm2992_vm4, %v2990_v4, %v5400_v40  ;;  %v3017_v40 = vsel %vm1953_vm0, %v3009_v38, %v5447_v16 }
 0x8a6   : > { %2375 = vadd.xlane.f32.xlu0 %v2374_v9  ;;  %2378 = vadd.xlane.f32.xlu2 %v2377_v55  ;;  %v3008_v49 = vsel %vm3001_vm5, %v2999_v33, %v5433_v13  ;;  %v3026_v32 = vsel %vm3018_vm6, %v3017_v40, %v2312_v47 }
 0x8a7   : > { %v3016_v63 = vsel %vm1953_vm0, %v3008_v49, %v5445_v52 }
 0x8a8   : > { %v3025_v17 = vsel %vm3018_vm6, %v3016_v63, %v2309_v15 }
 0x8b6   : > { %2380 = vrot.lane.b32.xlu1 %v5206_v11, %s3591_s25  ;;  %s3608_s25 = smov 68  }
 0x8f0   : > { %v5496_v36 = vpop.xlane.xlu2 %2360 }
 0x908   : > { %v5514_v29 = vpop.xlane.xlu1 %2363 }
 0x909   : > { %v5498_v10 = vpop.xlane.xlu0 %2357 }
 0x910   : > { %v5528_v4 = vpop.xlane.xlu1 %2372 }
 0x911   : > { %v5503_v22 = vpop.xlane.xlu0 %2366  ;;  %v5505_v7 = vpop.xlane.xlu2 %2369 }
 0x919   : > { %v2376_v1 = vpop.xlane.xlu0 %2375  ;;  %v2379_v9 = vpop.xlane.xlu2 %2378 }
 0x91a   : > { %v3034_v55 = vsel %vm3027_vm7, %v3025_v17, %v2376_v1  ;;  %v3035_v51 = vsel %vm3027_vm7, %v3026_v32, %v2379_v9 }
 0x928   : > { %v2381_v13 = vpop.permute.xlu1 %2380 }
 0x929   : > { %v2386_v52 = vmul.f32 %v2381_v13, %v5214_v56  ;;  %v2384_v33 = vmul.f32 %v2381_v13, %v5178_v12  ;;  %v2383_v16 = vmul.f32 %v2381_v13, %v5166_v45  ;;  %v2389_v47 = vmul.f32 %v2381_v13, %v5257_v28 }
 0x92a   : > { %v2388_v15 = vmul.f32 %v2381_v13, %v5200_v43  ;;  %v2385_v3 = vmul.f32 %v2381_v13, %v5241_v37  ;;  %v2387_v53 = vmul.f32 %v2381_v13, %v5192_v5  ;;  %v2390_v38 = vmul.f32 %v2381_v13, %v5277_v41 }
 0x92b   : > { %2405 = vrot.lane.b32.xlu1 %v2386_v52, %s3592_s26  ;;  %2401 = vrot.lane.b32.xlu2 %v2384_v33, %s3592_s26 }
 0x92c   : > { %2399 = vrot.lane.b32.xlu0 %v2383_v16, %s3592_s26 }
 0x933   : > { %2411 = vrot.lane.b32.xlu1 %v2389_v47, %s3592_s26  ;;  %2409 = vrot.lane.b32.xlu2 %v2388_v15, %s3592_s26 }
 0x934   : > { %2403 = vrot.lane.b32.xlu0 %v2385_v3, %s3592_s26 }
 0x93c   : > { %2407 = vrot.lane.b32.xlu0 %v2387_v53, %s3592_s26 }
 0x944   : > { %2413 = vrot.lane.b32.xlu0 %v2390_v38, %s3592_s26  ;;  %s3296_s26 = sshll.u32 %s6106_s30, 4 }
 0x985   : > { %v2402_v49 = vpop.permute.xlu2 %2401 }
 0x986   : > { %v2426_v63 = vsel %vm1953_vm0, %v2402_v49, 0.0 }
 0x987   : > { %2427 = vadd.xlane.f32.xlu1 %v2426_v63 }
 0x98d   : > { %v2410_v33 = vpop.permute.xlu2 %2409 }
 0x98e   : > { %v2438_v47 = vsel %vm1953_vm0, %v2410_v33, 0.0 }
 0x99d   : > { %v2406_v32 = vpop.permute.xlu1 %2405 }
 0x99e   : > { %v2400_v40 = vpop.permute.xlu0 %2399  ;;  %v2432_v9 = vsel %vm1953_vm0, %v2406_v32, 0.0 }
 0x99f   : > { %v2423_v17 = vsel %vm1953_vm0, %v2400_v40, 0.0 }
 0x9a0   : > { %2424 = vadd.xlane.f32.xlu2 %v2423_v17 }
 0x9a5   : > { %v2412_v16 = vpop.permute.xlu1 %2411 }
 0x9a6   : > { %v2404_v1 = vpop.permute.xlu0 %2403  ;;  %v2441_v15 = vsel %vm1953_vm0, %v2412_v16, 0.0 }
 0x9a7   : > { %v2429_v52 = vsel %vm1953_vm0, %v2404_v1, 0.0 }
 0x9a8   : > { %2433 = vadd.xlane.f32.xlu2 %v2432_v9  ;;  %2430 = vadd.xlane.f32.xlu0 %v2429_v52 }
 0x9ae   : > { %v2408_v13 = vpop.permute.xlu0 %2407 }
 0x9af   : > { %v2435_v3 = vsel %vm1953_vm0, %v2408_v13, 0.0 }
 0x9b0   : > { %2442 = vadd.xlane.f32.xlu2 %v2441_v15  ;;  %2439 = vadd.xlane.f32.xlu0 %v2438_v47 }
 0x9b1   : > { %2436 = vadd.xlane.f32.xlu1 %v2435_v3 }
 0x9b6   : > { %v2414_v53 = vpop.permute.xlu0 %2413 }
 0x9b7   : > { %v2444_v38 = vsel %vm1953_vm0, %v2414_v53, 0.0 }
 0x9b9   : > { %2445 = vadd.xlane.f32.xlu1 %v2444_v38 }
 0x9c4   : > { %2447 = vrot.lane.b32.xlu0 %v5206_v11, %s3593_s13 }
 0x9fa   : > { %v5549_v40 = vpop.xlane.xlu1 %2427 }
 0xa13   : > { %v5547_v49 = vpop.xlane.xlu2 %2424 }
 0xa14   : > { %6092 = vst [vmem:[#allocation8_spill] sm:$0xff] %v5547_v49 }
 0xa1b   : > { %v2434_v63 = vpop.xlane.xlu2 %2433  ;;  %v5551_v32 = vpop.xlane.xlu0 %2430 }
 0xa23   : > { %v2443_v17 = vpop.xlane.xlu2 %2442  ;;  %v5561_v16 = vpop.xlane.xlu0 %2439 }
 0xa24   : > { %v5554_v1 = vsel %vm3036_vm8, %v3034_v55, %v2443_v17  ;;  %v5556_v9 = vpop.xlane.xlu1 %2436 }
 0xa25   : > { %6093 = vst [vmem:[#allocation9_spill] sm:$0xff] %v5554_v1 }
 0xa2c   : > { %v2446_v52 = vpop.xlane.xlu1 %2445 }
 0xa2d   : > { %v5559_v33 = vsel %vm3036_vm8, %v3035_v51, %v2446_v52 }
 0xa36   : > { %v2448_v13 = vpop.permute.xlu0 %2447 }
 0xa37   : > { %v2452_v47 = vmul.f32 %v2448_v13, %v5241_v37  ;;  %v2451_v15 = vmul.f32 %v2448_v13, %v5178_v12  ;;  %v2450_v3 = vmul.f32 %v2448_v13, %v5166_v45  ;;  %v2454_v55 = vmul.f32 %v2448_v13, %v5192_v5 }
 0xa38   : > { %v2455_v53 = vmul.f32 %v2448_v13, %v5200_v43  ;;  %v2453_v51 = vmul.f32 %v2448_v13, %v5214_v56  ;;  %v2457_v38 = vmul.f32 %v2448_v13, %v5277_v41  ;;  %v2456_v17 = vmul.f32 %v2448_v13, %v5257_v28 }
 0xa39   : > { %2470 = vrot.lane.b32.xlu0 %v2452_v47, %s3594_s14  ;;  %2468 = vrot.lane.b32.xlu1 %v2451_v15, %s3594_s14 }
 0xa3a   : > { %2466 = vrot.lane.b32.xlu2 %v2450_v3, %s3594_s14 }
 0xa41   : > { %2474 = vrot.lane.b32.xlu0 %v2454_v55, %s3594_s14  ;;  %2476 = vrot.lane.b32.xlu1 %v2455_v53, %s3594_s14 }
 0xa42   : > { %2472 = vrot.lane.b32.xlu2 %v2453_v51, %s3594_s14 }
 0xa49   : > { %2480 = vrot.lane.b32.xlu0 %v2457_v38, %s3594_s14 }
 0xa4a   : > { %2478 = vrot.lane.b32.xlu2 %v2456_v17, %s3594_s14 }
 0xa94   : > { %v2467_v52 = vpop.permute.xlu2 %2466 }
 0xa95   : > { %v2490_v47 = vsel %vm1953_vm0, %v2467_v52, 0.0 }
 0xa96   : > { %2491 = vadd.xlane.f32.xlu1 %v2490_v47 }
 0xa9c   : > { %v2473_v15 = vpop.permute.xlu2 %2472 }
 0xa9d   : > { %v2499_v3 = vsel %vm1953_vm0, %v2473_v15, 0.0 }
 0xa9e   : > { %2500 = vadd.xlane.f32.xlu1 %v2499_v3 }
 0xaa4   : > { %v2479_v1 = vpop.permute.xlu2 %2478 }
 0xaa5   : > { %v2508_v49 = vsel %vm1953_vm0, %v2479_v1, 0.0 }
 0xaa6   : > { %2509 = vadd.xlane.f32.xlu1 %v2508_v49  ;;  %v2987_v49 = vsel %vm2983_vm3, %v5315_v57, %v5398_v54 }
 0xaab   : > { %v2471_v55 = vpop.permute.xlu0 %2470  ;;  %v2469_v53 = vpop.permute.xlu1 %2468 }
 0xaac   : > { %v2496_v51 = vsel %vm1953_vm0, %v2471_v55, 0.0  ;;  %v2493_v13 = vsel %vm1953_vm0, %v2469_v53, 0.0  ;;  %v2996_v55 = vsel %vm2992_vm4, %v2987_v49, %v5396_v31  ;;  %v2985_v31 = vsel %vm2983_vm3, %v5299_v2, %v5421_v26 }
 0xaad   : > { %2497 = vadd.xlane.f32.xlu0 %v2496_v51  ;;  %2494 = vadd.xlane.f32.xlu2 %v2493_v13  ;;  %v3005_v53 = vsel %vm3001_vm5, %v2996_v55, %v5431_v14  ;;  %v2994_v14 = vsel %vm2992_vm4, %v2985_v31, %v5425_v58 }
 0xaae   : > { %v3013_v51 = vsel %vm1953_vm0, %v3005_v53, %v5409_v34  ;;  %v3003_v34 = vsel %vm3001_vm5, %v2994_v14, %v5382_v30 }
 0xaaf   : > { %v3022_v13 = vsel %vm3018_vm6, %v3013_v51, %v5486_v42  ;;  %v3011_v42 = vsel %vm1953_vm0, %v3003_v34, %v5439_v35 }
 0xab3   : > { %v2475_v38 = vpop.permute.xlu0 %2474  ;;  %v2477_v17 = vpop.permute.xlu1 %2476 }
 0xab4   : > { %v2502_v52 = vsel %vm1953_vm0, %v2475_v38, 0.0  ;;  %v2505_v47 = vsel %vm1953_vm0, %v2477_v17, 0.0  ;;  %v2988_v17 = vsel %vm2983_vm3, %v5325_v0, %v5427_v20 }
 0xab5   : > { %2506 = vadd.xlane.f32.xlu0 %v2505_v47  ;;  %2503 = vadd.xlane.f32.xlu2 %v2502_v52  ;;  %v2997_v30 = vsel %vm2992_vm4, %v2988_v17, %v5429_v39 }
 0xab6   : > { %v3006_v20 = vsel %vm3001_vm5, %v2997_v30, %v5386_v23 }
 0xabb   : > { %v2481_v15 = vpop.permute.xlu0 %2480 }
 0xabc   : > { %v2511_v1 = vsel %vm1953_vm0, %v2481_v15, 0.0 }
 0xabd   : > { %2512 = vadd.xlane.f32.xlu2 %v2511_v1 }
 0xac9   : > { %2514 = vrot.lane.b32.xlu0 %v5206_v11, %s3595_s15  ;;  %v3031_v11 = vsel %vm3027_vm7, %v3022_v13, %v5503_v22  ;;  %v3020_v22 = vsel %vm3018_vm6, %v3011_v42, %v5479_v6  ;;  %v2989_v6 = vsel %vm2983_vm3, %v5350_v27, %v5392_v25  ;;  %s404_s15 = scalar_lea.vmem %s5959_s9, %s3296_s26 }
 0xaca   : > { %v3040_v38 = vsel %vm3036_vm8, %v3031_v11, %v2434_v63  ;;  %v3029_v63 = vsel %vm3027_vm7, %v3020_v22, %v5496_v36  ;;  %v2998_v36 = vsel %vm2992_vm4, %v2989_v6, %v5388_v50 }
 0xacb   : > { %v3038_v2 = vsel %vm3036_vm8, %v3029_v63, %v5549_v40  ;;  %v3007_v0 = vsel %vm3001_vm5, %v2998_v36, %v5394_v24  ;;  %v3014_v40 = vsel %vm1953_vm0, %v3006_v20, %v5443_v19 }
 0xacc   : > { %v3015_v39 = vsel %vm1953_vm0, %v3007_v0, %v5411_v61  ;;  %v3023_v52 = vsel %vm3018_vm6, %v3014_v40, %v5481_v62  ;;  %v5670_v0 = vld [vmem:[%s3704_s28] ss:$0 sm:$0xff]  ;;  %s3598_s28 = smov 88  }
 0xacd   : > { %v3024_v27 = vsel %vm3018_vm6, %v3015_v39, %v5461_v60  ;;  %v3032_v50 = vsel %vm3027_vm7, %v3023_v52, %v5505_v7 }
 0xace   : > { %v3033_v25 = vsel %vm3027_vm7, %v3024_v27, %v5528_v4  ;;  %v3041_v23 = vsel %vm3036_vm8, %v3032_v50, %v5556_v9  ;;  %v2984_v27 = vsel %vm2983_vm3, %v5293_v59, %v5375_v48  ;;  %v6094_v48 = vld [vmem:[#allocation3_spill] sm:$0xff] }
 0xacf   : > { %v3042_v24 = vsel %vm3036_vm8, %v3033_v25, %v5561_v16 }
 0xb09   : > { %v5583_v3 = vpop.xlane.xlu1 %2491 }
 0xb11   : > { %v2501_v57 = vpop.xlane.xlu1 %2500 }
 0xb12   : > { %v5597_v54 = vsel %vm520_vm1, %v3040_v38, %v2501_v57 }
 0xb19   : > { %v2510_v31 = vpop.xlane.xlu1 %2509 }
 0xb20   : > { %v5617_v26 = vpop.xlane.xlu0 %2497  ;;  %v2495_v58 = vpop.xlane.xlu2 %2494 }
 0xb21   : > { %v5622_v35 = vsel %vm520_vm1, %v3038_v2, %v2495_v58 }
 0xb28   : > { %v2507_v19 = vpop.xlane.xlu0 %2506  ;;  %v2504_v61 = vpop.xlane.xlu2 %2503 }
 0xb29   : > { %v5650_v47 = vsel %vm520_vm1, %v3042_v24, %v2507_v19  ;;  %v3049_v62 = vsel %vm520_vm1, %v3041_v23, %v2504_v61  ;;  %v2986_v23 = vsel %vm2983_vm3, %v5330_v46, %v5390_v18  ;;  %v6095_v61 = vld [vmem:[#allocation7_spill] sm:$0xff]  ;;  %v6097_v18 = vld [vmem:[#allocation6_spill] sm:$0xff] }
 0xb2a   : > { %v2995_v19 = vsel %vm2992_vm4, %v2986_v23, %v5380_v21 }
 0xb2b   : > { %v3004_v59 = vsel %vm3001_vm5, %v2995_v19, %v5384_v44 }
 0xb30   : > { %v2513_v53 = vpop.xlane.xlu2 %2512 }
 0xb31   : > { %v3052_v50 = vsel %vm520_vm1, %v5559_v33, %v2513_v53 }
 0xb3b   : > { %v2515_v60 = vpop.permute.xlu0 %2514 }
 0xb3c   : > { %v2519_v15 = vmul.f32 %v2515_v60, %v5241_v37  ;;  %v2518_v7 = vmul.f32 %v2515_v60, %v5178_v12  ;;  %v2517_v4 = vmul.f32 %v2515_v60, %v5166_v45  ;;  %v2522_v9 = vmul.f32 %v2515_v60, %v5200_v43 }
 0xb3d   : > { %v2521_v16 = vmul.f32 %v2515_v60, %v5192_v5  ;;  %v2520_v1 = vmul.f32 %v2515_v60, %v5214_v56  ;;  %v2524_v49 = vmul.f32 %v2515_v60, %v5277_v41  ;;  %v2523_v55 = vmul.f32 %v2515_v60, %v5257_v28  ;;  %v6096_v60 = vld [vmem:[#allocation4_spill] sm:$0xff] }
 0xb3e   : > { %2537 = vrot.lane.b32.xlu0 %v2519_v15, %s3596_s17  ;;  %2535 = vrot.lane.b32.xlu2 %v2518_v7, %s3596_s17  ;;  %v6098_v15 = vld [vmem:[#allocation5_spill] sm:$0xff] }
 0xb3f   : > { %2533 = vrot.lane.b32.xlu1 %v2517_v4, %s3596_s17 }
 0xb46   : > { %2543 = vrot.lane.b32.xlu0 %v2522_v9, %s3596_s17  ;;  %2541 = vrot.lane.b32.xlu2 %v2521_v16, %s3596_s17  ;;  %v6099_v9 = vld [vmem:[#allocation8_spill] sm:$0xff] }
 0xb47   : > { %2539 = vrot.lane.b32.xlu1 %v2520_v1, %s3596_s17 }
 0xb4e   : > { %2547 = vrot.lane.b32.xlu2 %v2524_v49, %s3596_s17 }
 0xb4f   : > { %2545 = vrot.lane.b32.xlu1 %v2523_v55, %s3596_s17 }
 0xb98   : > { %v2536_v51 = vpop.permute.xlu2 %2535 }
 0xb99   : > { %v2560_v13 = vsel %vm1953_vm0, %v2536_v51, 0.0 }
 0xb9a   : > { %2561 = vadd.xlane.f32.xlu1 %v2560_v13 }
 0xba0   : > { %v2542_v11 = vpop.permute.xlu2 %2541 }
 0xba1   : > { %v2569_v38 = vsel %vm1953_vm0, %v2542_v11, 0.0 }
 0xba2   : > { %2570 = vadd.xlane.f32.xlu1 %v2569_v38 }
 0xba8   : > { %v2548_v57 = vpop.permute.xlu2 %2547 }
 0xba9   : > { %v2578_v14 = vsel %vm1953_vm0, %v2548_v57, 0.0 }
 0xbaa   : > { %2579 = vadd.xlane.f32.xlu1 %v2578_v14 }
 0xbb0   : > { %v2538_v34 = vpop.permute.xlu0 %2537 }
 0xbb1   : > { %v2563_v42 = vsel %vm1953_vm0, %v2538_v34, 0.0  ;;  %v2534_v22 = vpop.permute.xlu1 %2533 }
 0xbb2   : > { %v2557_v63 = vsel %vm1953_vm0, %v2534_v22, 0.0  ;;  %2564 = vadd.xlane.f32.xlu2 %v2563_v42 }
 0xbb3   : > { %2558 = vadd.xlane.f32.xlu0 %v2557_v63 }
 0xbb8   : > { %v2544_v17 = vpop.permute.xlu0 %2543 }
 0xbb9   : > { %v2572_v2 = vsel %vm1953_vm0, %v2544_v17, 0.0  ;;  %v2540_v58 = vpop.permute.xlu1 %2539 }
 0xbba   : > { %v2566_v30 = vsel %vm1953_vm0, %v2540_v58, 0.0  ;;  %2573 = vadd.xlane.f32.xlu2 %v2572_v2 }
 0xbbb   : > { %2567 = vadd.xlane.f32.xlu0 %v2566_v30 }
 0xbc1   : > { %v2546_v6 = vpop.permute.xlu1 %2545 }
 0xbc2   : > { %v2575_v36 = vsel %vm1953_vm0, %v2546_v6, 0.0 }
 0xbc3   : > { %2576 = vadd.xlane.f32.xlu0 %v2575_v36 }
 0xbd2   : > { %2581 = vrot.lane.b32.xlu2 %v5670_v0, %s3597_s16 }
 0xc0d   : > { %v2562_v20 = vpop.xlane.xlu1 %2561 }
 0xc0e   : > { %v5675_v40 = vsel %vm3053_vm9, %v5622_v35, %v2562_v20  ;;  %v2993_v35 = vsel %vm2992_vm4, %v2984_v27, %v5378_v8 }
 0xc0f   : > { %v3002_v33 = vsel %vm3001_vm5, %v2993_v35, %v6094_v48 }
 0xc10   : > { %v3010_v46 = vsel %vm1953_vm0, %v3002_v33, %v6096_v60 }
 0xc11   : > { %v3019_v7 = vsel %vm3018_vm6, %v3010_v46, %v6098_v15 }
 0xc12   : > { %v3028_v44 = vsel %vm3027_vm7, %v3019_v7, %v5498_v10 }
 0xc13   : > { %v3037_v16 = vsel %vm3036_vm8, %v3028_v44, %v6099_v9 }
 0xc14   : > { %v3045_v55 = vsel %vm520_vm1, %v3037_v16, %v5583_v3 }
 0xc15   : > { %v2571_v39 = vpop.xlane.xlu1 %2570 }
 0xc16   : > { %v5678_v52 = vsel %vm3053_vm9, %v3049_v62, %v2571_v39  ;;  %v3012_v62 = vsel %vm1953_vm0, %v3004_v59, %v6095_v61 }
 0xc17   : > { %v3021_v8 = vsel %vm3018_vm6, %v3012_v62, %v6097_v18 }
 0xc18   : > { %v3030_v21 = vsel %vm3027_vm7, %v3021_v8, %v5514_v29 }
 0xc19   : > { %v3039_v4 = vsel %vm3036_vm8, %v3030_v21, %v5551_v32 }
 0xc1a   : > { %v3047_v1 = vsel %vm520_vm1, %v3039_v4, %v5617_v26  ;;  %v6100_v26 = vld [vmem:[#allocation9_spill] sm:$0xff] }
 0xc1b   : > { %v3051_v57 = vsel %vm520_vm1, %v6100_v26, %v2510_v31  ;;  %vm3062_vm1 = vcmask 80896  }
 0xc1d   : > { %v2580_v25 = vpop.xlane.xlu1 %2579 }
 0xc1e   : > { %v5691_v24 = vsel %vm3053_vm9, %v3052_v50, %v2580_v25 }
 0xc25   : > { %v2565_v49 = vpop.xlane.xlu2 %2564 }
 0xc26   : > { %v2559_v53 = vpop.xlane.xlu0 %2558  ;;  %v3056_v51 = vsel %vm3053_vm9, %v3047_v1, %v2565_v49 }
 0xc27   : > { %v3054_v29 = vsel %vm3053_vm9, %v3045_v55, %v2559_v53 }
 0xc2d   : > { %v2574_v13 = vpop.xlane.xlu2 %2573 }
 0xc2e   : > { %v2568_v10 = vpop.xlane.xlu0 %2567  ;;  %v5723_v32 = vsel %vm3053_vm9, %v5650_v47, %v2574_v13 }
 0xc2f   : > { %v3057_v11 = vsel %vm3053_vm9, %v5597_v54, %v2568_v10 }
 0xc35   : > { %v2582_v38 = vpop.permute.xlu2 %2581 }
 0xc36   : > { %v2577_v14 = vpop.xlane.xlu0 %2576  ;;  %v2587_v3 = vmul.f32 %v2582_v38, %v5214_v56  ;;  %v2585_v34 = vmul.f32 %v2582_v38, %v5178_v12  ;;  %v2584_v42 = vmul.f32 %v2582_v38, %v5166_v45  ;;  %v2589_v47 = vmul.f32 %v2582_v38, %v5200_v43 }
 0xc37   : > { %v3060_v22 = vsel %vm3053_vm9, %v3051_v57, %v2577_v14  ;;  %v2590_v54 = vmul.f32 %v2582_v38, %v5257_v28  ;;  %v2586_v63 = vmul.f32 %v2582_v38, %v5241_v37  ;;  %v2588_v31 = vmul.f32 %v2582_v38, %v5192_v5 }
 0xc38   : > { %2606 = vrot.lane.b32.xlu2 %v2587_v3, %s3598_s28  ;;  %2602 = vrot.lane.b32.xlu1 %v2585_v34, %s3598_s28  ;;  %v2591_v17 = vmul.f32 %v2582_v38, %v5277_v41 }
 0xc39   : > { %2600 = vrot.lane.b32.xlu0 %v2584_v42, %s3598_s28 }
 0xc40   : > { %2610 = vrot.lane.b32.xlu2 %v2589_v47, %s3598_s28  ;;  %2612 = vrot.lane.b32.xlu1 %v2590_v54, %s3598_s28 }
 0xc41   : > { %2604 = vrot.lane.b32.xlu0 %v2586_v63, %s3598_s28 }
 0xc49   : > { %2608 = vrot.lane.b32.xlu0 %v2588_v31, %s3598_s28 }
 0xc51   : > { %2614 = vrot.lane.b32.xlu0 %v2591_v17, %s3598_s28 }
 0xc92   : > { %v2607_v36 = vpop.permute.xlu2 %2606 }
 0xc93   : > { %v2633_v39 = vsel %vm1953_vm0, %v2607_v36, 0.0 }
 0xc9a   : > { %v2611_v50 = vpop.permute.xlu2 %2610 }
 0xc9b   : > { %v2639_v35 = vsel %vm1953_vm0, %v2611_v50, 0.0 }
 0xcaa   : > { %v2603_v2 = vpop.permute.xlu1 %2602 }
 0xcab   : > { %v2627_v58 = vsel %vm1953_vm0, %v2603_v2, 0.0  ;;  %v2601_v30 = vpop.permute.xlu0 %2600 }
 0xcac   : > { %v2624_v6 = vsel %vm1953_vm0, %v2601_v30, 0.0  ;;  %2628 = vadd.xlane.f32.xlu1 %v2627_v58 }
 0xcad   : > { %2625 = vadd.xlane.f32.xlu2 %v2624_v6 }
 0xcb2   : > { %v2613_v25 = vpop.permute.xlu1 %2612 }
 0xcb3   : > { %v2605_v20 = vpop.permute.xlu0 %2604  ;;  %v2642_v19 = vsel %vm1953_vm0, %v2613_v25, 0.0 }
 0xcb4   : > { %v2630_v27 = vsel %vm1953_vm0, %v2605_v20, 0.0 }
 0xcb5   : > { %2634 = vadd.xlane.f32.xlu2 %v2633_v39  ;;  %2631 = vadd.xlane.f32.xlu0 %v2630_v27 }
 0xcbb   : > { %v2609_v23 = vpop.permute.xlu0 %2608 }
 0xcbc   : > { %v2636_v59 = vsel %vm1953_vm0, %v2609_v23, 0.0 }
 0xcbd   : > { %2643 = vadd.xlane.f32.xlu2 %v2642_v19  ;;  %2640 = vadd.xlane.f32.xlu0 %v2639_v35 }
 0xcbe   : > { %2637 = vadd.xlane.f32.xlu1 %v2636_v59 }
 0xcc3   : > { %v2615_v48 = vpop.permute.xlu0 %2614 }
 0xcc4   : > { %v2645_v33 = vsel %vm1953_vm0, %v2615_v48, 0.0 }
 0xcc6   : > { %2646 = vadd.xlane.f32.xlu1 %v2645_v33 }
 0xcd1   : > { %2648 = vrot.lane.b32.xlu0 %v5670_v0, %s3599_s18 }
 0xd1f   : > { %v2629_v61 = vpop.xlane.xlu1 %2628 }
 0xd20   : > { %v5749_v62 = vsel %vm3062_vm1, %v5675_v40, %v2629_v61  ;;  %v2626_v60 = vpop.xlane.xlu2 %2625 }
 0xd21   : > { %v3063_v46 = vsel %vm3062_vm1, %v3054_v29, %v2626_v60 }
 0xd28   : > { %v2635_v18 = vpop.xlane.xlu2 %2634  ;;  %v2632_v8 = vpop.xlane.xlu0 %2631 }
 0xd29   : > { %v3066_v15 = vsel %vm3062_vm1, %v3057_v11, %v2635_v18  ;;  %v5754_v7 = vsel %vm3062_vm1, %v3056_v51, %v2632_v8 }
 0xd30   : > { %v2644_v21 = vpop.xlane.xlu2 %2643  ;;  %v2641_v44 = vpop.xlane.xlu0 %2640 }
 0xd31   : > { %v3069_v4 = vsel %vm3062_vm1, %v3060_v22, %v2644_v21  ;;  %v2638_v9 = vpop.xlane.xlu1 %2637  ;;  %v3068_v16 = vsel %vm3062_vm1, %v5723_v32, %v2641_v44 }
 0xd32   : > { %v3067_v40 = vsel %vm3062_vm1, %v5678_v52, %v2638_v9 }
 0xd39   : > { %v2647_v1 = vpop.xlane.xlu1 %2646 }
 0xd3a   : > { %v3070_v49 = vsel %vm3062_vm1, %v5691_v24, %v2647_v1 }
 0xd43   : > { %v2649_v55 = vpop.permute.xlu0 %2648 }
 0xd44   : > { %v2653_v53 = vmul.f32 %v2649_v55, %v5241_v37  ;;  %v2652_v51 = vmul.f32 %v2649_v55, %v5178_v12  ;;  %v2651_v29 = vmul.f32 %v2649_v55, %v5166_v45  ;;  %v2655_v13 = vmul.f32 %v2649_v55, %v5192_v5 }
 0xd45   : > { %v2656_v10 = vmul.f32 %v2649_v55, %v5200_v43  ;;  %v2654_v52 = vmul.f32 %v2649_v55, %v5214_v56  ;;  %v2658_v24 = vmul.f32 %v2649_v55, %v5277_v41  ;;  %v2657_v32 = vmul.f32 %v2649_v55, %v5257_v28 }
 0xd46   : > { %2671 = vrot.lane.b32.xlu0 %v2653_v53, %s3600_s19  ;;  %2669 = vrot.lane.b32.xlu1 %v2652_v51, %s3600_s19 }
 0xd47   : > { %2667 = vrot.lane.b32.xlu2 %v2651_v29, %s3600_s19 }
 0xd4e   : > { %2675 = vrot.lane.b32.xlu0 %v2655_v13, %s3600_s19  ;;  %2677 = vrot.lane.b32.xlu1 %v2656_v10, %s3600_s19 }
 0xd4f   : > { %2673 = vrot.lane.b32.xlu2 %v2654_v52, %s3600_s19 }
 0xd56   : > { %2681 = vrot.lane.b32.xlu0 %v2658_v24, %s3600_s19 }
 0xd57   : > { %2679 = vrot.lane.b32.xlu2 %v2657_v32, %s3600_s19 }
 0xda1   : > { %v2668_v11 = vpop.permute.xlu2 %2667 }
 0xda2   : > { %v2691_v38 = vsel %vm1953_vm0, %v2668_v11, 0.0 }
 0xda3   : > { %2692 = vadd.xlane.f32.xlu1 %v2691_v38 }
 0xda9   : > { %v2674_v26 = vpop.permute.xlu2 %2673 }
 0xdaa   : > { %v2700_v57 = vsel %vm1953_vm0, %v2674_v26, 0.0 }
 0xdab   : > { %2701 = vadd.xlane.f32.xlu1 %v2700_v57 }
 0xdb1   : > { %v2680_v14 = vpop.permute.xlu2 %2679 }
 0xdb2   : > { %v2709_v3 = vsel %vm1953_vm0, %v2680_v14, 0.0 }
 0xdb3   : > { %2710 = vadd.xlane.f32.xlu1 %v2709_v3 }
 0xdb8   : > { %v2672_v34 = vpop.permute.xlu0 %2671  ;;  %v2670_v42 = vpop.permute.xlu1 %2669 }
 0xdb9   : > { %v2697_v22 = vsel %vm1953_vm0, %v2672_v34, 0.0  ;;  %v2694_v47 = vsel %vm1953_vm0, %v2670_v42, 0.0 }
 0xdba   : > { %2698 = vadd.xlane.f32.xlu0 %v2697_v22  ;;  %2695 = vadd.xlane.f32.xlu2 %v2694_v47 }
 0xdc0   : > { %v2676_v54 = vpop.permute.xlu0 %2675  ;;  %v2678_v63 = vpop.permute.xlu1 %2677 }
 0xdc1   : > { %v2703_v31 = vsel %vm1953_vm0, %v2676_v54, 0.0  ;;  %v2706_v17 = vsel %vm1953_vm0, %v2678_v63, 0.0 }
 0xdc2   : > { %2707 = vadd.xlane.f32.xlu0 %v2706_v17  ;;  %2704 = vadd.xlane.f32.xlu2 %v2703_v31 }
 0xdc8   : > { %v2682_v2 = vpop.permute.xlu0 %2681 }
 0xdc9   : > { %v2712_v58 = vsel %vm1953_vm0, %v2682_v2, 0.0 }
 0xdca   : > { %2713 = vadd.xlane.f32.xlu2 %v2712_v58 }
 0xdd6   : > { %2715 = vrot.lane.b32.xlu0 %v5670_v0, %s3601_s20 }
 0xe16   : > { %v2693_v30 = vpop.xlane.xlu1 %2692 }
 0xe17   : > { %v5781_v6 = vsel %vm3071_vm10, %v3063_v46, %v2693_v30 }
 0xe1e   : > { %v2702_v36 = vpop.xlane.xlu1 %2701 }
 0xe1f   : > { %v5784_v20 = vsel %vm3071_vm10, %v3066_v15, %v2702_v36 }
 0xe26   : > { %v2711_v39 = vpop.xlane.xlu1 %2710 }
 0xe27   : > { %v5787_v27 = vsel %vm3071_vm10, %v3069_v4, %v2711_v39 }
 0xe2d   : > { %v2699_v50 = vpop.xlane.xlu0 %2698  ;;  %v2696_v25 = vpop.xlane.xlu2 %2695 }
 0xe2e   : > { %v3074_v23 = vsel %vm3071_vm10, %v5754_v7, %v2699_v50  ;;  %v3073_v35 = vsel %vm3071_vm10, %v5749_v62, %v2696_v25 }
 0xe35   : > { %v2708_v19 = vpop.xlane.xlu0 %2707  ;;  %v2705_v59 = vpop.xlane.xlu2 %2704 }
 0xe36   : > { %v5794_v48 = vsel %vm3071_vm10, %v3068_v16, %v2708_v19  ;;  %v3076_v33 = vsel %vm3071_vm10, %v3067_v40, %v2705_v59 }
 0xe3d   : > { %v2714_v61 = vpop.xlane.xlu2 %2713 }
 0xe3e   : > { %v3079_v60 = vsel %vm3071_vm10, %v3070_v49, %v2714_v61 }
 0xe48   : > { %v2716_v46 = vpop.permute.xlu0 %2715 }
 0xe49   : > { %v2720_v18 = vmul.f32 %v2716_v46, %v5241_v37  ;;  %v2719_v8 = vmul.f32 %v2716_v46, %v5178_v12  ;;  %v2718_v15 = vmul.f32 %v2716_v46, %v5166_v45  ;;  %v2722_v62 = vmul.f32 %v2716_v46, %v5192_v5 }
 0xe4a   : > { %v2723_v7 = vmul.f32 %v2716_v46, %v5200_v43  ;;  %v2721_v21 = vmul.f32 %v2716_v46, %v5214_v56  ;;  %v2725_v44 = vmul.f32 %v2716_v46, %v5277_v41  ;;  %v2724_v4 = vmul.f32 %v2716_v46, %v5257_v28 }
 0xe4b   : > { %2738 = vrot.lane.b32.xlu0 %v2720_v18, %s3602_s21  ;;  %2736 = vrot.lane.b32.xlu2 %v2719_v8, %s3602_s21 }
 0xe4c   : > { %2734 = vrot.lane.b32.xlu1 %v2718_v15, %s3602_s21 }
 0xe53   : > { %2742 = vrot.lane.b32.xlu0 %v2722_v62, %s3602_s21  ;;  %2744 = vrot.lane.b32.xlu2 %v2723_v7, %s3602_s21 }
 0xe54   : > { %2740 = vrot.lane.b32.xlu1 %v2721_v21, %s3602_s21 }
 0xe5b   : > { %2748 = vrot.lane.b32.xlu0 %v2725_v44, %s3602_s21 }
 0xe5c   : > { %2746 = vrot.lane.b32.xlu1 %v2724_v4, %s3602_s21 }
 0xea5   : > { %v2737_v9 = vpop.permute.xlu2 %2736 }
 0xea6   : > { %v2761_v16 = vsel %vm1953_vm0, %v2737_v9, 0.0 }
 0xea7   : > { %2762 = vadd.xlane.f32.xlu1 %v2761_v16 }
 0xead   : > { %v2745_v10 = vpop.permute.xlu2 %2744 }
 0xeae   : > { %v2773_v11 = vsel %vm1953_vm0, %v2745_v10, 0.0 }
 0xebd   : > { %v2739_v40 = vpop.permute.xlu0 %2738 }
 0xebe   : > { %v2764_v1 = vsel %vm1953_vm0, %v2739_v40, 0.0  ;;  %v2735_v49 = vpop.permute.xlu1 %2734 }
 0xebf   : > { %v2758_v55 = vsel %vm1953_vm0, %v2735_v49, 0.0  ;;  %2765 = vadd.xlane.f32.xlu0 %v2764_v1 }
 0xec0   : > { %2759 = vadd.xlane.f32.xlu2 %v2758_v55 }
 0xec5   : > { %v2743_v53 = vpop.permute.xlu0 %2742 }
 0xec6   : > { %v2770_v51 = vsel %vm1953_vm0, %v2743_v53, 0.0  ;;  %v2741_v29 = vpop.permute.xlu1 %2740 }
 0xec7   : > { %v2767_v13 = vsel %vm1953_vm0, %v2741_v29, 0.0  ;;  %2771 = vadd.xlane.f32.xlu1 %v2770_v51 }
 0xec8   : > { %2768 = vadd.xlane.f32.xlu2 %v2767_v13 }
 0xecd   : > { %v2749_v52 = vpop.permute.xlu0 %2748 }
 0xece   : > { %v2779_v24 = vsel %vm1953_vm0, %v2749_v52, 0.0  ;;  %v2747_v32 = vpop.permute.xlu1 %2746 }
 0xecf   : > { %v2776_v38 = vsel %vm1953_vm0, %v2747_v32, 0.0  ;;  %2780 = vadd.xlane.f32.xlu1 %v2779_v24 }
 0xed0   : > { %2777 = vadd.xlane.f32.xlu0 %v2776_v38  ;;  %2774 = vadd.xlane.f32.xlu2 %v2773_v11 }
 0xee8   : > { %2782 = vrot.lane.b32.xlu2 %v5670_v0, %s3603_s22 }
 0xf1a   : > { %v2763_v26 = vpop.xlane.xlu1 %2762 }
 0xf1b   : > { %v5816_v57 = vsel %vm3080_vm11, %v3073_v35, %v2763_v26 }
 0xf32   : > { %v2766_v14 = vpop.xlane.xlu0 %2765 }
 0xf33   : > { %v5819_v3 = vsel %vm3080_vm11, %v3074_v23, %v2766_v14  ;;  %v2760_v34 = vpop.xlane.xlu2 %2759 }
 0xf34   : > { %v3081_v42 = vsel %vm3080_vm11, %v5781_v6, %v2760_v34 }
 0xf3a   : > { %v2772_v22 = vpop.xlane.xlu1 %2771 }
 0xf3b   : > { %v5824_v47 = vsel %vm3080_vm11, %v3076_v33, %v2772_v22  ;;  %v2769_v54 = vpop.xlane.xlu2 %2768 }
 0xf3c   : > { %v3084_v63 = vsel %vm3080_vm11, %v5784_v20, %v2769_v54 }
 0xf42   : > { %v2781_v31 = vpop.xlane.xlu1 %2780 }
 0xf43   : > { %v2778_v17 = vpop.xlane.xlu0 %2777  ;;  %v5829_v2 = vsel %vm3080_vm11, %v3079_v60, %v2781_v31  ;;  %v2775_v58 = vpop.xlane.xlu2 %2774 }
 0xf44   : > { %v3087_v30 = vsel %vm3080_vm11, %v5787_v27, %v2778_v17  ;;  %v3086_v6 = vsel %vm3080_vm11, %v5794_v48, %v2775_v58 }
 0xf4b   : > { %v2783_v36 = vpop.permute.xlu2 %2782 }
 0xf4c   : > { %v2788_v39 = vmul.f32 %v2783_v36, %v5214_v56  ;;  %v2786_v50 = vmul.f32 %v2783_v36, %v5178_v12  ;;  %v2785_v25 = vmul.f32 %v2783_v36, %v5166_v45  ;;  %v2791_v20 = vmul.f32 %v2783_v36, %v5257_v28 }
 0xf4d   : > { %v2790_v23 = vmul.f32 %v2783_v36, %v5200_v43  ;;  %v2787_v27 = vmul.f32 %v2783_v36, %v5241_v37  ;;  %v2789_v35 = vmul.f32 %v2783_v36, %v5192_v5  ;;  %v2792_v19 = vmul.f32 %v2783_v36, %v5277_v41 }
 0xf4e   : > { %2807 = vrot.lane.b32.xlu2 %v2788_v39, %s3604_s27  ;;  %2803 = vrot.lane.b32.xlu1 %v2786_v50, %s3604_s27 }
 0xf4f   : > { %2801 = vrot.lane.b32.xlu0 %v2785_v25, %s3604_s27 }
 0xf56   : > { %2813 = vrot.lane.b32.xlu2 %v2791_v20, %s3604_s27  ;;  %2811 = vrot.lane.b32.xlu1 %v2790_v23, %s3604_s27 }
 0xf57   : > { %2805 = vrot.lane.b32.xlu0 %v2787_v27, %s3604_s27 }
 0xf5f   : > { %2809 = vrot.lane.b32.xlu0 %v2789_v35, %s3604_s27 }
 0xf67   : > { %2815 = vrot.lane.b32.xlu0 %v2792_v19, %s3604_s27 }
 0xfa8   : > { %v2808_v60 = vpop.permute.xlu2 %2807 }
 0xfa9   : > { %v2834_v18 = vsel %vm1953_vm0, %v2808_v60, 0.0 }
 0xfb0   : > { %v2814_v15 = vpop.permute.xlu2 %2813 }
 0xfb1   : > { %v2843_v21 = vsel %vm1953_vm0, %v2814_v15, 0.0 }
 0xfc0   : > { %v2804_v59 = vpop.permute.xlu1 %2803 }
 0xfc1   : > { %v2828_v48 = vsel %vm1953_vm0, %v2804_v59, 0.0  ;;  %v2802_v33 = vpop.permute.xlu0 %2801 }
 0xfc2   : > { %v2825_v61 = vsel %vm1953_vm0, %v2802_v33, 0.0  ;;  %2829 = vadd.xlane.f32.xlu2 %v2828_v48 }
 0xfc3   : > { %2826 = vadd.xlane.f32.xlu1 %v2825_v61 }
 0xfc8   : > { %v2812_v62 = vpop.permute.xlu1 %2811 }
 0xfc9   : > { %v2806_v46 = vpop.permute.xlu0 %2805  ;;  %v2840_v44 = vsel %vm1953_vm0, %v2812_v62, 0.0 }
 0xfca   : > { %v2831_v8 = vsel %vm1953_vm0, %v2806_v46, 0.0 }
 0xfcb   : > { %2835 = vadd.xlane.f32.xlu1 %v2834_v18  ;;  %2832 = vadd.xlane.f32.xlu0 %v2831_v8 }
 0xfd1   : > { %v2810_v7 = vpop.permute.xlu0 %2809 }
 0xfd2   : > { %v2837_v4 = vsel %vm1953_vm0, %v2810_v7, 0.0 }
 0xfd3   : > { %2844 = vadd.xlane.f32.xlu1 %v2843_v21  ;;  %2841 = vadd.xlane.f32.xlu0 %v2840_v44 }
 0xfd4   : > { %2838 = vadd.xlane.f32.xlu2 %v2837_v4 }
 0xfd9   : > { %v2816_v9 = vpop.permute.xlu0 %2815 }
 0xfda   : > { %v2846_v16 = vsel %vm1953_vm0, %v2816_v9, 0.0 }
 0xfdc   : > { %2847 = vadd.xlane.f32.xlu2 %v2846_v16 }
 0xfe7   : > { %2849 = vrot.lane.b32.xlu0 %v5670_v0, %s3605_s29 }
 0xfec   : > { %2916 = vrot.lane.b32.xlu1 %v5670_v0, %s3606_s23 }
0x1035   : > { %v2830_v40 = vpop.xlane.xlu2 %2829 }
0x1036   : > { %v5855_v1 = vsel %vm3089_vm12, %v5816_v57, %v2830_v40  ;;  %v2827_v49 = vpop.xlane.xlu1 %2826 }
0x1037   : > { %v5858_v55 = vsel %vm3089_vm12, %v3081_v42, %v2827_v49 }
0x103e   : > { %v2836_v53 = vpop.xlane.xlu1 %2835  ;;  %v2833_v51 = vpop.xlane.xlu0 %2832 }
0x103f   : > { %v5861_v29 = vsel %vm3089_vm12, %v3084_v63, %v2836_v53  ;;  %v5865_v13 = vsel %vm3089_vm12, %v5819_v3, %v2833_v51 }
0x1046   : > { %v2845_v0 = vpop.xlane.xlu1 %2844  ;;  %v2842_v10 = vpop.xlane.xlu0 %2841 }
0x1047   : > { %v5868_v52 = vsel %vm3089_vm12, %v3087_v30, %v2845_v0  ;;  %v2839_v24 = vpop.xlane.xlu2 %2838  ;;  %v5871_v32 = vsel %vm3089_vm12, %v3086_v6, %v2842_v10 }
0x1048   : > { %v5875_v11 = vsel %vm3089_vm12, %v5824_v47, %v2839_v24 }
0x104f   : > { %v2848_v38 = vpop.xlane.xlu2 %2847 }
0x1050   : > { %v5879_v26 = vsel %vm3089_vm12, %v5829_v2, %v2848_v38 }
0x1059   : > { %v2850_v57 = vpop.permute.xlu0 %2849 }
0x105a   : > { %v2855_v14 = vmul.f32 %v2850_v57, %v5214_v56  ;;  %v2853_v3 = vmul.f32 %v2850_v57, %v5178_v12  ;;  %v2852_v34 = vmul.f32 %v2850_v57, %v5166_v45  ;;  %v2858_v42 = vmul.f32 %v2850_v57, %v5257_v28 }
0x105b   : > { %v2856_v22 = vmul.f32 %v2850_v57, %v5192_v5  ;;  %v2854_v47 = vmul.f32 %v2850_v57, %v5241_v37  ;;  %v2859_v31 = vmul.f32 %v2850_v57, %v5277_v41  ;;  %v2857_v17 = vmul.f32 %v2850_v57, %v5200_v43 }
0x105c   : > { %2874 = vrot.lane.b32.xlu1 %v2855_v14, %s3607_s24  ;;  %2870 = vrot.lane.b32.xlu0 %v2853_v3, %s3607_s24 }
0x105d   : > { %2868 = vrot.lane.b32.xlu2 %v2852_v34, %s3607_s24 }
0x105e   : > { %v2917_v54 = vpop.permute.xlu1 %2916 }
0x105f   : > { %v2919_v63 = vmul.f32 %v2917_v54, %v5166_v45  ;;  %v2921_v2 = vmul.f32 %v2917_v54, %v5241_v37  ;;  %v2920_v58 = vmul.f32 %v2917_v54, %v5178_v12  ;;  %v2923_v30 = vmul.f32 %v2917_v54, %v5192_v5 }
0x1060   : > { %v2922_v6 = vmul.f32 %v2917_v54, %v5214_v56  ;;  %v2925_v45 = vmul.f32 %v2917_v54, %v5257_v28  ;;  %v2924_v36 = vmul.f32 %v2917_v54, %v5200_v43  ;;  %v2926_v39 = vmul.f32 %v2917_v54, %v5277_v41 }
0x1064   : > { %2880 = vrot.lane.b32.xlu1 %v2858_v42, %s3607_s24  ;;  %2876 = vrot.lane.b32.xlu0 %v2856_v22, %s3607_s24 }
0x1065   : > { %2872 = vrot.lane.b32.xlu2 %v2854_v47, %s3607_s24 }
0x106c   : > { %2935 = vrot.lane.b32.xlu1 %v2919_v63, %s3608_s25  ;;  %2882 = vrot.lane.b32.xlu0 %v2859_v31, %s3607_s24 }
0x106d   : > { %2878 = vrot.lane.b32.xlu2 %v2857_v17, %s3607_s24 }
0x1074   : > { %2939 = vrot.lane.b32.xlu1 %v2921_v2, %s3608_s25  ;;  %2937 = vrot.lane.b32.xlu0 %v2920_v58, %s3608_s25 }
0x107c   : > { %2943 = vrot.lane.b32.xlu1 %v2923_v30, %s3608_s25  ;;  %2941 = vrot.lane.b32.xlu0 %v2922_v6, %s3608_s25 }
0x1084   : > { %2947 = vrot.lane.b32.xlu1 %v2925_v45, %s3608_s25  ;;  %2945 = vrot.lane.b32.xlu0 %v2924_v36, %s3608_s25 }
0x108c   : > { %2949 = vrot.lane.b32.xlu0 %v2926_v39, %s3608_s25 }
0x10b7   : > { %v2869_v37 = vpop.permute.xlu2 %2868 }
0x10b8   : > { %v2892_v12 = vsel %vm1953_vm0, %v2869_v37, 0.0 }
0x10b9   : > { %2893 = vadd.xlane.f32.xlu2 %v2892_v12 }
0x10bf   : > { %v2873_v59 = vpop.permute.xlu2 %2872 }
0x10c0   : > { %v2898_v61 = vsel %vm1953_vm0, %v2873_v59, 0.0 }
0x10c7   : > { %v2879_v9 = vpop.permute.xlu2 %2878 }
0x10c8   : > { %v2907_v16 = vsel %vm1953_vm0, %v2879_v9, 0.0 }
0x10ce   : > { %v2875_v50 = vpop.permute.xlu1 %2874  ;;  %v2871_v25 = vpop.permute.xlu0 %2870 }
0x10cf   : > { %v2895_v5 = vsel %vm1953_vm0, %v2871_v25, 0.0  ;;  %v2901_v44 = vsel %vm1953_vm0, %v2875_v50, 0.0 }
0x10d0   : > { %2896 = vadd.xlane.f32.xlu1 %v2895_v5 }
0x10d6   : > { %v2881_v56 = vpop.permute.xlu1 %2880  ;;  %v2877_v20 = vpop.permute.xlu0 %2876 }
0x10d7   : > { %v2904_v28 = vsel %vm1953_vm0, %v2877_v20, 0.0  ;;  %v2910_v18 = vsel %vm1953_vm0, %v2881_v56, 0.0 }
0x10d8   : > { %2905 = vadd.xlane.f32.xlu1 %v2904_v28 }
0x10de   : > { %v2936_v43 = vpop.permute.xlu1 %2935  ;;  %v2883_v23 = vpop.permute.xlu0 %2882 }
0x10df   : > { %v2959_v27 = vsel %vm1953_vm0, %v2936_v43, 0.0  ;;  %v2913_v7 = vsel %vm1953_vm0, %v2883_v23, 0.0 }
0x10e0   : > { %2960 = vadd.xlane.f32.xlu0 %v2959_v27 }
0x10e6   : > { %v2940_v41 = vpop.permute.xlu1 %2939  ;;  %v2938_v35 = vpop.permute.xlu0 %2937 }
0x10e7   : > { %v2962_v19 = vsel %vm1953_vm0, %v2938_v35, 0.0  ;;  %v2965_v15 = vsel %vm1953_vm0, %v2940_v41, 0.0 }
0x10e8   : > { %2963 = vadd.xlane.f32.xlu2 %v2962_v19 }
0x10ee   : > { %v2944_v48 = vpop.permute.xlu1 %2943  ;;  %v2942_v33 = vpop.permute.xlu0 %2941 }
0x10ef   : > { %v2971_v60 = vsel %vm1953_vm0, %v2944_v48, 0.0  ;;  %v2968_v4 = vsel %vm1953_vm0, %v2942_v33, 0.0 }
0x10f0   : > { %2972 = vadd.xlane.f32.xlu0 %v2971_v60  ;;  %2899 = vadd.xlane.f32.xlu2 %v2898_v61 }
0x10f6   : > { %v2946_v46 = vpop.permute.xlu0 %2945  ;;  %v2948_v40 = vpop.permute.xlu1 %2947 }
0x10f7   : > { %v2974_v8 = vsel %vm1953_vm0, %v2946_v46, 0.0  ;;  %v2977_v49 = vsel %vm1953_vm0, %v2948_v40, 0.0 }
0x10f8   : > { %2911 = vadd.xlane.f32.xlu0 %v2910_v18  ;;  %2975 = vadd.xlane.f32.xlu1 %v2974_v8 }
0x10f9   : > { %2966 = vadd.xlane.f32.xlu2 %v2965_v15 }
0x10fe   : > { %v2950_v62 = vpop.permute.xlu0 %2949 }
0x10ff   : > { %v2980_v21 = vsel %vm1953_vm0, %v2950_v62, 0.0 }
0x1100   : > { %2914 = vadd.xlane.f32.xlu1 %v2913_v7  ;;  %2981 = vadd.xlane.f32.xlu0 %v2980_v21 }
0x1101   : > { %2902 = vadd.xlane.f32.xlu2 %v2901_v44 }
0x1109   : > { %2969 = vadd.xlane.f32.xlu2 %v2968_v4 }
0x1111   : > { %2908 = vadd.xlane.f32.xlu2 %v2907_v16 }
0x1119   : > { %2978 = vadd.xlane.f32.xlu2 %v2977_v49 }
0x112c   : > { %v2894_v53 = vpop.xlane.xlu2 %2893 }
0x112d   : > { %v3099_v51 = vsel %vm3098_vm13, %v5858_v55, %v2894_v53 }
0x1143   : > { %v2897_v24 = vpop.xlane.xlu1 %2896 }
0x1144   : > { %v3100_v38 = vsel %vm3098_vm13, %v5855_v1, %v2897_v24 }
0x114b   : > { %v2906_v3 = vpop.xlane.xlu1 %2905 }
0x1153   : > { %v2961_v0 = vpop.xlane.xlu0 %2960 }
0x1154   : > { %v3108_v10 = vsel %vm3107_vm14, %v3099_v51, %v2961_v0 }
0x1155   : > { %3116 = vxpose.xlu2.b32.start [1/8] (short) (narrow) %v3108_v10, 16 }
0x115b   : > { %v2964_v57 = vpop.xlane.xlu2 %2963 }
0x115c   : > { %v3109_v14 = vsel %vm3107_vm14, %v3100_v38, %v2964_v57 }
0x115d   : > { %3117 = vxpose.xlu2.b32.cont [2/8] (short) (narrow) %v3109_v14, 16 }
0x1163   : > { %v2973_v34 = vpop.xlane.xlu0 %2972  ;;  %v2900_v42 = vpop.xlane.xlu2 %2899 }
0x1164   : > { %v3101_v55 = vsel %vm3098_vm13, %v5865_v13, %v2900_v42  ;;  %v3103_v13 = vsel %vm3098_vm13, %v5875_v11, %v2906_v3 }
0x1165   : > { %v3112_v39 = vsel %vm3107_vm14, %v3103_v13, %v2973_v34 }
0x116b   : > { %v2976_v22 = vpop.xlane.xlu1 %2975  ;;  %v2912_v47 = vpop.xlane.xlu0 %2911 }
0x116c   : > { %v2967_v54 = vpop.xlane.xlu2 %2966  ;;  %v3105_v37 = vsel %vm3098_vm13, %v5868_v52, %v2912_v47 }
0x116d   : > { %v3110_v63 = vsel %vm3107_vm14, %v3101_v55, %v2967_v54 }
0x116e   : > { %3118 = vxpose.xlu2.b32.cont [3/8] (short) (narrow) %v3110_v63, 16 }
0x1173   : > { %v2915_v31 = vpop.xlane.xlu1 %2914  ;;  %v2982_v17 = vpop.xlane.xlu0 %2981 }
0x1174   : > { %v3106_v1 = vsel %vm3098_vm13, %v5879_v26, %v2915_v31  ;;  %v2903_v2 = vpop.xlane.xlu2 %2902 }
0x1175   : > { %v3115_v58 = vsel %vm3107_vm14, %v3106_v1, %v2982_v17  ;;  %v3102_v30 = vsel %vm3098_vm13, %v5861_v29, %v2903_v2 }
0x117c   : > { %v2970_v6 = vpop.xlane.xlu2 %2969 }
0x117d   : > { %v3111_v45 = vsel %vm3107_vm14, %v3102_v30, %v2970_v6 }
0x117e   : > { %3119 = vxpose.xlu2.b32.cont [4/8] (short) (narrow) %v3111_v45, 16 }
0x1184   : > { %v2909_v36 = vpop.xlane.xlu2 %2908 }
0x1185   : > { %v3104_v26 = vsel %vm3098_vm13, %v5871_v32, %v2909_v36 }
0x1186   : > { %3120 = vxpose.xlu2.b32.cont [5/8] (short) (narrow) %v3112_v39, 16  ;;  %v3113_v29 = vsel %vm3107_vm14, %v3104_v26, %v2976_v22 }
0x118c   : > { %v2979_v12 = vpop.xlane.xlu2 %2978 }
0x118d   : > { %v3114_v50 = vsel %vm3107_vm14, %v3105_v37, %v2979_v12 }
0x118e   : > { %3121 = vxpose.xlu2.b32.cont [6/8] (short) (narrow) %v3113_v29, 16 }
0x1196   : > { %3122 = vxpose.xlu2.b32.cont [7/8] (short) (narrow) %v3114_v50, 16 }
0x119e   : > { %3123 = vxpose.xlu2.b32.end [8/8] (short) (narrow) %v3115_v58, 16 }
0x11ff   : > { %v3132_v11 = vpop.trf.xlu2 }
0x1200   : > { %3149 = vst.msk [vmem:[%s404_s15] sm:$0xff] %vm3148_vm15, %v3132_v11 }
0x1207   : > { %v3133_v32 = vpop.trf.xlu2 }
0x1208   : > { %3150 = vst.msk [vmem:[%s404_s15 + $0x8] sm:$0xff] %vm3148_vm15, %v3133_v32 }
0x1209 PF: > { %s19_s11 = sadd.s32 1, %s3576_s11   ;;  %s6101_s30 = smov %s3572_s10 }
0x120a   : > { %p16_p5 = scmp.ge.s32.totalorder %s19_s11, 4   ;;  %s6102_s10 = smov %s6104_s12 }
0x120c   :  { %18 = sbr.rel (!%p16_p5) target bundleno = 2 (0x2), region = 92 }

</bundles_post_ra>
